<compile_context>
chip_gen: v7x
topology: tpu7x:2x2x1
jax: 0.10.0
libtpu: 0.0.40
codegen_flags: <defaults>
</compile_context>

<pallas_src>
import functools

import numpy as np
import jax
import jax.numpy as jnp
from jax import lax
from jax.experimental import pallas as pl
from jax.experimental.pallas import tpu as pltpu

# ----------------------------- model constants ------------------------------
D_DIM = 256                 # dec_hid_dim
DIMENSION = 2
E_DIM = 128                 # enc_hid_dim
JOINT = 21 * 2 + 25         # 67
SKELETON_DIM = JOINT * DIMENSION  # 134


# --------------------------------- kernel -----------------------------------
def encoder_kernel(x_ref, wih_ref, whh_ref, b_ref,
                   fc1w_ref, fc1b_ref, fc2w_ref, fc2b_ref,
                   out_ref, hid_ref, cell_ref, *, T, B, H):
    """Fused bi-LSTM + fc1/fc2 heads.

    x_ref:    (T*B, S)      flattened seq-first input
    wih_ref:  (S, 8H)       [Wih_fwd | Wih_bwd]
    whh_ref:  (2H, 8H)      block-diag(Whh_fwd, Whh_bwd)
    b_ref:    (1, 8H)       fused biases (b_ih + b_hh) for both directions
    out_ref:  (T, B, 2H)    per-step hidden, [fwd | bwd]
    hid_ref:  (B, D)        fc1(final hidden)
    cell_ref: (B, D)        fc2(final cell)
    Gate order inside each 4H block is (i, f, g, o), matching PyTorch.
    """
    # ---- input projection hoisted out of the recurrence ----
    # forward gate pre-activations in columns [0, 4H), backward in [4H, 8H)
    xproj = (jnp.dot(x_ref[...].astype(jnp.float32), wih_ref[...],
                     preferred_element_type=jnp.float32)
             + b_ref[...])                                     # (T*B, 8H)

    whh = whh_ref[...]                                         # (2H, 8H)

    def gates_to_hc(g, c_prev):
        i = jax.nn.sigmoid(g[:, 0 * H:1 * H])
        f = jax.nn.sigmoid(g[:, 1 * H:2 * H])
        gg = jnp.tanh(g[:, 2 * H:3 * H])
        o = jax.nn.sigmoid(g[:, 3 * H:4 * H])
        c_new = f * c_prev + i * gg
        h_new = o * jnp.tanh(c_new)
        return h_new, c_new

    h = jnp.zeros((B, 2 * H), jnp.float32)    # [h_fwd | h_bwd]
    c = jnp.zeros((B, 2 * H), jnp.float32)    # [c_fwd | c_bwd]

    # T is small and static: fully unrolled recurrence, one MXU push per step.
    for t in range(T):
        xg_f = xproj[t * B:(t + 1) * B, 0:4 * H]             # from x[t]
        xg_b = xproj[(T - 1 - t) * B:(T - t) * B, 4 * H:]    # from x[T-1-t]
        g = jnp.concatenate([xg_f, xg_b], axis=-1)           # (B, 8H)
        if t > 0:   # at t == 0 the recurrent contribution is exactly zero
            g = g + jnp.dot(h, whh, preferred_element_type=jnp.float32)

        hf, cf = gates_to_hc(g[:, :4 * H], c[:, :H])
        hb, cb = gates_to_hc(g[:, 4 * H:], c[:, H:])
        h = jnp.concatenate([hf, hb], axis=-1)
        c = jnp.concatenate([cf, cb], axis=-1)

        # outputs[s] = [forward hidden at s | backward hidden at s]
        out_ref[t, :, 0:H] = hf.astype(out_ref.dtype)
        out_ref[T - 1 - t, :, H:2 * H] = hb.astype(out_ref.dtype)

    # ---- fused FC heads on the final (hidden, cell) states ----
    hid_ref[...] = (jnp.dot(h, fc1w_ref[...], preferred_element_type=jnp.float32)
                    + fc1b_ref[...]).astype(hid_ref.dtype)
    cell_ref[...] = (jnp.dot(c, fc2w_ref[...], preferred_element_type=jnp.float32)
                     + fc2b_ref[...]).astype(cell_ref.dtype)


# -------------------------------- wrappers -----------------------------------
def prepare_params(raw):
    """Build the fused weight layout the kernel consumes (done once, off the
    forward path): concatenated Wih, block-diagonal Whh, concatenated bias."""
    H = raw["whh_f"].shape[0]
    z = jnp.zeros((H, 4 * H), jnp.float32)
    return {
        "wih_cat": jnp.concatenate([raw["wih_f"], raw["wih_b"]], axis=1),     # (S, 8H)
        "whh_blk": jnp.concatenate(
            [jnp.concatenate([raw["whh_f"], z], axis=1),
             jnp.concatenate([z, raw["whh_b"]], axis=1)], axis=0),            # (2H, 8H)
        "b_cat": jnp.concatenate([raw["b_f"], raw["b_b"]], axis=1),           # (1, 8H)
        "fc1_w": raw["fc1_w"], "fc1_b": raw["fc1_b"],
        "fc2_w": raw["fc2_w"], "fc2_b": raw["fc2_b"],
    }


def encoder_forward(x, params):
    """x: (T, B, skeleton_dim) -> (outputs, (hidden, cell)) like the torch module."""
    T, B, S = x.shape
    H = params["whh_blk"].shape[0] // 2
    D = params["fc1_w"].shape[1]

    kernel = functools.partial(encoder_kernel, T=T, B=B, H=H)
    # No grid / no BlockSpecs: everything (~2 MB) is a single VMEM-resident block.
    outputs, hid, cell = pl.pallas_call(
        kernel,
        out_shape=(
            jax.ShapeDtypeStruct((T, B, 2 * H), jnp.float32),   # per-step hidden
            jax.ShapeDtypeStruct((B, D), jnp.float32),          # fc1(hidden)
            jax.ShapeDtypeStruct((B, D), jnp.float32),          # fc2(cell)
        ),
    )(x.reshape(T * B, S),
      params["wih_cat"], params["whh_blk"], params["b_cat"],
      params["fc1_w"], params["fc1_b"], params["fc2_w"], params["fc2_b"])

    return outputs, (hid[None], cell[None])    # (T,B,2H), ((1,B,D), (1,B,D))


# ---------------------------- pure-JAX reference ------------------------------
def _lstm_cell_ref(x, h, c, wih, whh, b, H):
    gates = x @ wih + h @ whh + b
    i = jax.nn.sigmoid(gates[:, 0 * H:1 * H])
    f = jax.nn.sigmoid(gates[:, 1 * H:2 * H])
    g = jnp.tanh(gates[:, 2 * H:3 * H])
    o = jax.nn.sigmoid(gates[:, 3 * H:4 * H])
    c_new = f * c + i * g
    h_new = o * jnp.tanh(c_new)
    return h_new, c_new


def encoder_reference(x, raw):
    H = raw["whh_f"].shape[0]

    def run_dir(xs, wih, whh, b):
        def step(carry, xt):
            h, c = carry
            h, c = _lstm_cell_ref(xt, h, c, wih, whh, b, H)
            return (h, c), h
        B = xs.shape[1]
        init = (jnp.zeros((B, H), jnp.float32), jnp.zeros((B, H), jnp.float32))
        (hT, cT), hs = lax.scan(step, init, xs)
        return hs, hT, cT

    hs_f, hf, cf = run_dir(x, raw["wih_f"], raw["whh_f"], raw["b_f"])
    hs_b, hb, cb = run_dir(x[::-1], raw["wih_b"], raw["whh_b"], raw["b_b"])
    outputs = jnp.concatenate([hs_f, hs_b[::-1]], axis=-1)
    hidden_flat = jnp.concatenate([hf, hb], axis=-1)
    cell_flat = jnp.concatenate([cf, cb], axis=-1)
    hidden = (hidden_flat @ raw["fc1_w"] + raw["fc1_b"])[None]
    cell = (cell_flat @ raw["fc2_w"] + raw["fc2_b"])[None]
    return outputs, (hidden, cell)


# ----------------------------------- main ------------------------------------
def init_params(key, S, H, D):
    ks = jax.random.split(key, 12)
    k_lstm = 1.0 / np.sqrt(H)
    k_fc = 1.0 / np.sqrt(2 * H)
    u = lambda k, shape, lim: jax.random.uniform(k, shape, jnp.float32, -lim, lim)
    # LSTM weights stored pre-transposed for x @ W; biases are b_ih + b_hh fused.
    return {
        "wih_f": u(ks[0], (S, 4 * H), k_lstm),
        "whh_f": u(ks[1], (H, 4 * H), k_lstm),
        "b_f":   u(ks[2], (1, 4 * H), k_lstm) + u(ks[3], (1, 4 * H), k_lstm),
        "wih_b": u(ks[4], (S, 4 * H), k_lstm),
        "whh_b": u(ks[5], (H, 4 * H), k_lstm),
        "b_b":   u(ks[6], (1, 4 * H), k_lstm) + u(ks[7], (1, 4 * H), k_lstm),
        "fc1_w": u(ks[8], (2 * H, D), k_fc),
        "fc1_b": u(ks[9], (1, D), k_fc),
        "fc2_w": u(ks[10], (2 * H, D), k_fc),
        "fc2_b": u(ks[11], (1, D), k_fc),
    }


if __name__ == "__main__":
    T, B = 8, 2
    S, H, D = SKELETON_DIM, E_DIM, D_DIM   # 134, 128, 256

    key = jax.random.PRNGKey(0)
    kx, kp = jax.random.split(key)
    x = jax.random.normal(kx, (T, B, S), jnp.float32)
    raw = init_params(kp, S, H, D)
    params = prepare_params(raw)            # fused layout, built once off-path

    outputs, (hidden, cell) = jax.jit(encoder_forward)(x, params)
    jax.block_until_ready((outputs, hidden, cell))

    # sanity-check against a pure-JAX reference (uses the raw per-direction weights)
    r_out, (r_hid, r_cell) = encoder_reference(x, raw)
    np.testing.assert_allclose(np.asarray(outputs), np.asarray(r_out), rtol=2e-4, atol=2e-4)
    np.testing.assert_allclose(np.asarray(hidden), np.asarray(r_hid), rtol=2e-4, atol=2e-4)
    np.testing.assert_allclose(np.asarray(cell), np.asarray(r_cell), rtol=2e-4, atol=2e-4)

    assert outputs.shape == (T, B, 2 * H)
    assert hidden.shape == (1, B, D) and cell.shape == (1, B, D)
    print("KERNEL_OK")
</pallas_src>

<mosaic_0001>
module attributes {stable_mosaic.version = 11 : i64} {
  func.func @encoder_kernel(%arg0: memref<16x134xf32, #tpu.memory_space<vmem>>, %arg1: memref<134x1024xf32, #tpu.memory_space<vmem>>, %arg2: memref<256x1024xf32, #tpu.memory_space<vmem>>, %arg3: memref<1x1024xf32, #tpu.memory_space<vmem>>, %arg4: memref<256x256xf32, #tpu.memory_space<vmem>>, %arg5: memref<1x256xf32, #tpu.memory_space<vmem>>, %arg6: memref<256x256xf32, #tpu.memory_space<vmem>>, %arg7: memref<1x256xf32, #tpu.memory_space<vmem>>, %arg8: memref<8x2x256xf32, #tpu.memory_space<vmem>>, %arg9: memref<2x256xf32, #tpu.memory_space<vmem>>, %arg10: memref<2x256xf32, #tpu.memory_space<vmem>>) attributes {dimension_semantics = [], scalar_prefetch = 0 : i64, scratch_operands = 0 : i64, tpu.core_type = #tpu.core_type<tc>} {
    %c0 = arith.constant 0 : index
    %c0_0 = arith.constant 0 : index
    %0 = vector.load %arg0[%c0, %c0_0] : memref<16x134xf32, #tpu.memory_space<vmem>>, vector<16x134xf32>
    %c0_1 = arith.constant 0 : index
    %c0_2 = arith.constant 0 : index
    %1 = vector.load %arg1[%c0_1, %c0_2] : memref<134x1024xf32, #tpu.memory_space<vmem>>, vector<134x1024xf32>
    %cst = arith.constant dense<0.000000e+00> : vector<16x1024xf32>
    %2 = tpu.matmul %0, %1, %cst {dimension_numbers = #tpu.dot_dimension_numbers<[1], [0], [0], [1], [0, 0, 1, 1], [], []>} : vector<16x134xf32>, vector<134x1024xf32>, vector<16x1024xf32> -> vector<16x1024xf32>
    %c0_3 = arith.constant 0 : index
    %c0_4 = arith.constant 0 : index
    %3 = vector.load %arg3[%c0_3, %c0_4] : memref<1x1024xf32, #tpu.memory_space<vmem>>, vector<1x1024xf32>
    %4 = vector.broadcast %3 : vector<1x1024xf32> to vector<16x1024xf32>
    %5 = arith.addf %2, %4 : vector<16x1024xf32>
    %c0_5 = arith.constant 0 : index
    %c0_6 = arith.constant 0 : index
    %6 = vector.load %arg2[%c0_5, %c0_6] : memref<256x1024xf32, #tpu.memory_space<vmem>>, vector<256x1024xf32>
    %cst_7 = arith.constant 0.000000e+00 : f32
    %7 = vector.broadcast %cst_7 : f32 to vector<2x256xf32>
    %8 = vector.extract_strided_slice %5 {offsets = [0, 0], sizes = [2, 512], strides = [1, 1]} : vector<16x1024xf32> to vector<2x512xf32>
    %9 = vector.extract_strided_slice %5 {offsets = [14, 512], sizes = [2, 512], strides = [1, 1]} : vector<16x1024xf32> to vector<2x512xf32>
    %10 = tpu.concatenate %8, %9 in 1 : vector<2x512xf32>, vector<2x512xf32> -> vector<2x1024xf32>
    %11 = vector.extract_strided_slice %10 {offsets = [0, 0], sizes = [2, 512], strides = [1, 1]} : vector<2x1024xf32> to vector<2x512xf32>
    %12 = vector.extract_strided_slice %7 {offsets = [0, 0], sizes = [2, 128], strides = [1, 1]} : vector<2x256xf32> to vector<2x128xf32>
    %13 = vector.extract_strided_slice %11 {offsets = [0, 0], sizes = [2, 128], strides = [1, 1]} : vector<2x512xf32> to vector<2x128xf32>
    %14 = arith.negf %13 : vector<2x128xf32>
    %15 = math.exp %14 : vector<2x128xf32>
    %cst_8 = arith.constant 1.000000e+00 : f32
    %16 = vector.broadcast %cst_8 : f32 to vector<2x128xf32>
    %17 = arith.addf %16, %15 : vector<2x128xf32>
    %18 = arith.divf %16, %17 : vector<2x128xf32>
    %19 = vector.extract_strided_slice %11 {offsets = [0, 128], sizes = [2, 128], strides = [1, 1]} : vector<2x512xf32> to vector<2x128xf32>
    %20 = arith.negf %19 : vector<2x128xf32>
    %21 = math.exp %20 : vector<2x128xf32>
    %cst_9 = arith.constant 1.000000e+00 : f32
    %22 = vector.broadcast %cst_9 : f32 to vector<2x128xf32>
    %23 = arith.addf %22, %21 : vector<2x128xf32>
    %24 = arith.divf %22, %23 : vector<2x128xf32>
    %25 = vector.extract_strided_slice %11 {offsets = [0, 256], sizes = [2, 128], strides = [1, 1]} : vector<2x512xf32> to vector<2x128xf32>
    %26 = math.tanh %25 : vector<2x128xf32>
    %27 = vector.extract_strided_slice %11 {offsets = [0, 384], sizes = [2, 128], strides = [1, 1]} : vector<2x512xf32> to vector<2x128xf32>
    %28 = arith.negf %27 : vector<2x128xf32>
    %29 = math.exp %28 : vector<2x128xf32>
    %cst_10 = arith.constant 1.000000e+00 : f32
    %30 = vector.broadcast %cst_10 : f32 to vector<2x128xf32>
    %31 = arith.addf %30, %29 : vector<2x128xf32>
    %32 = arith.divf %30, %31 : vector<2x128xf32>
    %33 = arith.mulf %24, %12 : vector<2x128xf32>
    %34 = arith.mulf %18, %26 : vector<2x128xf32>
    %35 = arith.addf %33, %34 : vector<2x128xf32>
    %36 = math.tanh %35 : vector<2x128xf32>
    %37 = arith.mulf %32, %36 : vector<2x128xf32>
    %38 = vector.extract_strided_slice %10 {offsets = [0, 512], sizes = [2, 512], strides = [1, 1]} : vector<2x1024xf32> to vector<2x512xf32>
    %39 = vector.extract_strided_slice %7 {offsets = [0, 128], sizes = [2, 128], strides = [1, 1]} : vector<2x256xf32> to vector<2x128xf32>
    %40 = vector.extract_strided_slice %38 {offsets = [0, 0], sizes = [2, 128], strides = [1, 1]} : vector<2x512xf32> to vector<2x128xf32>
    %41 = arith.negf %40 : vector<2x128xf32>
    %42 = math.exp %41 : vector<2x128xf32>
    %cst_11 = arith.constant 1.000000e+00 : f32
    %43 = vector.broadcast %cst_11 : f32 to vector<2x128xf32>
    %44 = arith.addf %43, %42 : vector<2x128xf32>
    %45 = arith.divf %43, %44 : vector<2x128xf32>
    %46 = vector.extract_strided_slice %38 {offsets = [0, 128], sizes = [2, 128], strides = [1, 1]} : vector<2x512xf32> to vector<2x128xf32>
    %47 = arith.negf %46 : vector<2x128xf32>
    %48 = math.exp %47 : vector<2x128xf32>
    %cst_12 = arith.constant 1.000000e+00 : f32
    %49 = vector.broadcast %cst_12 : f32 to vector<2x128xf32>
    %50 = arith.addf %49, %48 : vector<2x128xf32>
    %51 = arith.divf %49, %50 : vector<2x128xf32>
    %52 = vector.extract_strided_slice %38 {offsets = [0, 256], sizes = [2, 128], strides = [1, 1]} : vector<2x512xf32> to vector<2x128xf32>
    %53 = math.tanh %52 : vector<2x128xf32>
    %54 = vector.extract_strided_slice %38 {offsets = [0, 384], sizes = [2, 128], strides = [1, 1]} : vector<2x512xf32> to vector<2x128xf32>
    %55 = arith.negf %54 : vector<2x128xf32>
    %56 = math.exp %55 : vector<2x128xf32>
    %cst_13 = arith.constant 1.000000e+00 : f32
    %57 = vector.broadcast %cst_13 : f32 to vector<2x128xf32>
    %58 = arith.addf %57, %56 : vector<2x128xf32>
    %59 = arith.divf %57, %58 : vector<2x128xf32>
    %60 = arith.mulf %51, %39 : vector<2x128xf32>
    %61 = arith.mulf %45, %53 : vector<2x128xf32>
    %62 = arith.addf %60, %61 : vector<2x128xf32>
    %63 = math.tanh %62 : vector<2x128xf32>
    %64 = arith.mulf %59, %63 : vector<2x128xf32>
    %65 = tpu.concatenate %37, %64 in 1 : vector<2x128xf32>, vector<2x128xf32> -> vector<2x256xf32>
    %66 = tpu.concatenate %35, %62 in 1 : vector<2x128xf32>, vector<2x128xf32> -> vector<2x256xf32>
    %c0_14 = arith.constant 0 : index
    %c0_15 = arith.constant 0 : index
    %c0_16 = arith.constant 0 : index
    %67 = vector.load %arg8[%c0_14, %c0_15, %c0_16] : memref<8x2x256xf32, #tpu.memory_space<vmem>>, vector<1x2x128xf32>
    %68 = vector.shape_cast %67 : vector<1x2x128xf32> to vector<2x128xf32>
    %69 = vector.shape_cast %37 : vector<2x128xf32> to vector<1x2x128xf32>
    tpu.vector_store %arg8[%c0_14, %c0_15, %c0_16], %69 {strides = array<i32>} : memref<8x2x256xf32, #tpu.memory_space<vmem>>, vector<1x2x128xf32>,
    %c7 = arith.constant 7 : index
    %c0_17 = arith.constant 0 : index
    %c128 = arith.constant 128 : index
    %70 = vector.load %arg8[%c7, %c0_17, %c128] : memref<8x2x256xf32, #tpu.memory_space<vmem>>, vector<1x2x128xf32>
    %71 = vector.shape_cast %70 : vector<1x2x128xf32> to vector<2x128xf32>
    %72 = vector.shape_cast %64 : vector<2x128xf32> to vector<1x2x128xf32>
    tpu.vector_store %arg8[%c7, %c0_17, %c128], %72 {strides = array<i32>} : memref<8x2x256xf32, #tpu.memory_space<vmem>>, vector<1x2x128xf32>,
    %73 = vector.extract_strided_slice %5 {offsets = [2, 0], sizes = [2, 512], strides = [1, 1]} : vector<16x1024xf32> to vector<2x512xf32>
    %74 = vector.extract_strided_slice %5 {offsets = [12, 512], sizes = [2, 512], strides = [1, 1]} : vector<16x1024xf32> to vector<2x512xf32>
    %75 = tpu.concatenate %73, %74 in 1 : vector<2x512xf32>, vector<2x512xf32> -> vector<2x1024xf32>
    %cst_18 = arith.constant dense<0.000000e+00> : vector<2x1024xf32>
    %76 = tpu.matmul %65, %6, %cst_18 {dimension_numbers = #tpu.dot_dimension_numbers<[1], [0], [0], [1], [0, 0, 1, 1], [], []>} : vector<2x256xf32>, vector<256x1024xf32>, vector<2x1024xf32> -> vector<2x1024xf32>
    %77 = arith.addf %75, %76 : vector<2x1024xf32>
    %78 = vector.extract_strided_slice %77 {offsets = [0, 0], sizes = [2, 512], strides = [1, 1]} : vector<2x1024xf32> to vector<2x512xf32>
    %79 = vector.extract_strided_slice %66 {offsets = [0, 0], sizes = [2, 128], strides = [1, 1]} : vector<2x256xf32> to vector<2x128xf32>
    %80 = vector.extract_strided_slice %78 {offsets = [0, 0], sizes = [2, 128], strides = [1, 1]} : vector<2x512xf32> to vector<2x128xf32>
    %81 = arith.negf %80 : vector<2x128xf32>
    %82 = math.exp %81 : vector<2x128xf32>
    %cst_19 = arith.constant 1.000000e+00 : f32
    %83 = vector.broadcast %cst_19 : f32 to vector<2x128xf32>
    %84 = arith.addf %83, %82 : vector<2x128xf32>
    %85 = arith.divf %83, %84 : vector<2x128xf32>
    %86 = vector.extract_strided_slice %78 {offsets = [0, 128], sizes = [2, 128], strides = [1, 1]} : vector<2x512xf32> to vector<2x128xf32>
    %87 = arith.negf %86 : vector<2x128xf32>
    %88 = math.exp %87 : vector<2x128xf32>
    %cst_20 = arith.constant 1.000000e+00 : f32
    %89 = vector.broadcast %cst_20 : f32 to vector<2x128xf32>
    %90 = arith.addf %89, %88 : vector<2x128xf32>
    %91 = arith.divf %89, %90 : vector<2x128xf32>
    %92 = vector.extract_strided_slice %78 {offsets = [0, 256], sizes = [2, 128], strides = [1, 1]} : vector<2x512xf32> to vector<2x128xf32>
    %93 = math.tanh %92 : vector<2x128xf32>
    %94 = vector.extract_strided_slice %78 {offsets = [0, 384], sizes = [2, 128], strides = [1, 1]} : vector<2x512xf32> to vector<2x128xf32>
    %95 = arith.negf %94 : vector<2x128xf32>
    %96 = math.exp %95 : vector<2x128xf32>
    %cst_21 = arith.constant 1.000000e+00 : f32
    %97 = vector.broadcast %cst_21 : f32 to vector<2x128xf32>
    %98 = arith.addf %97, %96 : vector<2x128xf32>
    %99 = arith.divf %97, %98 : vector<2x128xf32>
    %100 = arith.mulf %91, %79 : vector<2x128xf32>
    %101 = arith.mulf %85, %93 : vector<2x128xf32>
    %102 = arith.addf %100, %101 : vector<2x128xf32>
    %103 = math.tanh %102 : vector<2x128xf32>
    %104 = arith.mulf %99, %103 : vector<2x128xf32>
    %105 = vector.extract_strided_slice %77 {offsets = [0, 512], sizes = [2, 512], strides = [1, 1]} : vector<2x1024xf32> to vector<2x512xf32>
    %106 = vector.extract_strided_slice %66 {offsets = [0, 128], sizes = [2, 128], strides = [1, 1]} : vector<2x256xf32> to vector<2x128xf32>
    %107 = vector.extract_strided_slice %105 {offsets = [0, 0], sizes = [2, 128], strides = [1, 1]} : vector<2x512xf32> to vector<2x128xf32>
    %108 = arith.negf %107 : vector<2x128xf32>
    %109 = math.exp %108 : vector<2x128xf32>
    %cst_22 = arith.constant 1.000000e+00 : f32
    %110 = vector.broadcast %cst_22 : f32 to vector<2x128xf32>
    %111 = arith.addf %110, %109 : vector<2x128xf32>
    %112 = arith.divf %110, %111 : vector<2x128xf32>
    %113 = vector.extract_strided_slice %105 {offsets = [0, 128], sizes = [2, 128], strides = [1, 1]} : vector<2x512xf32> to vector<2x128xf32>
    %114 = arith.negf %113 : vector<2x128xf32>
    %115 = math.exp %114 : vector<2x128xf32>
    %cst_23 = arith.constant 1.000000e+00 : f32
    %116 = vector.broadcast %cst_23 : f32 to vector<2x128xf32>
    %117 = arith.addf %116, %115 : vector<2x128xf32>
    %118 = arith.divf %116, %117 : vector<2x128xf32>
    %119 = vector.extract_strided_slice %105 {offsets = [0, 256], sizes = [2, 128], strides = [1, 1]} : vector<2x512xf32> to vector<2x128xf32>
    %120 = math.tanh %119 : vector<2x128xf32>
    %121 = vector.extract_strided_slice %105 {offsets = [0, 384], sizes = [2, 128], strides = [1, 1]} : vector<2x512xf32> to vector<2x128xf32>
    %122 = arith.negf %121 : vector<2x128xf32>
    %123 = math.exp %122 : vector<2x128xf32>
    %cst_24 = arith.constant 1.000000e+00 : f32
    %124 = vector.broadcast %cst_24 : f32 to vector<2x128xf32>
    %125 = arith.addf %124, %123 : vector<2x128xf32>
    %126 = arith.divf %124, %125 : vector<2x128xf32>
    %127 = arith.mulf %118, %106 : vector<2x128xf32>
    %128 = arith.mulf %112, %120 : vector<2x128xf32>
    %129 = arith.addf %127, %128 : vector<2x128xf32>
    %130 = math.tanh %129 : vector<2x128xf32>
    %131 = arith.mulf %126, %130 : vector<2x128xf32>
    %132 = tpu.concatenate %104, %131 in 1 : vector<2x128xf32>, vector<2x128xf32> -> vector<2x256xf32>
    %133 = tpu.concatenate %102, %129 in 1 : vector<2x128xf32>, vector<2x128xf32> -> vector<2x256xf32>
    %c1 = arith.constant 1 : index
    %c0_25 = arith.constant 0 : index
    %c0_26 = arith.constant 0 : index
    %134 = vector.load %arg8[%c1, %c0_25, %c0_26] : memref<8x2x256xf32, #tpu.memory_space<vmem>>, vector<1x2x128xf32>
    %135 = vector.shape_cast %134 : vector<1x2x128xf32> to vector<2x128xf32>
    %136 = vector.shape_cast %104 : vector<2x128xf32> to vector<1x2x128xf32>
    tpu.vector_store %arg8[%c1, %c0_25, %c0_26], %136 {strides = array<i32>} : memref<8x2x256xf32, #tpu.memory_space<vmem>>, vector<1x2x128xf32>,
    %c6 = arith.constant 6 : index
    %c0_27 = arith.constant 0 : index
    %c128_28 = arith.constant 128 : index
    %137 = vector.load %arg8[%c6, %c0_27, %c128_28] : memref<8x2x256xf32, #tpu.memory_space<vmem>>, vector<1x2x128xf32>
    %138 = vector.shape_cast %137 : vector<1x2x128xf32> to vector<2x128xf32>
    %139 = vector.shape_cast %131 : vector<2x128xf32> to vector<1x2x128xf32>
    tpu.vector_store %arg8[%c6, %c0_27, %c128_28], %139 {strides = array<i32>} : memref<8x2x256xf32, #tpu.memory_space<vmem>>, vector<1x2x128xf32>,
    %140 = vector.extract_strided_slice %5 {offsets = [4, 0], sizes = [2, 512], strides = [1, 1]} : vector<16x1024xf32> to vector<2x512xf32>
    %141 = vector.extract_strided_slice %5 {offsets = [10, 512], sizes = [2, 512], strides = [1, 1]} : vector<16x1024xf32> to vector<2x512xf32>
    %142 = tpu.concatenate %140, %141 in 1 : vector<2x512xf32>, vector<2x512xf32> -> vector<2x1024xf32>
    %cst_29 = arith.constant dense<0.000000e+00> : vector<2x1024xf32>
    %143 = tpu.matmul %132, %6, %cst_29 {dimension_numbers = #tpu.dot_dimension_numbers<[1], [0], [0], [1], [0, 0, 1, 1], [], []>} : vector<2x256xf32>, vector<256x1024xf32>, vector<2x1024xf32> -> vector<2x1024xf32>
    %144 = arith.addf %142, %143 : vector<2x1024xf32>
    %145 = vector.extract_strided_slice %144 {offsets = [0, 0], sizes = [2, 512], strides = [1, 1]} : vector<2x1024xf32> to vector<2x512xf32>
    %146 = vector.extract_strided_slice %133 {offsets = [0, 0], sizes = [2, 128], strides = [1, 1]} : vector<2x256xf32> to vector<2x128xf32>
    %147 = vector.extract_strided_slice %145 {offsets = [0, 0], sizes = [2, 128], strides = [1, 1]} : vector<2x512xf32> to vector<2x128xf32>
    %148 = arith.negf %147 : vector<2x128xf32>
    %149 = math.exp %148 : vector<2x128xf32>
    %cst_30 = arith.constant 1.000000e+00 : f32
    %150 = vector.broadcast %cst_30 : f32 to vector<2x128xf32>
    %151 = arith.addf %150, %149 : vector<2x128xf32>
    %152 = arith.divf %150, %151 : vector<2x128xf32>
    %153 = vector.extract_strided_slice %145 {offsets = [0, 128], sizes = [2, 128], strides = [1, 1]} : vector<2x512xf32> to vector<2x128xf32>
    %154 = arith.negf %153 : vector<2x128xf32>
    %155 = math.exp %154 : vector<2x128xf32>
    %cst_31 = arith.constant 1.000000e+00 : f32
    %156 = vector.broadcast %cst_31 : f32 to vector<2x128xf32>
    %157 = arith.addf %156, %155 : vector<2x128xf32>
    %158 = arith.divf %156, %157 : vector<2x128xf32>
    %159 = vector.extract_strided_slice %145 {offsets = [0, 256], sizes = [2, 128], strides = [1, 1]} : vector<2x512xf32> to vector<2x128xf32>
    %160 = math.tanh %159 : vector<2x128xf32>
    %161 = vector.extract_strided_slice %145 {offsets = [0, 384], sizes = [2, 128], strides = [1, 1]} : vector<2x512xf32> to vector<2x128xf32>
    %162 = arith.negf %161 : vector<2x128xf32>
    %163 = math.exp %162 : vector<2x128xf32>
    %cst_32 = arith.constant 1.000000e+00 : f32
    %164 = vector.broadcast %cst_32 : f32 to vector<2x128xf32>
    %165 = arith.addf %164, %163 : vector<2x128xf32>
    %166 = arith.divf %164, %165 : vector<2x128xf32>
    %167 = arith.mulf %158, %146 : vector<2x128xf32>
    %168 = arith.mulf %152, %160 : vector<2x128xf32>
    %169 = arith.addf %167, %168 : vector<2x128xf32>
    %170 = math.tanh %169 : vector<2x128xf32>
    %171 = arith.mulf %166, %170 : vector<2x128xf32>
    %172 = vector.extract_strided_slice %144 {offsets = [0, 512], sizes = [2, 512], strides = [1, 1]} : vector<2x1024xf32> to vector<2x512xf32>
    %173 = vector.extract_strided_slice %133 {offsets = [0, 128], sizes = [2, 128], strides = [1, 1]} : vector<2x256xf32> to vector<2x128xf32>
    %174 = vector.extract_strided_slice %172 {offsets = [0, 0], sizes = [2, 128], strides = [1, 1]} : vector<2x512xf32> to vector<2x128xf32>
    %175 = arith.negf %174 : vector<2x128xf32>
    %176 = math.exp %175 : vector<2x128xf32>
    %cst_33 = arith.constant 1.000000e+00 : f32
    %177 = vector.broadcast %cst_33 : f32 to vector<2x128xf32>
    %178 = arith.addf %177, %176 : vector<2x128xf32>
    %179 = arith.divf %177, %178 : vector<2x128xf32>
    %180 = vector.extract_strided_slice %172 {offsets = [0, 128], sizes = [2, 128], strides = [1, 1]} : vector<2x512xf32> to vector<2x128xf32>
    %181 = arith.negf %180 : vector<2x128xf32>
    %182 = math.exp %181 : vector<2x128xf32>
    %cst_34 = arith.constant 1.000000e+00 : f32
    %183 = vector.broadcast %cst_34 : f32 to vector<2x128xf32>
    %184 = arith.addf %183, %182 : vector<2x128xf32>
    %185 = arith.divf %183, %184 : vector<2x128xf32>
    %186 = vector.extract_strided_slice %172 {offsets = [0, 256], sizes = [2, 128], strides = [1, 1]} : vector<2x512xf32> to vector<2x128xf32>
    %187 = math.tanh %186 : vector<2x128xf32>
    %188 = vector.extract_strided_slice %172 {offsets = [0, 384], sizes = [2, 128], strides = [1, 1]} : vector<2x512xf32> to vector<2x128xf32>
    %189 = arith.negf %188 : vector<2x128xf32>
    %190 = math.exp %189 : vector<2x128xf32>
    %cst_35 = arith.constant 1.000000e+00 : f32
    %191 = vector.broadcast %cst_35 : f32 to vector<2x128xf32>
    %192 = arith.addf %191, %190 : vector<2x128xf32>
    %193 = arith.divf %191, %192 : vector<2x128xf32>
    %194 = arith.mulf %185, %173 : vector<2x128xf32>
    %195 = arith.mulf %179, %187 : vector<2x128xf32>
    %196 = arith.addf %194, %195 : vector<2x128xf32>
    %197 = math.tanh %196 : vector<2x128xf32>
    %198 = arith.mulf %193, %197 : vector<2x128xf32>
    %199 = tpu.concatenate %171, %198 in 1 : vector<2x128xf32>, vector<2x128xf32> -> vector<2x256xf32>
    %200 = tpu.concatenate %169, %196 in 1 : vector<2x128xf32>, vector<2x128xf32> -> vector<2x256xf32>
    %c2 = arith.constant 2 : index
    %c0_36 = arith.constant 0 : index
    %c0_37 = arith.constant 0 : index
    %201 = vector.load %arg8[%c2, %c0_36, %c0_37] : memref<8x2x256xf32, #tpu.memory_space<vmem>>, vector<1x2x128xf32>
    %202 = vector.shape_cast %201 : vector<1x2x128xf32> to vector<2x128xf32>
    %203 = vector.shape_cast %171 : vector<2x128xf32> to vector<1x2x128xf32>
    tpu.vector_store %arg8[%c2, %c0_36, %c0_37], %203 {strides = array<i32>} : memref<8x2x256xf32, #tpu.memory_space<vmem>>, vector<1x2x128xf32>,
    %c5 = arith.constant 5 : index
    %c0_38 = arith.constant 0 : index
    %c128_39 = arith.constant 128 : index
    %204 = vector.load %arg8[%c5, %c0_38, %c128_39] : memref<8x2x256xf32, #tpu.memory_space<vmem>>, vector<1x2x128xf32>
    %205 = vector.shape_cast %204 : vector<1x2x128xf32> to vector<2x128xf32>
    %206 = vector.shape_cast %198 : vector<2x128xf32> to vector<1x2x128xf32>
    tpu.vector_store %arg8[%c5, %c0_38, %c128_39], %206 {strides = array<i32>} : memref<8x2x256xf32, #tpu.memory_space<vmem>>, vector<1x2x128xf32>,
    %207 = vector.extract_strided_slice %5 {offsets = [6, 0], sizes = [2, 512], strides = [1, 1]} : vector<16x1024xf32> to vector<2x512xf32>
    %208 = vector.extract_strided_slice %5 {offsets = [8, 512], sizes = [2, 512], strides = [1, 1]} : vector<16x1024xf32> to vector<2x512xf32>
    %209 = tpu.concatenate %207, %208 in 1 : vector<2x512xf32>, vector<2x512xf32> -> vector<2x1024xf32>
    %cst_40 = arith.constant dense<0.000000e+00> : vector<2x1024xf32>
    %210 = tpu.matmul %199, %6, %cst_40 {dimension_numbers = #tpu.dot_dimension_numbers<[1], [0], [0], [1], [0, 0, 1, 1], [], []>} : vector<2x256xf32>, vector<256x1024xf32>, vector<2x1024xf32> -> vector<2x1024xf32>
    %211 = arith.addf %209, %210 : vector<2x1024xf32>
    %212 = vector.extract_strided_slice %211 {offsets = [0, 0], sizes = [2, 512], strides = [1, 1]} : vector<2x1024xf32> to vector<2x512xf32>
    %213 = vector.extract_strided_slice %200 {offsets = [0, 0], sizes = [2, 128], strides = [1, 1]} : vector<2x256xf32> to vector<2x128xf32>
    %214 = vector.extract_strided_slice %212 {offsets = [0, 0], sizes = [2, 128], strides = [1, 1]} : vector<2x512xf32> to vector<2x128xf32>
    %215 = arith.negf %214 : vector<2x128xf32>
    %216 = math.exp %215 : vector<2x128xf32>
    %cst_41 = arith.constant 1.000000e+00 : f32
    %217 = vector.broadcast %cst_41 : f32 to vector<2x128xf32>
    %218 = arith.addf %217, %216 : vector<2x128xf32>
    %219 = arith.divf %217, %218 : vector<2x128xf32>
    %220 = vector.extract_strided_slice %212 {offsets = [0, 128], sizes = [2, 128], strides = [1, 1]} : vector<2x512xf32> to vector<2x128xf32>
    %221 = arith.negf %220 : vector<2x128xf32>
    %222 = math.exp %221 : vector<2x128xf32>
    %cst_42 = arith.constant 1.000000e+00 : f32
    %223 = vector.broadcast %cst_42 : f32 to vector<2x128xf32>
    %224 = arith.addf %223, %222 : vector<2x128xf32>
    %225 = arith.divf %223, %224 : vector<2x128xf32>
    %226 = vector.extract_strided_slice %212 {offsets = [0, 256], sizes = [2, 128], strides = [1, 1]} : vector<2x512xf32> to vector<2x128xf32>
    %227 = math.tanh %226 : vector<2x128xf32>
    %228 = vector.extract_strided_slice %212 {offsets = [0, 384], sizes = [2, 128], strides = [1, 1]} : vector<2x512xf32> to vector<2x128xf32>
    %229 = arith.negf %228 : vector<2x128xf32>
    %230 = math.exp %229 : vector<2x128xf32>
    %cst_43 = arith.constant 1.000000e+00 : f32
    %231 = vector.broadcast %cst_43 : f32 to vector<2x128xf32>
    %232 = arith.addf %231, %230 : vector<2x128xf32>
    %233 = arith.divf %231, %232 : vector<2x128xf32>
    %234 = arith.mulf %225, %213 : vector<2x128xf32>
    %235 = arith.mulf %219, %227 : vector<2x128xf32>
    %236 = arith.addf %234, %235 : vector<2x128xf32>
    %237 = math.tanh %236 : vector<2x128xf32>
    %238 = arith.mulf %233, %237 : vector<2x128xf32>
    %239 = vector.extract_strided_slice %211 {offsets = [0, 512], sizes = [2, 512], strides = [1, 1]} : vector<2x1024xf32> to vector<2x512xf32>
    %240 = vector.extract_strided_slice %200 {offsets = [0, 128], sizes = [2, 128], strides = [1, 1]} : vector<2x256xf32> to vector<2x128xf32>
    %241 = vector.extract_strided_slice %239 {offsets = [0, 0], sizes = [2, 128], strides = [1, 1]} : vector<2x512xf32> to vector<2x128xf32>
    %242 = arith.negf %241 : vector<2x128xf32>
    %243 = math.exp %242 : vector<2x128xf32>
    %cst_44 = arith.constant 1.000000e+00 : f32
    %244 = vector.broadcast %cst_44 : f32 to vector<2x128xf32>
    %245 = arith.addf %244, %243 : vector<2x128xf32>
    %246 = arith.divf %244, %245 : vector<2x128xf32>
    %247 = vector.extract_strided_slice %239 {offsets = [0, 128], sizes = [2, 128], strides = [1, 1]} : vector<2x512xf32> to vector<2x128xf32>
    %248 = arith.negf %247 : vector<2x128xf32>
    %249 = math.exp %248 : vector<2x128xf32>
    %cst_45 = arith.constant 1.000000e+00 : f32
    %250 = vector.broadcast %cst_45 : f32 to vector<2x128xf32>
    %251 = arith.addf %250, %249 : vector<2x128xf32>
    %252 = arith.divf %250, %251 : vector<2x128xf32>
    %253 = vector.extract_strided_slice %239 {offsets = [0, 256], sizes = [2, 128], strides = [1, 1]} : vector<2x512xf32> to vector<2x128xf32>
    %254 = math.tanh %253 : vector<2x128xf32>
    %255 = vector.extract_strided_slice %239 {offsets = [0, 384], sizes = [2, 128], strides = [1, 1]} : vector<2x512xf32> to vector<2x128xf32>
    %256 = arith.negf %255 : vector<2x128xf32>
    %257 = math.exp %256 : vector<2x128xf32>
    %cst_46 = arith.constant 1.000000e+00 : f32
    %258 = vector.broadcast %cst_46 : f32 to vector<2x128xf32>
    %259 = arith.addf %258, %257 : vector<2x128xf32>
    %260 = arith.divf %258, %259 : vector<2x128xf32>
    %261 = arith.mulf %252, %240 : vector<2x128xf32>
    %262 = arith.mulf %246, %254 : vector<2x128xf32>
    %263 = arith.addf %261, %262 : vector<2x128xf32>
    %264 = math.tanh %263 : vector<2x128xf32>
    %265 = arith.mulf %260, %264 : vector<2x128xf32>
    %266 = tpu.concatenate %238, %265 in 1 : vector<2x128xf32>, vector<2x128xf32> -> vector<2x256xf32>
    %267 = tpu.concatenate %236, %263 in 1 : vector<2x128xf32>, vector<2x128xf32> -> vector<2x256xf32>
    %c3 = arith.constant 3 : index
    %c0_47 = arith.constant 0 : index
    %c0_48 = arith.constant 0 : index
    %268 = vector.load %arg8[%c3, %c0_47, %c0_48] : memref<8x2x256xf32, #tpu.memory_space<vmem>>, vector<1x2x128xf32>
    %269 = vector.shape_cast %268 : vector<1x2x128xf32> to vector<2x128xf32>
    %270 = vector.shape_cast %238 : vector<2x128xf32> to vector<1x2x128xf32>
    tpu.vector_store %arg8[%c3, %c0_47, %c0_48], %270 {strides = array<i32>} : memref<8x2x256xf32, #tpu.memory_space<vmem>>, vector<1x2x128xf32>,
    %c4 = arith.constant 4 : index
    %c0_49 = arith.constant 0 : index
    %c128_50 = arith.constant 128 : index
    %271 = vector.load %arg8[%c4, %c0_49, %c128_50] : memref<8x2x256xf32, #tpu.memory_space<vmem>>, vector<1x2x128xf32>
    %272 = vector.shape_cast %271 : vector<1x2x128xf32> to vector<2x128xf32>
    %273 = vector.shape_cast %265 : vector<2x128xf32> to vector<1x2x128xf32>
    tpu.vector_store %arg8[%c4, %c0_49, %c128_50], %273 {strides = array<i32>} : memref<8x2x256xf32, #tpu.memory_space<vmem>>, vector<1x2x128xf32>,
    %274 = vector.extract_strided_slice %5 {offsets = [8, 0], sizes = [2, 512], strides = [1, 1]} : vector<16x1024xf32> to vector<2x512xf32>
    %275 = vector.extract_strided_slice %5 {offsets = [6, 512], sizes = [2, 512], strides = [1, 1]} : vector<16x1024xf32> to vector<2x512xf32>
    %276 = tpu.concatenate %274, %275 in 1 : vector<2x512xf32>, vector<2x512xf32> -> vector<2x1024xf32>
    %cst_51 = arith.constant dense<0.000000e+00> : vector<2x1024xf32>
    %277 = tpu.matmul %266, %6, %cst_51 {dimension_numbers = #tpu.dot_dimension_numbers<[1], [0], [0], [1], [0, 0, 1, 1], [], []>} : vector<2x256xf32>, vector<256x1024xf32>, vector<2x1024xf32> -> vector<2x1024xf32>
    %278 = arith.addf %276, %277 : vector<2x1024xf32>
    %279 = vector.extract_strided_slice %278 {offsets = [0, 0], sizes = [2, 512], strides = [1, 1]} : vector<2x1024xf32> to vector<2x512xf32>
    %280 = vector.extract_strided_slice %267 {offsets = [0, 0], sizes = [2, 128], strides = [1, 1]} : vector<2x256xf32> to vector<2x128xf32>
    %281 = vector.extract_strided_slice %279 {offsets = [0, 0], sizes = [2, 128], strides = [1, 1]} : vector<2x512xf32> to vector<2x128xf32>
    %282 = arith.negf %281 : vector<2x128xf32>
    %283 = math.exp %282 : vector<2x128xf32>
    %cst_52 = arith.constant 1.000000e+00 : f32
    %284 = vector.broadcast %cst_52 : f32 to vector<2x128xf32>
    %285 = arith.addf %284, %283 : vector<2x128xf32>
    %286 = arith.divf %284, %285 : vector<2x128xf32>
    %287 = vector.extract_strided_slice %279 {offsets = [0, 128], sizes = [2, 128], strides = [1, 1]} : vector<2x512xf32> to vector<2x128xf32>
    %288 = arith.negf %287 : vector<2x128xf32>
    %289 = math.exp %288 : vector<2x128xf32>
    %cst_53 = arith.constant 1.000000e+00 : f32
    %290 = vector.broadcast %cst_53 : f32 to vector<2x128xf32>
    %291 = arith.addf %290, %289 : vector<2x128xf32>
    %292 = arith.divf %290, %291 : vector<2x128xf32>
    %293 = vector.extract_strided_slice %279 {offsets = [0, 256], sizes = [2, 128], strides = [1, 1]} : vector<2x512xf32> to vector<2x128xf32>
    %294 = math.tanh %293 : vector<2x128xf32>
    %295 = vector.extract_strided_slice %279 {offsets = [0, 384], sizes = [2, 128], strides = [1, 1]} : vector<2x512xf32> to vector<2x128xf32>
    %296 = arith.negf %295 : vector<2x128xf32>
    %297 = math.exp %296 : vector<2x128xf32>
    %cst_54 = arith.constant 1.000000e+00 : f32
    %298 = vector.broadcast %cst_54 : f32 to vector<2x128xf32>
    %299 = arith.addf %298, %297 : vector<2x128xf32>
    %300 = arith.divf %298, %299 : vector<2x128xf32>
    %301 = arith.mulf %292, %280 : vector<2x128xf32>
    %302 = arith.mulf %286, %294 : vector<2x128xf32>
    %303 = arith.addf %301, %302 : vector<2x128xf32>
    %304 = math.tanh %303 : vector<2x128xf32>
    %305 = arith.mulf %300, %304 : vector<2x128xf32>
    %306 = vector.extract_strided_slice %278 {offsets = [0, 512], sizes = [2, 512], strides = [1, 1]} : vector<2x1024xf32> to vector<2x512xf32>
    %307 = vector.extract_strided_slice %267 {offsets = [0, 128], sizes = [2, 128], strides = [1, 1]} : vector<2x256xf32> to vector<2x128xf32>
    %308 = vector.extract_strided_slice %306 {offsets = [0, 0], sizes = [2, 128], strides = [1, 1]} : vector<2x512xf32> to vector<2x128xf32>
    %309 = arith.negf %308 : vector<2x128xf32>
    %310 = math.exp %309 : vector<2x128xf32>
    %cst_55 = arith.constant 1.000000e+00 : f32
    %311 = vector.broadcast %cst_55 : f32 to vector<2x128xf32>
    %312 = arith.addf %311, %310 : vector<2x128xf32>
    %313 = arith.divf %311, %312 : vector<2x128xf32>
    %314 = vector.extract_strided_slice %306 {offsets = [0, 128], sizes = [2, 128], strides = [1, 1]} : vector<2x512xf32> to vector<2x128xf32>
    %315 = arith.negf %314 : vector<2x128xf32>
    %316 = math.exp %315 : vector<2x128xf32>
    %cst_56 = arith.constant 1.000000e+00 : f32
    %317 = vector.broadcast %cst_56 : f32 to vector<2x128xf32>
    %318 = arith.addf %317, %316 : vector<2x128xf32>
    %319 = arith.divf %317, %318 : vector<2x128xf32>
    %320 = vector.extract_strided_slice %306 {offsets = [0, 256], sizes = [2, 128], strides = [1, 1]} : vector<2x512xf32> to vector<2x128xf32>
    %321 = math.tanh %320 : vector<2x128xf32>
    %322 = vector.extract_strided_slice %306 {offsets = [0, 384], sizes = [2, 128], strides = [1, 1]} : vector<2x512xf32> to vector<2x128xf32>
    %323 = arith.negf %322 : vector<2x128xf32>
    %324 = math.exp %323 : vector<2x128xf32>
    %cst_57 = arith.constant 1.000000e+00 : f32
    %325 = vector.broadcast %cst_57 : f32 to vector<2x128xf32>
    %326 = arith.addf %325, %324 : vector<2x128xf32>
    %327 = arith.divf %325, %326 : vector<2x128xf32>
    %328 = arith.mulf %319, %307 : vector<2x128xf32>
    %329 = arith.mulf %313, %321 : vector<2x128xf32>
    %330 = arith.addf %328, %329 : vector<2x128xf32>
    %331 = math.tanh %330 : vector<2x128xf32>
    %332 = arith.mulf %327, %331 : vector<2x128xf32>
    %333 = tpu.concatenate %305, %332 in 1 : vector<2x128xf32>, vector<2x128xf32> -> vector<2x256xf32>
    %334 = tpu.concatenate %303, %330 in 1 : vector<2x128xf32>, vector<2x128xf32> -> vector<2x256xf32>
    %c4_58 = arith.constant 4 : index
    %c0_59 = arith.constant 0 : index
    %c0_60 = arith.constant 0 : index
    %335 = vector.load %arg8[%c4_58, %c0_59, %c0_60] : memref<8x2x256xf32, #tpu.memory_space<vmem>>, vector<1x2x128xf32>
    %336 = vector.shape_cast %335 : vector<1x2x128xf32> to vector<2x128xf32>
    %337 = vector.shape_cast %305 : vector<2x128xf32> to vector<1x2x128xf32>
    tpu.vector_store %arg8[%c4_58, %c0_59, %c0_60], %337 {strides = array<i32>} : memref<8x2x256xf32, #tpu.memory_space<vmem>>, vector<1x2x128xf32>,
    %c3_61 = arith.constant 3 : index
    %c0_62 = arith.constant 0 : index
    %c128_63 = arith.constant 128 : index
    %338 = vector.load %arg8[%c3_61, %c0_62, %c128_63] : memref<8x2x256xf32, #tpu.memory_space<vmem>>, vector<1x2x128xf32>
    %339 = vector.shape_cast %338 : vector<1x2x128xf32> to vector<2x128xf32>
    %340 = vector.shape_cast %332 : vector<2x128xf32> to vector<1x2x128xf32>
    tpu.vector_store %arg8[%c3_61, %c0_62, %c128_63], %340 {strides = array<i32>} : memref<8x2x256xf32, #tpu.memory_space<vmem>>, vector<1x2x128xf32>,
    %341 = vector.extract_strided_slice %5 {offsets = [10, 0], sizes = [2, 512], strides = [1, 1]} : vector<16x1024xf32> to vector<2x512xf32>
    %342 = vector.extract_strided_slice %5 {offsets = [4, 512], sizes = [2, 512], strides = [1, 1]} : vector<16x1024xf32> to vector<2x512xf32>
    %343 = tpu.concatenate %341, %342 in 1 : vector<2x512xf32>, vector<2x512xf32> -> vector<2x1024xf32>
    %cst_64 = arith.constant dense<0.000000e+00> : vector<2x1024xf32>
    %344 = tpu.matmul %333, %6, %cst_64 {dimension_numbers = #tpu.dot_dimension_numbers<[1], [0], [0], [1], [0, 0, 1, 1], [], []>} : vector<2x256xf32>, vector<256x1024xf32>, vector<2x1024xf32> -> vector<2x1024xf32>
    %345 = arith.addf %343, %344 : vector<2x1024xf32>
    %346 = vector.extract_strided_slice %345 {offsets = [0, 0], sizes = [2, 512], strides = [1, 1]} : vector<2x1024xf32> to vector<2x512xf32>
    %347 = vector.extract_strided_slice %334 {offsets = [0, 0], sizes = [2, 128], strides = [1, 1]} : vector<2x256xf32> to vector<2x128xf32>
    %348 = vector.extract_strided_slice %346 {offsets = [0, 0], sizes = [2, 128], strides = [1, 1]} : vector<2x512xf32> to vector<2x128xf32>
    %349 = arith.negf %348 : vector<2x128xf32>
    %350 = math.exp %349 : vector<2x128xf32>
    %cst_65 = arith.constant 1.000000e+00 : f32
    %351 = vector.broadcast %cst_65 : f32 to vector<2x128xf32>
    %352 = arith.addf %351, %350 : vector<2x128xf32>
    %353 = arith.divf %351, %352 : vector<2x128xf32>
    %354 = vector.extract_strided_slice %346 {offsets = [0, 128], sizes = [2, 128], strides = [1, 1]} : vector<2x512xf32> to vector<2x128xf32>
    %355 = arith.negf %354 : vector<2x128xf32>
    %356 = math.exp %355 : vector<2x128xf32>
    %cst_66 = arith.constant 1.000000e+00 : f32
    %357 = vector.broadcast %cst_66 : f32 to vector<2x128xf32>
    %358 = arith.addf %357, %356 : vector<2x128xf32>
    %359 = arith.divf %357, %358 : vector<2x128xf32>
    %360 = vector.extract_strided_slice %346 {offsets = [0, 256], sizes = [2, 128], strides = [1, 1]} : vector<2x512xf32> to vector<2x128xf32>
    %361 = math.tanh %360 : vector<2x128xf32>
    %362 = vector.extract_strided_slice %346 {offsets = [0, 384], sizes = [2, 128], strides = [1, 1]} : vector<2x512xf32> to vector<2x128xf32>
    %363 = arith.negf %362 : vector<2x128xf32>
    %364 = math.exp %363 : vector<2x128xf32>
    %cst_67 = arith.constant 1.000000e+00 : f32
    %365 = vector.broadcast %cst_67 : f32 to vector<2x128xf32>
    %366 = arith.addf %365, %364 : vector<2x128xf32>
    %367 = arith.divf %365, %366 : vector<2x128xf32>
    %368 = arith.mulf %359, %347 : vector<2x128xf32>
    %369 = arith.mulf %353, %361 : vector<2x128xf32>
    %370 = arith.addf %368, %369 : vector<2x128xf32>
    %371 = math.tanh %370 : vector<2x128xf32>
    %372 = arith.mulf %367, %371 : vector<2x128xf32>
    %373 = vector.extract_strided_slice %345 {offsets = [0, 512], sizes = [2, 512], strides = [1, 1]} : vector<2x1024xf32> to vector<2x512xf32>
    %374 = vector.extract_strided_slice %334 {offsets = [0, 128], sizes = [2, 128], strides = [1, 1]} : vector<2x256xf32> to vector<2x128xf32>
    %375 = vector.extract_strided_slice %373 {offsets = [0, 0], sizes = [2, 128], strides = [1, 1]} : vector<2x512xf32> to vector<2x128xf32>
    %376 = arith.negf %375 : vector<2x128xf32>
    %377 = math.exp %376 : vector<2x128xf32>
    %cst_68 = arith.constant 1.000000e+00 : f32
    %378 = vector.broadcast %cst_68 : f32 to vector<2x128xf32>
    %379 = arith.addf %378, %377 : vector<2x128xf32>
    %380 = arith.divf %378, %379 : vector<2x128xf32>
    %381 = vector.extract_strided_slice %373 {offsets = [0, 128], sizes = [2, 128], strides = [1, 1]} : vector<2x512xf32> to vector<2x128xf32>
    %382 = arith.negf %381 : vector<2x128xf32>
    %383 = math.exp %382 : vector<2x128xf32>
    %cst_69 = arith.constant 1.000000e+00 : f32
    %384 = vector.broadcast %cst_69 : f32 to vector<2x128xf32>
    %385 = arith.addf %384, %383 : vector<2x128xf32>
    %386 = arith.divf %384, %385 : vector<2x128xf32>
    %387 = vector.extract_strided_slice %373 {offsets = [0, 256], sizes = [2, 128], strides = [1, 1]} : vector<2x512xf32> to vector<2x128xf32>
    %388 = math.tanh %387 : vector<2x128xf32>
    %389 = vector.extract_strided_slice %373 {offsets = [0, 384], sizes = [2, 128], strides = [1, 1]} : vector<2x512xf32> to vector<2x128xf32>
    %390 = arith.negf %389 : vector<2x128xf32>
    %391 = math.exp %390 : vector<2x128xf32>
    %cst_70 = arith.constant 1.000000e+00 : f32
    %392 = vector.broadcast %cst_70 : f32 to vector<2x128xf32>
    %393 = arith.addf %392, %391 : vector<2x128xf32>
    %394 = arith.divf %392, %393 : vector<2x128xf32>
    %395 = arith.mulf %386, %374 : vector<2x128xf32>
    %396 = arith.mulf %380, %388 : vector<2x128xf32>
    %397 = arith.addf %395, %396 : vector<2x128xf32>
    %398 = math.tanh %397 : vector<2x128xf32>
    %399 = arith.mulf %394, %398 : vector<2x128xf32>
    %400 = tpu.concatenate %372, %399 in 1 : vector<2x128xf32>, vector<2x128xf32> -> vector<2x256xf32>
    %401 = tpu.concatenate %370, %397 in 1 : vector<2x128xf32>, vector<2x128xf32> -> vector<2x256xf32>
    %c5_71 = arith.constant 5 : index
    %c0_72 = arith.constant 0 : index
    %c0_73 = arith.constant 0 : index
    %402 = vector.load %arg8[%c5_71, %c0_72, %c0_73] : memref<8x2x256xf32, #tpu.memory_space<vmem>>, vector<1x2x128xf32>
    %403 = vector.shape_cast %402 : vector<1x2x128xf32> to vector<2x128xf32>
    %404 = vector.shape_cast %372 : vector<2x128xf32> to vector<1x2x128xf32>
    tpu.vector_store %arg8[%c5_71, %c0_72, %c0_73], %404 {strides = array<i32>} : memref<8x2x256xf32, #tpu.memory_space<vmem>>, vector<1x2x128xf32>,
    %c2_74 = arith.constant 2 : index
    %c0_75 = arith.constant 0 : index
    %c128_76 = arith.constant 128 : index
    %405 = vector.load %arg8[%c2_74, %c0_75, %c128_76] : memref<8x2x256xf32, #tpu.memory_space<vmem>>, vector<1x2x128xf32>
    %406 = vector.shape_cast %405 : vector<1x2x128xf32> to vector<2x128xf32>
    %407 = vector.shape_cast %399 : vector<2x128xf32> to vector<1x2x128xf32>
    tpu.vector_store %arg8[%c2_74, %c0_75, %c128_76], %407 {strides = array<i32>} : memref<8x2x256xf32, #tpu.memory_space<vmem>>, vector<1x2x128xf32>,
    %408 = vector.extract_strided_slice %5 {offsets = [12, 0], sizes = [2, 512], strides = [1, 1]} : vector<16x1024xf32> to vector<2x512xf32>
    %409 = vector.extract_strided_slice %5 {offsets = [2, 512], sizes = [2, 512], strides = [1, 1]} : vector<16x1024xf32> to vector<2x512xf32>
    %410 = tpu.concatenate %408, %409 in 1 : vector<2x512xf32>, vector<2x512xf32> -> vector<2x1024xf32>
    %cst_77 = arith.constant dense<0.000000e+00> : vector<2x1024xf32>
    %411 = tpu.matmul %400, %6, %cst_77 {dimension_numbers = #tpu.dot_dimension_numbers<[1], [0], [0], [1], [0, 0, 1, 1], [], []>} : vector<2x256xf32>, vector<256x1024xf32>, vector<2x1024xf32> -> vector<2x1024xf32>
    %412 = arith.addf %410, %411 : vector<2x1024xf32>
    %413 = vector.extract_strided_slice %412 {offsets = [0, 0], sizes = [2, 512], strides = [1, 1]} : vector<2x1024xf32> to vector<2x512xf32>
    %414 = vector.extract_strided_slice %401 {offsets = [0, 0], sizes = [2, 128], strides = [1, 1]} : vector<2x256xf32> to vector<2x128xf32>
    %415 = vector.extract_strided_slice %413 {offsets = [0, 0], sizes = [2, 128], strides = [1, 1]} : vector<2x512xf32> to vector<2x128xf32>
    %416 = arith.negf %415 : vector<2x128xf32>
    %417 = math.exp %416 : vector<2x128xf32>
    %cst_78 = arith.constant 1.000000e+00 : f32
    %418 = vector.broadcast %cst_78 : f32 to vector<2x128xf32>
    %419 = arith.addf %418, %417 : vector<2x128xf32>
    %420 = arith.divf %418, %419 : vector<2x128xf32>
    %421 = vector.extract_strided_slice %413 {offsets = [0, 128], sizes = [2, 128], strides = [1, 1]} : vector<2x512xf32> to vector<2x128xf32>
    %422 = arith.negf %421 : vector<2x128xf32>
    %423 = math.exp %422 : vector<2x128xf32>
    %cst_79 = arith.constant 1.000000e+00 : f32
    %424 = vector.broadcast %cst_79 : f32 to vector<2x128xf32>
    %425 = arith.addf %424, %423 : vector<2x128xf32>
    %426 = arith.divf %424, %425 : vector<2x128xf32>
    %427 = vector.extract_strided_slice %413 {offsets = [0, 256], sizes = [2, 128], strides = [1, 1]} : vector<2x512xf32> to vector<2x128xf32>
    %428 = math.tanh %427 : vector<2x128xf32>
    %429 = vector.extract_strided_slice %413 {offsets = [0, 384], sizes = [2, 128], strides = [1, 1]} : vector<2x512xf32> to vector<2x128xf32>
    %430 = arith.negf %429 : vector<2x128xf32>
    %431 = math.exp %430 : vector<2x128xf32>
    %cst_80 = arith.constant 1.000000e+00 : f32
    %432 = vector.broadcast %cst_80 : f32 to vector<2x128xf32>
    %433 = arith.addf %432, %431 : vector<2x128xf32>
    %434 = arith.divf %432, %433 : vector<2x128xf32>
    %435 = arith.mulf %426, %414 : vector<2x128xf32>
    %436 = arith.mulf %420, %428 : vector<2x128xf32>
    %437 = arith.addf %435, %436 : vector<2x128xf32>
    %438 = math.tanh %437 : vector<2x128xf32>
    %439 = arith.mulf %434, %438 : vector<2x128xf32>
    %440 = vector.extract_strided_slice %412 {offsets = [0, 512], sizes = [2, 512], strides = [1, 1]} : vector<2x1024xf32> to vector<2x512xf32>
    %441 = vector.extract_strided_slice %401 {offsets = [0, 128], sizes = [2, 128], strides = [1, 1]} : vector<2x256xf32> to vector<2x128xf32>
    %442 = vector.extract_strided_slice %440 {offsets = [0, 0], sizes = [2, 128], strides = [1, 1]} : vector<2x512xf32> to vector<2x128xf32>
    %443 = arith.negf %442 : vector<2x128xf32>
    %444 = math.exp %443 : vector<2x128xf32>
    %cst_81 = arith.constant 1.000000e+00 : f32
    %445 = vector.broadcast %cst_81 : f32 to vector<2x128xf32>
    %446 = arith.addf %445, %444 : vector<2x128xf32>
    %447 = arith.divf %445, %446 : vector<2x128xf32>
    %448 = vector.extract_strided_slice %440 {offsets = [0, 128], sizes = [2, 128], strides = [1, 1]} : vector<2x512xf32> to vector<2x128xf32>
    %449 = arith.negf %448 : vector<2x128xf32>
    %450 = math.exp %449 : vector<2x128xf32>
    %cst_82 = arith.constant 1.000000e+00 : f32
    %451 = vector.broadcast %cst_82 : f32 to vector<2x128xf32>
    %452 = arith.addf %451, %450 : vector<2x128xf32>
    %453 = arith.divf %451, %452 : vector<2x128xf32>
    %454 = vector.extract_strided_slice %440 {offsets = [0, 256], sizes = [2, 128], strides = [1, 1]} : vector<2x512xf32> to vector<2x128xf32>
    %455 = math.tanh %454 : vector<2x128xf32>
    %456 = vector.extract_strided_slice %440 {offsets = [0, 384], sizes = [2, 128], strides = [1, 1]} : vector<2x512xf32> to vector<2x128xf32>
    %457 = arith.negf %456 : vector<2x128xf32>
    %458 = math.exp %457 : vector<2x128xf32>
    %cst_83 = arith.constant 1.000000e+00 : f32
    %459 = vector.broadcast %cst_83 : f32 to vector<2x128xf32>
    %460 = arith.addf %459, %458 : vector<2x128xf32>
    %461 = arith.divf %459, %460 : vector<2x128xf32>
    %462 = arith.mulf %453, %441 : vector<2x128xf32>
    %463 = arith.mulf %447, %455 : vector<2x128xf32>
    %464 = arith.addf %462, %463 : vector<2x128xf32>
    %465 = math.tanh %464 : vector<2x128xf32>
    %466 = arith.mulf %461, %465 : vector<2x128xf32>
    %467 = tpu.concatenate %439, %466 in 1 : vector<2x128xf32>, vector<2x128xf32> -> vector<2x256xf32>
    %468 = tpu.concatenate %437, %464 in 1 : vector<2x128xf32>, vector<2x128xf32> -> vector<2x256xf32>
    %c6_84 = arith.constant 6 : index
    %c0_85 = arith.constant 0 : index
    %c0_86 = arith.constant 0 : index
    %469 = vector.load %arg8[%c6_84, %c0_85, %c0_86] : memref<8x2x256xf32, #tpu.memory_space<vmem>>, vector<1x2x128xf32>
    %470 = vector.shape_cast %469 : vector<1x2x128xf32> to vector<2x128xf32>
    %471 = vector.shape_cast %439 : vector<2x128xf32> to vector<1x2x128xf32>
    tpu.vector_store %arg8[%c6_84, %c0_85, %c0_86], %471 {strides = array<i32>} : memref<8x2x256xf32, #tpu.memory_space<vmem>>, vector<1x2x128xf32>,
    %c1_87 = arith.constant 1 : index
    %c0_88 = arith.constant 0 : index
    %c128_89 = arith.constant 128 : index
    %472 = vector.load %arg8[%c1_87, %c0_88, %c128_89] : memref<8x2x256xf32, #tpu.memory_space<vmem>>, vector<1x2x128xf32>
    %473 = vector.shape_cast %472 : vector<1x2x128xf32> to vector<2x128xf32>
    %474 = vector.shape_cast %466 : vector<2x128xf32> to vector<1x2x128xf32>
    tpu.vector_store %arg8[%c1_87, %c0_88, %c128_89], %474 {strides = array<i32>} : memref<8x2x256xf32, #tpu.memory_space<vmem>>, vector<1x2x128xf32>,
    %475 = vector.extract_strided_slice %5 {offsets = [14, 0], sizes = [2, 512], strides = [1, 1]} : vector<16x1024xf32> to vector<2x512xf32>
    %476 = vector.extract_strided_slice %5 {offsets = [0, 512], sizes = [2, 512], strides = [1, 1]} : vector<16x1024xf32> to vector<2x512xf32>
    %477 = tpu.concatenate %475, %476 in 1 : vector<2x512xf32>, vector<2x512xf32> -> vector<2x1024xf32>
    %cst_90 = arith.constant dense<0.000000e+00> : vector<2x1024xf32>
    %478 = tpu.matmul %467, %6, %cst_90 {dimension_numbers = #tpu.dot_dimension_numbers<[1], [0], [0], [1], [0, 0, 1, 1], [], []>} : vector<2x256xf32>, vector<256x1024xf32>, vector<2x1024xf32> -> vector<2x1024xf32>
    %479 = arith.addf %477, %478 : vector<2x1024xf32>
    %480 = vector.extract_strided_slice %479 {offsets = [0, 0], sizes = [2, 512], strides = [1, 1]} : vector<2x1024xf32> to vector<2x512xf32>
    %481 = vector.extract_strided_slice %468 {offsets = [0, 0], sizes = [2, 128], strides = [1, 1]} : vector<2x256xf32> to vector<2x128xf32>
    %482 = vector.extract_strided_slice %480 {offsets = [0, 0], sizes = [2, 128], strides = [1, 1]} : vector<2x512xf32> to vector<2x128xf32>
    %483 = arith.negf %482 : vector<2x128xf32>
    %484 = math.exp %483 : vector<2x128xf32>
    %cst_91 = arith.constant 1.000000e+00 : f32
    %485 = vector.broadcast %cst_91 : f32 to vector<2x128xf32>
    %486 = arith.addf %485, %484 : vector<2x128xf32>
    %487 = arith.divf %485, %486 : vector<2x128xf32>
    %488 = vector.extract_strided_slice %480 {offsets = [0, 128], sizes = [2, 128], strides = [1, 1]} : vector<2x512xf32> to vector<2x128xf32>
    %489 = arith.negf %488 : vector<2x128xf32>
    %490 = math.exp %489 : vector<2x128xf32>
    %cst_92 = arith.constant 1.000000e+00 : f32
    %491 = vector.broadcast %cst_92 : f32 to vector<2x128xf32>
    %492 = arith.addf %491, %490 : vector<2x128xf32>
    %493 = arith.divf %491, %492 : vector<2x128xf32>
    %494 = vector.extract_strided_slice %480 {offsets = [0, 256], sizes = [2, 128], strides = [1, 1]} : vector<2x512xf32> to vector<2x128xf32>
    %495 = math.tanh %494 : vector<2x128xf32>
    %496 = vector.extract_strided_slice %480 {offsets = [0, 384], sizes = [2, 128], strides = [1, 1]} : vector<2x512xf32> to vector<2x128xf32>
    %497 = arith.negf %496 : vector<2x128xf32>
    %498 = math.exp %497 : vector<2x128xf32>
    %cst_93 = arith.constant 1.000000e+00 : f32
    %499 = vector.broadcast %cst_93 : f32 to vector<2x128xf32>
    %500 = arith.addf %499, %498 : vector<2x128xf32>
    %501 = arith.divf %499, %500 : vector<2x128xf32>
    %502 = arith.mulf %493, %481 : vector<2x128xf32>
    %503 = arith.mulf %487, %495 : vector<2x128xf32>
    %504 = arith.addf %502, %503 : vector<2x128xf32>
    %505 = math.tanh %504 : vector<2x128xf32>
    %506 = arith.mulf %501, %505 : vector<2x128xf32>
    %507 = vector.extract_strided_slice %479 {offsets = [0, 512], sizes = [2, 512], strides = [1, 1]} : vector<2x1024xf32> to vector<2x512xf32>
    %508 = vector.extract_strided_slice %468 {offsets = [0, 128], sizes = [2, 128], strides = [1, 1]} : vector<2x256xf32> to vector<2x128xf32>
    %509 = vector.extract_strided_slice %507 {offsets = [0, 0], sizes = [2, 128], strides = [1, 1]} : vector<2x512xf32> to vector<2x128xf32>
    %510 = arith.negf %509 : vector<2x128xf32>
    %511 = math.exp %510 : vector<2x128xf32>
    %cst_94 = arith.constant 1.000000e+00 : f32
    %512 = vector.broadcast %cst_94 : f32 to vector<2x128xf32>
    %513 = arith.addf %512, %511 : vector<2x128xf32>
    %514 = arith.divf %512, %513 : vector<2x128xf32>
    %515 = vector.extract_strided_slice %507 {offsets = [0, 128], sizes = [2, 128], strides = [1, 1]} : vector<2x512xf32> to vector<2x128xf32>
    %516 = arith.negf %515 : vector<2x128xf32>
    %517 = math.exp %516 : vector<2x128xf32>
    %cst_95 = arith.constant 1.000000e+00 : f32
    %518 = vector.broadcast %cst_95 : f32 to vector<2x128xf32>
    %519 = arith.addf %518, %517 : vector<2x128xf32>
    %520 = arith.divf %518, %519 : vector<2x128xf32>
    %521 = vector.extract_strided_slice %507 {offsets = [0, 256], sizes = [2, 128], strides = [1, 1]} : vector<2x512xf32> to vector<2x128xf32>
    %522 = math.tanh %521 : vector<2x128xf32>
    %523 = vector.extract_strided_slice %507 {offsets = [0, 384], sizes = [2, 128], strides = [1, 1]} : vector<2x512xf32> to vector<2x128xf32>
    %524 = arith.negf %523 : vector<2x128xf32>
    %525 = math.exp %524 : vector<2x128xf32>
    %cst_96 = arith.constant 1.000000e+00 : f32
    %526 = vector.broadcast %cst_96 : f32 to vector<2x128xf32>
    %527 = arith.addf %526, %525 : vector<2x128xf32>
    %528 = arith.divf %526, %527 : vector<2x128xf32>
    %529 = arith.mulf %520, %508 : vector<2x128xf32>
    %530 = arith.mulf %514, %522 : vector<2x128xf32>
    %531 = arith.addf %529, %530 : vector<2x128xf32>
    %532 = math.tanh %531 : vector<2x128xf32>
    %533 = arith.mulf %528, %532 : vector<2x128xf32>
    %534 = tpu.concatenate %506, %533 in 1 : vector<2x128xf32>, vector<2x128xf32> -> vector<2x256xf32>
    %535 = tpu.concatenate %504, %531 in 1 : vector<2x128xf32>, vector<2x128xf32> -> vector<2x256xf32>
    %c7_97 = arith.constant 7 : index
    %c0_98 = arith.constant 0 : index
    %c0_99 = arith.constant 0 : index
    %536 = vector.load %arg8[%c7_97, %c0_98, %c0_99] : memref<8x2x256xf32, #tpu.memory_space<vmem>>, vector<1x2x128xf32>
    %537 = vector.shape_cast %536 : vector<1x2x128xf32> to vector<2x128xf32>
    %538 = vector.shape_cast %506 : vector<2x128xf32> to vector<1x2x128xf32>
    tpu.vector_store %arg8[%c7_97, %c0_98, %c0_99], %538 {strides = array<i32>} : memref<8x2x256xf32, #tpu.memory_space<vmem>>, vector<1x2x128xf32>,
    %c0_100 = arith.constant 0 : index
    %c0_101 = arith.constant 0 : index
    %c128_102 = arith.constant 128 : index
    %539 = vector.load %arg8[%c0_100, %c0_101, %c128_102] : memref<8x2x256xf32, #tpu.memory_space<vmem>>, vector<1x2x128xf32>
    %540 = vector.shape_cast %539 : vector<1x2x128xf32> to vector<2x128xf32>
    %541 = vector.shape_cast %533 : vector<2x128xf32> to vector<1x2x128xf32>
    tpu.vector_store %arg8[%c0_100, %c0_101, %c128_102], %541 {strides = array<i32>} : memref<8x2x256xf32, #tpu.memory_space<vmem>>, vector<1x2x128xf32>,
    %c0_103 = arith.constant 0 : index
    %c0_104 = arith.constant 0 : index
    %542 = vector.load %arg4[%c0_103, %c0_104] : memref<256x256xf32, #tpu.memory_space<vmem>>, vector<256x256xf32>
    %cst_105 = arith.constant dense<0.000000e+00> : vector<2x256xf32>
    %543 = tpu.matmul %534, %542, %cst_105 {dimension_numbers = #tpu.dot_dimension_numbers<[1], [0], [0], [1], [0, 0, 1, 1], [], []>} : vector<2x256xf32>, vector<256x256xf32>, vector<2x256xf32> -> vector<2x256xf32>
    %c0_106 = arith.constant 0 : index
    %c0_107 = arith.constant 0 : index
    %544 = vector.load %arg5[%c0_106, %c0_107] : memref<1x256xf32, #tpu.memory_space<vmem>>, vector<1x256xf32>
    %545 = vector.broadcast %544 : vector<1x256xf32> to vector<2x256xf32>
    %546 = arith.addf %543, %545 : vector<2x256xf32>
    %c0_108 = arith.constant 0 : index
    %c0_109 = arith.constant 0 : index
    %547 = vector.load %arg9[%c0_108, %c0_109] : memref<2x256xf32, #tpu.memory_space<vmem>>, vector<2x256xf32>
    tpu.vector_store %arg9[%c0_108, %c0_109], %546 {strides = array<i32>} : memref<2x256xf32, #tpu.memory_space<vmem>>, vector<2x256xf32>,
    %c0_110 = arith.constant 0 : index
    %c0_111 = arith.constant 0 : index
    %548 = vector.load %arg6[%c0_110, %c0_111] : memref<256x256xf32, #tpu.memory_space<vmem>>, vector<256x256xf32>
    %cst_112 = arith.constant dense<0.000000e+00> : vector<2x256xf32>
    %549 = tpu.matmul %535, %548, %cst_112 {dimension_numbers = #tpu.dot_dimension_numbers<[1], [0], [0], [1], [0, 0, 1, 1], [], []>} : vector<2x256xf32>, vector<256x256xf32>, vector<2x256xf32> -> vector<2x256xf32>
    %c0_113 = arith.constant 0 : index
    %c0_114 = arith.constant 0 : index
    %550 = vector.load %arg7[%c0_113, %c0_114] : memref<1x256xf32, #tpu.memory_space<vmem>>, vector<1x256xf32>
    %551 = vector.broadcast %550 : vector<1x256xf32> to vector<2x256xf32>
    %552 = arith.addf %549, %551 : vector<2x256xf32>
    %c0_115 = arith.constant 0 : index
    %c0_116 = arith.constant 0 : index
    %553 = vector.load %arg10[%c0_115, %c0_116] : memref<2x256xf32, #tpu.memory_space<vmem>>, vector<2x256xf32>
    tpu.vector_store %arg10[%c0_115, %c0_116], %552 {strides = array<i32>} : memref<2x256xf32, #tpu.memory_space<vmem>>, vector<2x256xf32>,
    return
  }
}

</mosaic_0001>

<bundles_post_ra>
// kernel: encoder_forward.1
= control target key start
LH: loop header
LB: loop body
LE: loop exit
PB: predicated region body
PF: predicated region fallthrough
CT: control target
= control target key end

     0   :  { %16 = vsyncpa [#allocation3], 0  ;;  %s8264_s0 = inlined_call_operand.vmem [shape: f32[16,134], index: 0, kind: input, shape index: {}]   ;;  %s8265_s1 = inlined_call_operand.hbm [shape: f32[134,1024], index: 1, kind: input, shape index: {}]   ;;  %s8266_s2 = inlined_call_operand.hbm [shape: f32[256,1024], index: 2, kind: input, shape index: {}]   ;;  %s8267_s3 = inlined_call_operand.vmem [shape: f32[1,1024], index: 3, kind: input, shape index: {}]   ;;  %s8268_s4 = inlined_call_operand.hbm [shape: f32[256,256], index: 4, kind: input, shape index: {}]   ;;  %s8269_s5 = inlined_call_operand.vmem [shape: f32[1,256], index: 5, kind: input, shape index: {}]   ;;  %s8270_s6 = inlined_call_operand.hbm [shape: f32[256,256], index: 6, kind: input, shape index: {}]   ;;  %s8271_s7 = inlined_call_operand.vmem [shape: f32[1,256], index: 7, kind: input, shape index: {}]   ;;  %s8272_s8 = inlined_call_operand.hbm [shape: f32[8,2,256], index: 8, kind: output, shape index: {0}]   ;;  %s8273_s9 = inlined_call_operand.hbm [shape: f32[2,256], index: 9, kind: output, shape index: {1}]   ;;  %s8274_s10 = inlined_call_operand.hbm [shape: f32[2,256], index: 10, kind: output, shape index: {2}]  }
   0x1   :  { %17 = vsyncpa [#allocation6], 0 }
   0x2   :  { %18 = vsyncpa [#allocation9], 0 }
   0x3   :  { %19 = vsyncpa [#allocation4], 0 }
   0x4   :  { %20 = vsyncpa [#allocation12], 0  ;;  %s6613_s13 = smov [#allocation5]   ;;  %s6614_s15 = smov [#allocation2]  }
   0x5   :  { %s40_s14 = sshll.u32 %s6613_s13, 4  ;;  %s28_s16 = sshll.u32 %s6614_s15, 4  ;;  %s41_s14 = int_to_ptr.vmem [resolvable:$true] %s40_s14  ;;  %s6681_s16 = int_to_ptr.vmem [resolvable:$true] %s28_s16 }
   0x6   :  { %s6449_s19 = scalar_lea.hbm %s8266_s2, 32768 }
   0x7   :  { %p6450_p0 = scmp.ne.s32.totalorder %s8266_s2, %s6449_s19  ;;  %p6453_p1 = scmp.lt.u32.totalorder %s6449_s19, %s8266_s2 }
   0x9   :  { %p6455_p2 = pnand %p6453_p1, %p6450_p0 }
   0xb   :  { %6458 = shalt.err (!%p6455_p2)
}
   0xc   :  { %s6459_s24 = scalar_lea.vmem %s41_s14, 32768  ;;  %p6464_p4 = scmp.lt.s32.totalorder %s41_s14, %s41_s14 }
   0xd   :  { %p6460_p3 = scmp.ne.s32.totalorder %s41_s14, %s6459_s24  ;;  %p6465_p5 = scmp.lt.s32.totalorder %s6459_s24, %s6459_s24 }
   0xf   :  { %p6466_p6 = por %p6465_p5, %p6464_p4 }
  0x11   :  { %p6467_p7 = pnand %p6466_p6, %p6460_p3 }
  0x13   :  { %6470 = shalt.err (!%p6467_p7)
}
  0x14   :  { %s6615_s25 = smov 1024   ;;  %s6616_s26 = smov 64  }
  0x15   :  { %46 = dma.hbm_to_vmem [thread:$0]  %s8266_s2, 32768, %s41_s14, [#allocation6], %s6615_s25, %s6615_s25, %s6616_s26  }
  0x16   :  { %s6471_s11 = scalar_lea.hbm %s8265_s1, 17408 }
  0x17   :  { %p6472_p8 = scmp.ne.s32.totalorder %s8265_s1, %s6471_s11  ;;  %p6475_p9 = scmp.lt.u32.totalorder %s6471_s11, %s8265_s1 }
  0x19   :  { %p6477_p10 = pnand %p6475_p9, %p6472_p8 }
  0x1b   :  { %6480 = shalt.err (!%p6477_p10)
}
  0x1c   :  { %s6481_s18 = scalar_lea.vmem %s6681_s16, 17408  ;;  %p6486_p12 = scmp.lt.s32.totalorder %s6681_s16, %s6681_s16 }
  0x1d   :  { %p6482_p11 = scmp.ne.s32.totalorder %s6681_s16, %s6481_s18  ;;  %p6487_p13 = scmp.lt.s32.totalorder %s6481_s18, %s6481_s18 }
  0x1f   :  { %p6488_p0 = por %p6487_p13, %p6486_p12 }
  0x21   :  { %p6489_p1 = pnand %p6488_p0, %p6482_p11 }
  0x23   :  { %6492 = shalt.err (!%p6489_p1)
}
  0x24   :  { %34 = dma.hbm_to_vmem [thread:$0]  %s8265_s1, 17408, %s6681_s16, [#allocation3], %s6615_s25, %s6615_s25, %s6616_s26  }
  0x25   :  { %s6617_s19 = smov [#allocation7]   ;;  %s6493_s23 = scalar_lea.hbm %s8268_s4, 8192 }
  0x26   :  { %s54_s20 = sshll.u32 %s6617_s19, 4  ;;  %p6494_p2 = scmp.ne.s32.totalorder %s8268_s4, %s6493_s23  ;;  %s55_s20 = int_to_ptr.vmem [resolvable:$true] %s54_s20 }
  0x27   :  { %p6497_p3 = scmp.lt.u32.totalorder %s6493_s23, %s8268_s4 }
  0x29   :  { %p6499_p4 = pnand %p6497_p3, %p6494_p2 }
  0x2b   :  { %6502 = shalt.err (!%p6499_p4)
}
  0x2c   :  { %s6503_s30 = scalar_lea.vmem %s55_s20, 8192  ;;  %p6508_p6 = scmp.lt.s32.totalorder %s55_s20, %s55_s20 }
  0x2d   :  { %p6504_p5 = scmp.ne.s32.totalorder %s55_s20, %s6503_s30  ;;  %p6509_p7 = scmp.lt.s32.totalorder %s6503_s30, %s6503_s30 }
  0x2f   :  { %p6510_p8 = por %p6509_p7, %p6508_p6 }
  0x31   :  { %p6511_p9 = pnand %p6510_p8, %p6504_p5 }
  0x33   :  { %6514 = shalt.err (!%p6511_p9)
}
  0x34   :  { %s6618_s1 = smov 256   ;;  %s6619_s16 = smov 16  }
  0x35   :  { %60 = dma.hbm_to_vmem [thread:$0]  %s8268_s4, 8192, %s55_s20, [#allocation6], %s6618_s1, %s6618_s1, %s6619_s16  }
  0x36   :  { %s6620_s12 = smov [#allocation8]   ;;  %s6515_s18 = scalar_lea.hbm %s8270_s6, 8192 }
  0x37   :  { %s68_s13 = sshll.u32 %s6620_s12, 4  ;;  %p6516_p10 = scmp.ne.s32.totalorder %s8270_s6, %s6515_s18  ;;  %s69_s13 = int_to_ptr.vmem [resolvable:$true] %s68_s13 }
  0x38   :  { %p6519_p11 = scmp.lt.u32.totalorder %s6515_s18, %s8270_s6 }
  0x3a   :  { %p6521_p12 = pnand %p6519_p11, %p6516_p10 }
  0x3c   :  { %6524 = shalt.err (!%p6521_p12)
}
  0x3d   :  { %s6525_s22 = scalar_lea.vmem %s69_s13, 8192  ;;  %p6530_p0 = scmp.lt.s32.totalorder %s69_s13, %s69_s13 }
  0x3e   :  { %p6526_p13 = scmp.ne.s32.totalorder %s69_s13, %s6525_s22  ;;  %p6531_p1 = scmp.lt.s32.totalorder %s6525_s22, %s6525_s22 }
  0x40   :  { %p6532_p2 = por %p6531_p1, %p6530_p0 }
  0x42   :  { %p6533_p3 = pnand %p6532_p2, %p6526_p13 }
  0x44   :  { %6536 = shalt.err (!%p6533_p3)
}
  0x45   :  { %74 = dma.hbm_to_vmem [thread:$0]  %s8270_s6, 8192, %s69_s13, [#allocation9], %s6618_s1, %s6618_s1, %s6619_s16  }
  0x46   :  { %6603 = dma.done.wait [#allocation3], 17408  }
  0x47   :  { %6604 = vsyncadd [#allocation3], 4294949888 }
  0x48   :  { %6605 = dma.done.wait [#allocation6], 40960  }
  0x49   :  { %6606 = vsyncadd [#allocation6], 4294926336 }
  0x4a   :  { %6607 = dma.done.wait [#allocation9], 8192  }
  0x4b   :  { %6608 = vsyncadd [#allocation9], 4294959104  ;;  %v94_v0 = vld [vmem:[#allocation2 + $0x8] sm:$0xff]  ;;  %v93_v2 = vld [vmem:[#allocation2] sm:$0xff]  ;;  %vm271_vm0 = vcmask 48128   ;;  %vm278_vm1 = vcmask 1045504  }
  0x4c   :  { %v102_v1 = vld [vmem:[#allocation2 + $0x48] sm:$0xff]  ;;  %v101_v4 = vld [vmem:[#allocation2 + $0x40] sm:$0xff]  ;;  %v96_v18 = vld [vmem:[#allocation2 + $0x18] sm:$0xff] }
  0x4d   :  { %v4132_v3 = vpack.c.bf16 %v102_v1, %v94_v0  ;;  %v110_v5 = vld [vmem:[#allocation2 + $0x88] sm:$0xff]  ;;  %v4134_v7 = vpack.c.bf16 %v101_v4, %v93_v2  ;;  %v109_v9 = vld [vmem:[#allocation2 + $0x80] sm:$0xff]  ;;  %v104_v19 = vld [vmem:[#allocation2 + $0x58] sm:$0xff] }
  0x4e   :  { %v118_v6 = vld [vmem:[#allocation2 + $0xc8] sm:$0xff]  ;;  %v117_v10 = vld [vmem:[#allocation2 + $0xc0] sm:$0xff]  ;;  %v4164_v21 = vpack.c.bf16 %v104_v19, %v96_v18  ;;  %v95_v22 = vld [vmem:[#allocation2 + $0x10] sm:$0xff] }
  0x4f   :  { %v4136_v8 = vpack.c.bf16 %v118_v6, %v110_v5  ;;  %v126_v11 = vld [vmem:[#allocation2 + $0x108] sm:$0xff]  ;;  %4133 = vmatprep.subr.bf16.mxu0 %v4132_v3  ;;  %v4138_v13 = vpack.c.bf16 %v117_v10, %v109_v9  ;;  %v125_v14 = vld [vmem:[#allocation2 + $0x100] sm:$0xff]  ;;  %v103_v23 = vld [vmem:[#allocation2 + $0x50] sm:$0xff] }
  0x50   :  { %v134_v12 = vld [vmem:[#allocation2 + $0x148] sm:$0xff]  ;;  %4135 = vmatpush1.bf16.msra.mxu0 %v4134_v7  ;;  %v133_v15 = vld [vmem:[#allocation2 + $0x140] sm:$0xff]  ;;  %v4166_v24 = vpack.c.bf16 %v103_v23, %v95_v22  ;;  %4165 = vmatprep.subr.bf16.mxu1 %v4164_v21  ;;  %v112_v26 = vld [vmem:[#allocation2 + $0x98] sm:$0xff] }
  0x51   :  { %4137 = vmatprep.subr.bf16.mxu0 %v4136_v8  ;;  %v4140_v16 = vpack.c.bf16 %v134_v12, %v126_v11  ;;  %v142_v17 = vld [vmem:[#allocation2 + $0x188] sm:$0xff]  ;;  %v4142_v25 = vpack.c.bf16 %v133_v15, %v125_v14  ;;  %v120_v27 = vld [vmem:[#allocation2 + $0xd8] sm:$0xff]  ;;  %v111_v28 = vld [vmem:[#allocation2 + $0x90] sm:$0xff] }
  0x52   :  { %v150_v20 = vld [vmem:[#allocation2 + $0x1c8] sm:$0xff]  ;;  %v141_v30 = vld [vmem:[#allocation2 + $0x180] sm:$0xff]  ;;  %4167 = vmatpush1.bf16.msra.mxu1 %v4166_v24  ;;  %v4168_v32 = vpack.c.bf16 %v120_v27, %v112_v26  ;;  %v119_v33 = vld [vmem:[#allocation2 + $0xd0] sm:$0xff] }
  0x53   :  { %v4144_v29 = vpack.c.bf16 %v150_v20, %v142_v17  ;;  %v149_v31 = vld [vmem:[#allocation2 + $0x1c0] sm:$0xff]  ;;  %v158_v34 = vld [vmem:[#allocation2 + $0x208] sm:$0xff]  ;;  %v4170_v36 = vpack.c.bf16 %v119_v33, %v111_v28  ;;  %v128_v37 = vld [vmem:[#allocation2 + $0x118] sm:$0xff] }
  0x54   :  { %4139 = vmatpush1.bf16.msra.mxu0 %v4138_v13  ;;  %v166_v35 = vld [vmem:[#allocation2 + $0x248] sm:$0xff]  ;;  %4169 = vmatprep.subr.bf16.mxu1 %v4168_v32  ;;  %v136_v38 = vld [vmem:[#allocation2 + $0x158] sm:$0xff]  ;;  %v127_v39 = vld [vmem:[#allocation2 + $0x110] sm:$0xff]  ;;  %v4146_v41 = vpack.c.bf16 %v149_v31, %v141_v30 }
  0x55   :  { %4141 = vmatprep.subr.bf16.mxu0 %v4140_v16  ;;  %v135_v40 = vld [vmem:[#allocation2 + $0x150] sm:$0xff]  ;;  %v157_v42 = vld [vmem:[#allocation2 + $0x200] sm:$0xff]  ;;  %v4172_v44 = vpack.c.bf16 %v136_v38, %v128_v37  ;;  %v4148_v45 = vpack.c.bf16 %v166_v35, %v158_v34  ;;  %v174_v46 = vld [vmem:[#allocation2 + $0x288] sm:$0xff] }
  0x56   :  { %v165_v43 = vld [vmem:[#allocation2 + $0x240] sm:$0xff]  ;;  %4171 = vmatpush1.bf16.msra.mxu1 %v4170_v36  ;;  %v4174_v47 = vpack.c.bf16 %v135_v40, %v127_v39  ;;  %v144_v48 = vld [vmem:[#allocation2 + $0x198] sm:$0xff]  ;;  %v182_v50 = vld [vmem:[#allocation2 + $0x2c8] sm:$0xff] }
  0x57   :  { %v152_v49 = vld [vmem:[#allocation2 + $0x1d8] sm:$0xff]  ;;  %4173 = vmatprep.subr.bf16.mxu1 %v4172_v44  ;;  %v143_v52 = vld [vmem:[#allocation2 + $0x190] sm:$0xff]  ;;  %v4150_v54 = vpack.c.bf16 %v165_v43, %v157_v42  ;;  %v173_v55 = vld [vmem:[#allocation2 + $0x280] sm:$0xff]  ;;  %v4152_v58 = vpack.c.bf16 %v182_v50, %v174_v46 }
  0x58   :  { %4143 = vmatpush1.bf16.msra.mxu0 %v4142_v25  ;;  %v4176_v51 = vpack.c.bf16 %v152_v49, %v144_v48  ;;  %v151_v53 = vld [vmem:[#allocation2 + $0x1d0] sm:$0xff]  ;;  %v160_v56 = vld [vmem:[#allocation2 + $0x218] sm:$0xff]  ;;  %v181_v59 = vld [vmem:[#allocation2 + $0x2c0] sm:$0xff] }
  0x59   :  { %4145 = vmatprep.subr.bf16.mxu0 %v4144_v29  ;;  %v168_v57 = vld [vmem:[#allocation2 + $0x258] sm:$0xff]  ;;  %v190_v60 = vld [vmem:[#allocation2 + $0x308] sm:$0xff]  ;;  %v4178_v62 = vpack.c.bf16 %v151_v53, %v143_v52  ;;  %v159_v0 = vld [vmem:[#allocation2 + $0x210] sm:$0xff]  ;;  %v4154_v5 = vpack.c.bf16 %v181_v59, %v173_v55 }
  0x5a   :  { %4175 = vmatpush1.bf16.msra.mxu1 %v4174_v47  ;;  %v198_v61 = vld [vmem:[#allocation2 + $0x348] sm:$0xff]  ;;  %v4180_v63 = vpack.c.bf16 %v168_v57, %v160_v56  ;;  %v167_v1 = vld [vmem:[#allocation2 + $0x250] sm:$0xff]  ;;  %v176_v3 = vld [vmem:[#allocation2 + $0x298] sm:$0xff] }
  0x5b   :  { %4177 = vmatprep.subr.bf16.mxu1 %v4176_v51  ;;  %v6741_v2 = vld [vmem:[%s8264_s0 + $0x8] sm:$0xff]  ;;  %v184_v4 = vld [vmem:[#allocation2 + $0x2d8] sm:$0xff]  ;;  %v4156_v6 = vpack.c.bf16 %v198_v61, %v190_v60  ;;  %v189_v7 = vld [vmem:[#allocation2 + $0x300] sm:$0xff]  ;;  %v4182_v10 = vpack.c.bf16 %v167_v1, %v159_v0 }
  0x5c   :  { %4147 = vmatpush1.bf16.msra.mxu0 %v4146_v41  ;;  %4064 = vmatprep.mubr.msk.f32.mxu0 %vm271_vm0, %v6741_v2  ;;  %v197_v8 = vld [vmem:[#allocation2 + $0x340] sm:$0xff]  ;;  %v206_v9 = vld [vmem:[#allocation2 + $0x388] sm:$0xff]  ;;  %v4184_v12 = vpack.c.bf16 %v184_v4, %v176_v3  ;;  %v175_v13 = vld [vmem:[#allocation2 + $0x290] sm:$0xff] }
  0x5d   :  { %4149 = vmatprep.subr.bf16.mxu0 %v4148_v45  ;;  %4068 = vmatprep.mubr.msk.f32.mxu1 %vm271_vm0, %v6741_v2  ;;  %v214_v11 = vld [vmem:[#allocation2 + $0x3c8] sm:$0xff]  ;;  %v183_v14 = vld [vmem:[#allocation2 + $0x2d0] sm:$0xff]  ;;  %v192_v15 = vld [vmem:[#allocation2 + $0x318] sm:$0xff]  ;;  %v4158_v17 = vpack.c.bf16 %v197_v8, %v189_v7 }
  0x5e   :  { %4179 = vmatpush1.bf16.msra.mxu1 %v4178_v62  ;;  %v200_v16 = vld [vmem:[#allocation2 + $0x358] sm:$0xff]  ;;  %v4160_v18 = vpack.c.bf16 %v214_v11, %v206_v9  ;;  %v205_v19 = vld [vmem:[#allocation2 + $0x380] sm:$0xff]  ;;  %v4186_v21 = vpack.c.bf16 %v183_v14, %v175_v13  ;;  %v191_v23 = vld [vmem:[#allocation2 + $0x310] sm:$0xff] }
  0x5f   :  { %4181 = vmatprep.subr.bf16.mxu1 %v4180_v63  ;;  %v213_v20 = vld [vmem:[#allocation2 + $0x3c0] sm:$0xff]  ;;  %v4188_v22 = vpack.c.bf16 %v200_v16, %v192_v15  ;;  %v199_v24 = vld [vmem:[#allocation2 + $0x350] sm:$0xff]  ;;  %v208_v25 = vld [vmem:[#allocation2 + $0x398] sm:$0xff] }
  0x60   :  { %4151 = vmatpush1.bf16.msra.mxu0 %v4150_v54  ;;  %v216_v26 = vld [vmem:[#allocation2 + $0x3d8] sm:$0xff]  ;;  %v4162_v27 = vpack.c.bf16 %v213_v20, %v205_v19  ;;  %v222_v28 = vld [vmem:[#allocation2 + $0x408] sm:$0x3f]  ;;  %v4190_v29 = vpack.c.bf16 %v199_v24, %v191_v23  ;;  %v97_v32 = vld [vmem:[#allocation2 + $0x20] sm:$0xff] }
  0x61   :  { %4153 = vmatprep.subr.bf16.mxu0 %v4152_v58  ;;  %v98_v30 = vld [vmem:[#allocation2 + $0x28] sm:$0xff]  ;;  %v4192_v33 = vpack.c.bf16 %v216_v26, %v208_v25  ;;  %v105_v34 = vld [vmem:[#allocation2 + $0x60] sm:$0xff]  ;;  %v207_v35 = vld [vmem:[#allocation2 + $0x390] sm:$0xff] }
  0x62   :  { %4183 = vmatpush1.bf16.msra.mxu1 %v4182_v10  ;;  %v106_v31 = vld [vmem:[#allocation2 + $0x68] sm:$0xff]  ;;  %v215_v36 = vld [vmem:[#allocation2 + $0x3d0] sm:$0xff]  ;;  %v221_v39 = vld [vmem:[#allocation2 + $0x400] sm:$0x3f]  ;;  %v4198_v42 = vpack.c.bf16 %v105_v34, %v97_v32 }
  0x63   :  { %4185 = vmatprep.subr.bf16.mxu1 %v4184_v12  ;;  %v114_v37 = vld [vmem:[#allocation2 + $0xa8] sm:$0xff]  ;;  %v4196_v40 = vpack.c.bf16 %v106_v31, %v98_v30  ;;  %v6751_v41 = vld [vmem:[%s8264_s0] sm:$0xff]  ;;  %v4194_v44 = vpack.c.bf16 %v215_v36, %v207_v35  ;;  %v224_v49 = vld [vmem:[#allocation2 + $0x418] sm:$0x3f] }
  0x64   :  { %4155 = vmatpush1.bf16.msra.mxu0 %v4154_v5  ;;  %v122_v38 = vld [vmem:[#allocation2 + $0xe8] sm:$0xff]  ;;  %v113_v43 = vld [vmem:[#allocation2 + $0xa0] sm:$0xff]  ;;  %v100_v50 = vld [vmem:[#allocation2 + $0x38] sm:$0xff] }
  0x65   :  { %4157 = vmatprep.subr.bf16.mxu0 %v4156_v6  ;;  %v4200_v45 = vpack.c.bf16 %v122_v38, %v114_v37  ;;  %v121_v46 = vld [vmem:[#allocation2 + $0xe0] sm:$0xff]  ;;  %v130_v47 = vld [vmem:[#allocation2 + $0x128] sm:$0xff]  ;;  %v108_v51 = vld [vmem:[#allocation2 + $0x78] sm:$0xff] }
  0x66   :  { %4187 = vmatpush1.bf16.msra.mxu1 %v4186_v21  ;;  %v138_v48 = vld [vmem:[#allocation2 + $0x168] sm:$0xff]  ;;  %v129_v52 = vld [vmem:[#allocation2 + $0x120] sm:$0xff]  ;;  %v223_v54 = vld [vmem:[#allocation2 + $0x410] sm:$0x3f]  ;;  %v4202_v55 = vpack.c.bf16 %v121_v46, %v113_v43  ;;  %v4228_v60 = vpack.c.bf16 %v108_v51, %v100_v50 }
  0x67   :  { %4189 = vmatprep.subr.bf16.mxu1 %v4188_v22  ;;  %v137_v53 = vld [vmem:[#allocation2 + $0x160] sm:$0xff]  ;;  %v99_v56 = vld [vmem:[#allocation2 + $0x30] sm:$0xff]  ;;  %v6758_v58 = vld [vmem:[%s8264_s0 + $0x18] sm:$0xff]  ;;  %v4204_v59 = vpack.c.bf16 %v138_v48, %v130_v47 }
  0x68   :  { %4159 = vmatpush1.bf16.msra.mxu0 %v4158_v17  ;;  %v107_v57 = vld [vmem:[#allocation2 + $0x70] sm:$0xff]  ;;  %v116_v61 = vld [vmem:[#allocation2 + $0xb8] sm:$0xff]  ;;  %v146_v0 = vld [vmem:[#allocation2 + $0x1a8] sm:$0xff]  ;;  %v4206_v4 = vpack.c.bf16 %v137_v53, %v129_v52 }
  0x69   :  { %4161 = vmatprep.subr.bf16.mxu0 %v4160_v18  ;;  %v124_v62 = vld [vmem:[#allocation2 + $0xf8] sm:$0xff]  ;;  %v6764_v63 = vld [vmem:[%s8264_s0 + $0x10] sm:$0xff]  ;;  %v154_v1 = vld [vmem:[#allocation2 + $0x1e8] sm:$0xff]  ;;  %v4230_v3 = vpack.c.bf16 %v107_v57, %v99_v56 }
  0x6a   :  { %4191 = vmatpush1.bf16.msra.mxu1 %v4190_v29  ;;  %v145_v5 = vld [vmem:[#allocation2 + $0x1a0] sm:$0xff]  ;;  %v4232_v6 = vpack.c.bf16 %v124_v62, %v116_v61  ;;  %v115_v7 = vld [vmem:[#allocation2 + $0xb0] sm:$0xff]  ;;  %v4208_v9 = vpack.c.bf16 %v154_v1, %v146_v0  ;;  %v132_v11 = vld [vmem:[#allocation2 + $0x138] sm:$0xff] }
  0x6b   :  { %4193 = vmatprep.subr.bf16.mxu1 %v4192_v33  ;;  %v123_v8 = vld [vmem:[#allocation2 + $0xf0] sm:$0xff]  ;;  %v153_v10 = vld [vmem:[#allocation2 + $0x1e0] sm:$0xff]  ;;  %v140_v12 = vld [vmem:[#allocation2 + $0x178] sm:$0xff] }
  0x6c   :  { %4163 = vmatpush1.bf16.msra.mxu0 %v4162_v27  ;;  %v162_v13 = vld [vmem:[#allocation2 + $0x228] sm:$0xff]  ;;  %v4234_v15 = vpack.c.bf16 %v123_v8, %v115_v7  ;;  %v4210_v16 = vpack.c.bf16 %v153_v10, %v145_v5  ;;  %v161_v17 = vld [vmem:[#allocation2 + $0x220] sm:$0xff]  ;;  %v4236_v18 = vpack.c.bf16 %v140_v12, %v132_v11  ;;  %v131_v19 = vld [vmem:[#allocation2 + $0x130] sm:$0xff] }
  0x6d   :  { %4062 = vmatprep.subr.msk.mxu0 %vm278_vm1, %v222_v28  ;;  %v170_v14 = vld [vmem:[#allocation2 + $0x268] sm:$0xff]  ;;  %v139_v20 = vld [vmem:[#allocation2 + $0x170] sm:$0xff]  ;;  %v169_v22 = vld [vmem:[#allocation2 + $0x260] sm:$0xff] }
  0x6e   :  { %4195 = vmatpush1.bf16.msra.mxu1 %v4194_v44  ;;  %v4212_v21 = vpack.c.bf16 %v170_v14, %v162_v13  ;;  %v148_v23 = vld [vmem:[#allocation2 + $0x1b8] sm:$0xff]  ;;  %v178_v25 = vld [vmem:[#allocation2 + $0x2a8] sm:$0xff]  ;;  %v4238_v27 = vpack.c.bf16 %v139_v20, %v131_v19  ;;  %v4214_v28 = vpack.c.bf16 %v169_v22, %v161_v17  ;;  %v177_v29 = vld [vmem:[#allocation2 + $0x2a0] sm:$0xff] }
  0x6f   :  { %4066 = vmatprep.subr.msk.mxu1 %vm278_vm1, %v224_v49  ;;  %v156_v24 = vld [vmem:[#allocation2 + $0x1f8] sm:$0xff]  ;;  %v186_v26 = vld [vmem:[#allocation2 + $0x2e8] sm:$0xff]  ;;  %v147_v31 = vld [vmem:[#allocation2 + $0x1b0] sm:$0xff] }
  0x70   :  { %4063 = vmatpush1.msk.msra.mxu0 %vm278_vm1, %v221_v39  ;;  %v4240_v30 = vpack.c.bf16 %v156_v24, %v148_v23  ;;  %v155_v32 = vld [vmem:[#allocation2 + $0x1f0] sm:$0xff]  ;;  %v4216_v33 = vpack.c.bf16 %v186_v26, %v178_v25  ;;  %v185_v34 = vld [vmem:[#allocation2 + $0x2e0] sm:$0xff]  ;;  %v164_v35 = vld [vmem:[#allocation2 + $0x238] sm:$0xff] }
  0x71   :  { %368 = vmatmul.mubr.f32.vlgmr.msra.gmra.mrb[0].mxu0 %v6751_v41  ;;  %4197 = vmatprep.subr.bf16.mxu0 %v4196_v40  ;;  %v172_v36 = vld [vmem:[#allocation2 + $0x278] sm:$0xff]  ;;  %v194_v37 = vld [vmem:[#allocation2 + $0x328] sm:$0xff]  ;;  %v4242_v39 = vpack.c.bf16 %v155_v32, %v147_v31  ;;  %v4218_v40 = vpack.c.bf16 %v185_v34, %v177_v29  ;;  %v163_v43 = vld [vmem:[#allocation2 + $0x230] sm:$0xff] }
  0x72   :  { %4199 = vmatpush1.bf16.msra.mxu0 %v4198_v42  ;;  %4065 = vmatprep.mubr.msk.f32.mxu0 %vm271_vm0, %v6758_v58  ;;  %v202_v38 = vld [vmem:[#allocation2 + $0x368] sm:$0xff]  ;;  %v193_v42 = vld [vmem:[#allocation2 + $0x320] sm:$0xff]  ;;  %v171_v44 = vld [vmem:[#allocation2 + $0x270] sm:$0xff] }
  0x73   :  { %4201 = vmatprep.subr.bf16.mxu0 %v4200_v45  ;;  %4067 = vmatpush1.msk.msra.mxu1 %vm278_vm1, %v223_v54  ;;  %v4220_v45 = vpack.c.bf16 %v202_v38, %v194_v37  ;;  %v201_v46 = vld [vmem:[#allocation2 + $0x360] sm:$0xff]  ;;  %v180_v47 = vld [vmem:[#allocation2 + $0x2b8] sm:$0xff]  ;;  %v210_v49 = vld [vmem:[#allocation2 + $0x3a8] sm:$0xff]  ;;  %v4246_v51 = vpack.c.bf16 %v171_v44, %v163_v43 }
  0x74   :  { %4229 = vmatprep.subr.bf16.mxu1 %v4228_v60  ;;  %445 = vmatmul.mubr.f32.vlgmr.msra.gmra.mrb[0].mxu1 %v6751_v41  ;;  %v188_v48 = vld [vmem:[#allocation2 + $0x2f8] sm:$0xff]  ;;  %v218_v50 = vld [vmem:[#allocation2 + $0x3e8] sm:$0xff]  ;;  %v4222_v52 = vpack.c.bf16 %v201_v46, %v193_v42  ;;  %v209_v53 = vld [vmem:[#allocation2 + $0x3a0] sm:$0xff] }
  0x75   :  { %374 = vmatmul.mubr.f32.gmra.mrb[2].mxu0 %v6764_v63  ;;  %4231 = vmatpush1.bf16.msra.mxu1 %v4230_v3  ;;  %v4248_v54 = vpack.c.bf16 %v188_v48, %v180_v47  ;;  %v187_v56 = vld [vmem:[#allocation2 + $0x2f0] sm:$0xff]  ;;  %v4224_v57 = vpack.c.bf16 %v218_v50, %v210_v49  ;;  %v196_v60 = vld [vmem:[#allocation2 + $0x338] sm:$0xff]  ;;  %v226_v7 = vld [vmem:[#allocation2 + $0x428] sm:$0x3f] }
  0x76   :  { %4203 = vmatpush1.bf16.msra.mxu0 %v4202_v55  ;;  %4072 = vmatprep.mubr.msk.f32.mxu0 %vm271_vm0, %v6741_v2  ;;  %v179_v55 = vld [vmem:[#allocation2 + $0x2b0] sm:$0xff]  ;;  %v204_v61 = vld [vmem:[#allocation2 + $0x378] sm:$0xff]  ;;  %v225_v12 = vld [vmem:[#allocation2 + $0x420] sm:$0x3f] }
  0x77   :  { %4205 = vmatprep.subr.bf16.mxu0 %v4204_v59  ;;  %4069 = vmatprep.mubr.msk.f32.mxu1 %vm271_vm0, %v6758_v58  ;;  %v217_v59 = vld [vmem:[#allocation2 + $0x3e0] sm:$0xff]  ;;  %v4250_v62 = vpack.c.bf16 %v187_v56, %v179_v55  ;;  %v4252_v1 = vpack.c.bf16 %v204_v61, %v196_v60  ;;  %v195_v3 = vld [vmem:[#allocation2 + $0x330] sm:$0xff]  ;;  %v212_v5 = vld [vmem:[#allocation2 + $0x3b8] sm:$0xff] }
  0x78   :  { %4233 = vmatprep.subr.bf16.mxu1 %v4232_v6  ;;  %451 = vmatmul.mubr.f32.gmra.mrb[2].mxu1 %v6764_v63  ;;  %v4226_v0 = vpack.c.bf16 %v217_v59, %v209_v53  ;;  %v220_v6 = vld [vmem:[#allocation2 + $0x3f8] sm:$0xff]  ;;  %v211_v10 = vld [vmem:[#allocation2 + $0x3b0] sm:$0xff]  ;;  %v620_v17 = vld [vmem:[#allocation5 + $0x48] sm:$0xff] }
  0x79   :  { %4235 = vmatpush1.bf16.msra.mxu1 %v4234_v15  ;;  %4076 = vmatprep.mubr.msk.f32.mxu1 %vm271_vm0, %v6741_v2  ;;  %v4244_v2 = vpack.c.bf16 %v172_v36, %v164_v35  ;;  %v219_v11 = vld [vmem:[#allocation2 + $0x3f0] sm:$0xff]  ;;  %v228_v14 = vld [vmem:[#allocation2 + $0x438] sm:$0x3f]  ;;  %v619_v22 = vld [vmem:[#allocation5 + $0x40] sm:$0xff] }
  0x7a   :  { %4207 = vmatpush1.bf16.msra.mxu0 %v4206_v4  ;;  %4237 = vmatprep.subr.bf16.mxu1 %v4236_v18  ;;  %v203_v4 = vld [vmem:[#allocation2 + $0x370] sm:$0xff]  ;;  %v4258_v13 = vpack.c.bf16 %v219_v11, %v211_v10  ;;  %v614_v18 = vld [vmem:[#allocation5 + $0x18] sm:$0xff]  ;;  %v635_v31 = vld [vmem:[#allocation5 + $0xc0] sm:$0xff] }
  0x7b   :  { %4209 = vmatprep.subr.bf16.mxu0 %v4208_v9  ;;  %v4254_v8 = vpack.c.bf16 %v203_v4, %v195_v3  ;;  %v4256_v9 = vpack.c.bf16 %v220_v6, %v212_v5  ;;  %v227_v15 = vld [vmem:[#allocation2 + $0x430] sm:$0x3f]  ;;  %v622_v20 = vld [vmem:[#allocation5 + $0x58] sm:$0xff]  ;;  %v644_v37 = vld [vmem:[#allocation5 + $0x108] sm:$0xff] }
  0x7c   :  { %v6792_v23 = vpack.c.bf16 %v622_v20, %v614_v18  ;;  %v613_v25 = vld [vmem:[#allocation5 + $0x10] sm:$0xff]  ;;  %v638_v29 = vld [vmem:[#allocation5 + $0xd8] sm:$0xff]  ;;  %v652_v38 = vld [vmem:[#allocation5 + $0x148] sm:$0xff] }
  0x7d   :  { %4239 = vmatpush1.bf16.msra.mxu1 %v4238_v27  ;;  %v621_v26 = vld [vmem:[#allocation5 + $0x50] sm:$0xff]  ;;  %v630_v27 = vld [vmem:[#allocation5 + $0x98] sm:$0xff]  ;;  %v651_v43 = vld [vmem:[#allocation5 + $0x140] sm:$0xff] }
  0x7e   :  { %4211 = vmatpush1.bf16.msra.mxu0 %v4210_v16  ;;  %4241 = vmatprep.subr.bf16.mxu1 %v4240_v30  ;;  %v612_v16 = vld [vmem:[#allocation5 + $0x8] sm:$0xff]  ;;  %8606 = vst [vmem:[#allocation20_spill] sm:$0xff] %v6792_v23  ;;  %v627_v30 = vld [vmem:[#allocation5 + $0x80] sm:$0xff]  ;;  %v6804_v32 = vpack.c.bf16 %v638_v29, %v630_v27  ;;  %v629_v34 = vld [vmem:[#allocation5 + $0x90] sm:$0xff] }
  0x7f   :  { %4213 = vmatprep.subr.bf16.mxu0 %v4212_v21  ;;  %v6790_v19 = vpack.c.bf16 %v620_v17, %v612_v16  ;;  %v611_v21 = vld [vmem:[#allocation5] sm:$0xff]  ;;  %v637_v35 = vld [vmem:[#allocation5 + $0xd0] sm:$0xff]  ;;  %v654_v42 = vld [vmem:[#allocation5 + $0x158] sm:$0xff] }
  0x80   :  { %v6794_v24 = vpack.c.bf16 %v619_v22, %v611_v21  ;;  %8610 = vst [vmem:[#allocation24_spill] sm:$0xff] %v6804_v32  ;;  %v6809_v36 = vpack.c.bf16 %v637_v35, %v629_v34  ;;  %v645_v46 = vld [vmem:[#allocation5 + $0x110] sm:$0xff]  ;;  %v660_v49 = vld [vmem:[#allocation5 + $0x188] sm:$0xff]  ;;  %v670_v53 = vld [vmem:[#allocation5 + $0x1d8] sm:$0xff] }
  0x81   :  { %4243 = vmatpush1.bf16.msra.mxu1 %v4242_v39  ;;  %8605 = vst [vmem:[#allocation19_spill] sm:$0xff] %v6790_v19  ;;  %v646_v39 = vld [vmem:[#allocation5 + $0x118] sm:$0xff]  ;;  %v653_v47 = vld [vmem:[#allocation5 + $0x150] sm:$0xff]  ;;  %v668_v50 = vld [vmem:[#allocation5 + $0x1c8] sm:$0xff] }
  0x82   :  { %4215 = vmatpush1.bf16.msra.mxu0 %v4214_v28  ;;  %4245 = vmatprep.subr.bf16.mxu1 %v4244_v2  ;;  %8607 = vst [vmem:[#allocation21_spill] sm:$0xff] %v6794_v24  ;;  %8612 = vst [vmem:[#allocation26_spill] sm:$0xff] %v6809_v36  ;;  %v643_v2 = vld [vmem:[#allocation5 + $0x100] sm:$0xff]  ;;  %v6816_v44 = vpack.c.bf16 %v654_v42, %v646_v39  ;;  %v6821_v48 = vpack.c.bf16 %v653_v47, %v645_v46  ;;  %v661_v59 = vld [vmem:[#allocation5 + $0x190] sm:$0xff] }
  0x83   :  { %4217 = vmatprep.subr.bf16.mxu0 %v4216_v33  ;;  %v6806_v33 = vpack.c.bf16 %v635_v31, %v627_v30  ;;  %v667_v55 = vld [vmem:[#allocation5 + $0x1c0] sm:$0xff]  ;;  %v669_v60 = vld [vmem:[#allocation5 + $0x1d0] sm:$0xff]  ;;  %v686_v4 = vld [vmem:[#allocation5 + $0x258] sm:$0xff] }
  0x84   :  { %8614 = vst [vmem:[#allocation28_spill] sm:$0xff] %v6816_v44  ;;  %8616 = vst [vmem:[#allocation30_spill] sm:$0xff] %v6821_v48  ;;  %v6833_v61 = vpack.c.bf16 %v669_v60, %v661_v59  ;;  %v675_v5 = vld [vmem:[#allocation5 + $0x200] sm:$0xff]  ;;  %v685_v10 = vld [vmem:[#allocation5 + $0x250] sm:$0xff] }
  0x85   :  { %4247 = vmatpush1.bf16.msra.mxu1 %v4246_v51  ;;  %8611 = vst [vmem:[#allocation25_spill] sm:$0xff] %v6806_v33  ;;  %v662_v51 = vld [vmem:[#allocation5 + $0x198] sm:$0xff]  ;;  %v683_v6 = vld [vmem:[#allocation5 + $0x240] sm:$0xff]  ;;  %v693_v22 = vld [vmem:[#allocation5 + $0x290] sm:$0xff] }
  0x86   :  { %4219 = vmatpush1.bf16.msra.mxu0 %v4218_v40  ;;  %4249 = vmatprep.subr.bf16.mxu1 %v4248_v54  ;;  %v6814_v40 = vpack.c.bf16 %v652_v38, %v644_v37  ;;  %v659_v54 = vld [vmem:[#allocation5 + $0x180] sm:$0xff]  ;;  %v6828_v56 = vpack.c.bf16 %v670_v53, %v662_v51  ;;  %8620 = vst [vmem:[#allocation34_spill] sm:$0xff] %v6833_v61  ;;  %v702_v16 = vld [vmem:[#allocation5 + $0x2d8] sm:$0xff]  ;;  %v709_v38 = vld [vmem:[#allocation5 + $0x310] sm:$0xff] }
  0x87   :  { %4221 = vmatprep.subr.bf16.mxu0 %v4220_v45  ;;  %v6818_v45 = vpack.c.bf16 %v651_v43, %v643_v2  ;;  %v691_v17 = vld [vmem:[#allocation5 + $0x280] sm:$0xff]  ;;  %v710_v27 = vld [vmem:[#allocation5 + $0x318] sm:$0xff]  ;;  %v717_v39 = vld [vmem:[#allocation5 + $0x350] sm:$0xff] }
  0x88   :  { %8613 = vst [vmem:[#allocation27_spill] sm:$0xff] %v6814_v40  ;;  %8618 = vst [vmem:[#allocation32_spill] sm:$0xff] %v6828_v56  ;;  %v699_v18 = vld [vmem:[#allocation5 + $0x2c0] sm:$0xff]  ;;  %v718_v30 = vld [vmem:[#allocation5 + $0x358] sm:$0xff]  ;;  %v6869_v42 = vpack.c.bf16 %v717_v39, %v709_v38 }
  0x89   :  { %4251 = vmatpush1.bf16.msra.mxu1 %v4250_v62  ;;  %8615 = vst [vmem:[#allocation29_spill] sm:$0xff] %v6818_v45  ;;  %v676_v62 = vld [vmem:[#allocation5 + $0x208] sm:$0xff]  ;;  %v6854_v21 = vpack.c.bf16 %v699_v18, %v691_v17  ;;  %v707_v31 = vld [vmem:[#allocation5 + $0x300] sm:$0xff]  ;;  %v6864_v35 = vpack.c.bf16 %v718_v30, %v710_v27  ;;  %v726_v46 = vld [vmem:[#allocation5 + $0x398] sm:$0xff] }
  0x8a   :  { %4223 = vmatpush1.bf16.msra.mxu0 %v4222_v52  ;;  %4253 = vmatprep.subr.bf16.mxu1 %v4252_v1  ;;  %v6826_v52 = vpack.c.bf16 %v668_v50, %v660_v49  ;;  %v678_v1 = vld [vmem:[#allocation5 + $0x218] sm:$0xff]  ;;  %v715_v34 = vld [vmem:[#allocation5 + $0x340] sm:$0xff]  ;;  %8632 = vst [vmem:[#allocation46_spill] sm:$0xff] %v6869_v42  ;;  %v724_v2 = vld [vmem:[#allocation5 + $0x388] sm:$0xff] }
  0x8b   :  { %4225 = vmatprep.subr.bf16.mxu0 %v4224_v57  ;;  %v6830_v57 = vpack.c.bf16 %v667_v55, %v659_v54  ;;  %8627 = vst [vmem:[#allocation41_spill] sm:$0xff] %v6854_v21  ;;  %8630 = vst [vmem:[#allocation44_spill] sm:$0xff] %v6864_v35  ;;  %v6866_v37 = vpack.c.bf16 %v715_v34, %v707_v31  ;;  %v732_v43 = vld [vmem:[#allocation5 + $0x3c8] sm:$0xff]  ;;  %v734_v49 = vld [vmem:[#allocation5 + $0x3d8] sm:$0xff] }
  0x8c   :  { %8617 = vst [vmem:[#allocation31_spill] sm:$0xff] %v6826_v52  ;;  %v6874_v47 = vpack.c.bf16 %v732_v43, %v724_v2  ;;  %v723_v50 = vld [vmem:[#allocation5 + $0x380] sm:$0xff]  ;;  %v6876_v53 = vpack.c.bf16 %v734_v49, %v726_v46  ;;  %v725_v55 = vld [vmem:[#allocation5 + $0x390] sm:$0xff]  ;;  %v756_v17 = vld [vmem:[#allocation5 + $0x488] sm:$0xff] }
  0x8d   :  { %4255 = vmatpush1.bf16.msra.mxu1 %v4254_v8  ;;  %8619 = vst [vmem:[#allocation33_spill] sm:$0xff] %v6830_v57  ;;  %v6842_v8 = vpack.c.bf16 %v683_v6, %v675_v5  ;;  %8631 = vst [vmem:[#allocation45_spill] sm:$0xff] %v6866_v37  ;;  %v731_v51 = vld [vmem:[#allocation5 + $0x3c0] sm:$0xff]  ;;  %v733_v59 = vld [vmem:[#allocation5 + $0x3d0] sm:$0xff] }
  0x8e   :  { %4227 = vmatpush1.bf16.msra.mxu0 %v4226_v0  ;;  %4257 = vmatprep.subr.bf16.mxu1 %v4256_v9  ;;  %v684_v0 = vld [vmem:[#allocation5 + $0x248] sm:$0xff]  ;;  %v677_v9 = vld [vmem:[#allocation5 + $0x210] sm:$0xff]  ;;  %8633 = vst [vmem:[#allocation47_spill] sm:$0xff] %v6874_v47  ;;  %8634 = vst [vmem:[#allocation48_spill] sm:$0xff] %v6876_v53  ;;  %v6878_v54 = vpack.c.bf16 %v731_v51, %v723_v50  ;;  %v6881_v60 = vpack.c.bf16 %v733_v59, %v725_v55 }
  0x8f   :  { %4070 = vmatprep.subr.msk.mxu0 %vm278_vm1, %v226_v7  ;;  %v6838_v3 = vpack.c.bf16 %v684_v0, %v676_v62  ;;  %v6840_v7 = vpack.c.bf16 %v686_v4, %v678_v1  ;;  %8623 = vst [vmem:[#allocation37_spill] sm:$0xff] %v6842_v8  ;;  %v6845_v11 = vpack.c.bf16 %v685_v10, %v677_v9  ;;  %v740_v62 = vld [vmem:[#allocation5 + $0x408] sm:$0xff]  ;;  %v742_v1 = vld [vmem:[#allocation5 + $0x418] sm:$0xff]  ;;  %v739_v6 = vld [vmem:[#allocation5 + $0x400] sm:$0xff] }
  0x90   :  { %8635 = vst [vmem:[#allocation49_spill] sm:$0xff] %v6878_v54  ;;  %8636 = vst [vmem:[#allocation50_spill] sm:$0xff] %v6881_v60  ;;  %v748_v0 = vld [vmem:[#allocation5 + $0x448] sm:$0xff]  ;;  %v750_v5 = vld [vmem:[#allocation5 + $0x458] sm:$0xff] }
  0x91   :  { %4259 = vmatpush1.bf16.msra.mxu1 %v4258_v13  ;;  %8621 = vst [vmem:[#allocation35_spill] sm:$0xff] %v6838_v3  ;;  %8622 = vst [vmem:[#allocation36_spill] sm:$0xff] %v6840_v7  ;;  %v700_v13 = vld [vmem:[#allocation5 + $0x2c8] sm:$0xff]  ;;  %v6886_v4 = vpack.c.bf16 %v748_v0, %v740_v62  ;;  %v747_v9 = vld [vmem:[#allocation5 + $0x440] sm:$0xff]  ;;  %v6888_v10 = vpack.c.bf16 %v750_v5, %v742_v1 }
  0x92   :  { %4071 = vmatpush1.msk.msra.mxu0 %vm278_vm1, %v225_v12  ;;  %4074 = vmatprep.subr.msk.mxu1 %vm278_vm1, %v228_v14  ;;  %8624 = vst [vmem:[#allocation38_spill] sm:$0xff] %v6845_v11  ;;  %v692_v12 = vld [vmem:[#allocation5 + $0x288] sm:$0xff]  ;;  %v694_v14 = vld [vmem:[#allocation5 + $0x298] sm:$0xff]  ;;  %v763_v27 = vld [vmem:[#allocation5 + $0x4c0] sm:$0xff] }
  0x93   :  { %522 = vmatmul.mubr.f32.vlgmr.msra.gmra.mrb[4].mxu0 %v6751_v41  ;;  %4261 = vmatprep.subr.bf16.mxu0 %v6790_v19  ;;  %v6852_v20 = vpack.c.bf16 %v702_v16, %v694_v14  ;;  %8637 = vst [vmem:[#allocation51_spill] sm:$0xff] %v6886_v4  ;;  %8638 = vst [vmem:[#allocation52_spill] sm:$0xff] %v6888_v10  ;;  %v749_v14 = vld [vmem:[#allocation5 + $0x450] sm:$0xff]  ;;  %v764_v18 = vld [vmem:[#allocation5 + $0x4c8] sm:$0xff] }
  0x94   :  { %4073 = vmatprep.mubr.msk.f32.mxu0 %vm271_vm0, %v6758_v58  ;;  %4263 = vmatpush1.bf16.msra.mxu0 %v6794_v24  ;;  %v757_v34 = vld [vmem:[#allocation5 + $0x490] sm:$0xff]  ;;  %v772_v2 = vld [vmem:[#allocation5 + $0x508] sm:$0xff]  ;;  %v774_v46 = vld [vmem:[#allocation5 + $0x518] sm:$0xff] }
  0x95   :  { %4075 = vmatpush1.msk.msra.mxu1 %vm278_vm1, %v227_v15  ;;  %v6850_v15 = vpack.c.bf16 %v700_v13, %v692_v12  ;;  %8626 = vst [vmem:[#allocation40_spill] sm:$0xff] %v6852_v20  ;;  %v6890_v12 = vpack.c.bf16 %v747_v9, %v739_v6  ;;  %v741_v13 = vld [vmem:[#allocation5 + $0x410] sm:$0xff]  ;;  %v780_v43 = vld [vmem:[#allocation5 + $0x548] sm:$0xff]  ;;  %v782_v50 = vld [vmem:[#allocation5 + $0x558] sm:$0xff] }
  0x96   :  { %599 = vmatmul.mubr.f32.vlgmr.msra.gmra.mrb[4].mxu1 %v6751_v41  ;;  %v6797_v41 = vpack.c.bf16 %v621_v26, %v613_v25  ;;  %4325 = vmatprep.subr.bf16.mxu1 %v6792_v23  ;;  %v701_v25 = vld [vmem:[#allocation5 + $0x2d0] sm:$0xff]  ;;  %v6893_v16 = vpack.c.bf16 %v749_v14, %v741_v13  ;;  %v6910_v49 = vpack.c.bf16 %v780_v43, %v772_v2  ;;  %v771_v51 = vld [vmem:[#allocation5 + $0x500] sm:$0xff]  ;;  %v788_v6 = vld [vmem:[#allocation5 + $0x588] sm:$0xff] }
  0x97   :  { %528 = vmatmul.mubr.f32.gmra.mrb[6].mxu0 %v6764_v63  ;;  %4077 = vmatprep.mubr.msk.f32.mxu1 %vm271_vm0, %v6758_v58  ;;  %v628_v58 = vld [vmem:[#allocation5 + $0x88] sm:$0xff]  ;;  %8625 = vst [vmem:[#allocation39_spill] sm:$0xff] %v6850_v15  ;;  %v6857_v26 = vpack.c.bf16 %v701_v25, %v693_v22  ;;  %8639 = vst [vmem:[#allocation53_spill] sm:$0xff] %v6890_v12  ;;  %v758_v22 = vld [vmem:[#allocation5 + $0x498] sm:$0xff]  ;;  %v6898_v25 = vpack.c.bf16 %v764_v18, %v756_v17 }
  0x98   :  { %8608 = vst [vmem:[#allocation22_spill] sm:$0xff] %v6797_v41  ;;  %4327 = vmatpush1.bf16.msra.mxu1 %v6797_v41  ;;  %8640 = vst [vmem:[#allocation54_spill] sm:$0xff] %v6893_v16  ;;  %v765_v38 = vld [vmem:[#allocation5 + $0x4d0] sm:$0xff]  ;;  %v779_v55 = vld [vmem:[#allocation5 + $0x540] sm:$0xff]  ;;  %v6912_v59 = vpack.c.bf16 %v782_v50, %v774_v46 }
  0x99   :  { %4329 = vmatprep.subr.bf16.mxu1 %v6804_v32  ;;  %8628 = vst [vmem:[#allocation42_spill] sm:$0xff] %v6857_v26  ;;  %8641 = vst [vmem:[#allocation55_spill] sm:$0xff] %v6898_v25  ;;  %v6905_v39 = vpack.c.bf16 %v765_v38, %v757_v34  ;;  %v6914_v62 = vpack.c.bf16 %v779_v55, %v771_v51  ;;  %v773_v0 = vld [vmem:[#allocation5 + $0x510] sm:$0xff]  ;;  %v796_v9 = vld [vmem:[#allocation5 + $0x5c8] sm:$0xff] }
  0x9a   :  { %605 = vmatmul.mubr.f32.gmra.mrb[6].mxu1 %v6764_v63  ;;  %v636_v63 = vld [vmem:[#allocation5 + $0xc8] sm:$0xff]  ;;  %8645 = vst [vmem:[#allocation59_spill] sm:$0xff] %v6910_v49  ;;  %8646 = vst [vmem:[#allocation60_spill] sm:$0xff] %v6912_v59  ;;  %v781_v1 = vld [vmem:[#allocation5 + $0x550] sm:$0xff]  ;;  %v6922_v14 = vpack.c.bf16 %v796_v9, %v788_v6 }
  0x9b   :  { %v6802_v28 = vpack.c.bf16 %v636_v63, %v628_v58  ;;  %v708_v58 = vld [vmem:[#allocation5 + $0x308] sm:$0xff]  ;;  %8644 = vst [vmem:[#allocation58_spill] sm:$0xff] %v6905_v39  ;;  %8647 = vst [vmem:[#allocation61_spill] sm:$0xff] %v6914_v62  ;;  %v6917_v5 = vpack.c.bf16 %v781_v1, %v773_v0  ;;  %v790_v13 = vld [vmem:[#allocation5 + $0x598] sm:$0xff] }
  0x9c   :  { %4331 = vmatpush1.bf16.msra.mxu1 %v6809_v36  ;;  %v716_v63 = vld [vmem:[#allocation5 + $0x348] sm:$0xff]  ;;  %8649 = vst [vmem:[#allocation63_spill] sm:$0xff] %v6922_v14  ;;  %v798_v17 = vld [vmem:[#allocation5 + $0x5d8] sm:$0xff]  ;;  %v787_v18 = vld [vmem:[#allocation5 + $0x580] sm:$0xff] }
  0x9d   :  { %8609 = vst [vmem:[#allocation23_spill] sm:$0xff] %v6802_v28  ;;  %4265 = vmatprep.subr.bf16.mxu0 %v6802_v28  ;;  %4333 = vmatprep.subr.bf16.mxu1 %v6816_v44  ;;  %v6862_v29 = vpack.c.bf16 %v716_v63, %v708_v58  ;;  %v766_v58 = vld [vmem:[#allocation5 + $0x4d8] sm:$0xff]  ;;  %v755_v63 = vld [vmem:[#allocation5 + $0x480] sm:$0xff]  ;;  %8648 = vst [vmem:[#allocation62_spill] sm:$0xff] %v6917_v5 }
  0x9e   :  { %4267 = vmatpush1.bf16.msra.mxu0 %v6806_v33  ;;  %v6900_v30 = vpack.c.bf16 %v766_v58, %v758_v22  ;;  %v6902_v31 = vpack.c.bf16 %v763_v27, %v755_v63  ;;  %v795_v22 = vld [vmem:[#allocation5 + $0x5c0] sm:$0xff]  ;;  %v6924_v58 = vpack.c.bf16 %v798_v17, %v790_v13  ;;  %v789_v27 = vld [vmem:[#allocation5 + $0x590] sm:$0xff]  ;;  %v804_v2 = vld [vmem:[#allocation5 + $0x608] sm:$0xff] }
  0x9f   :  { %4269 = vmatprep.subr.bf16.mxu0 %v6814_v40  ;;  %8629 = vst [vmem:[#allocation43_spill] sm:$0xff] %v6862_v29  ;;  %v6926_v63 = vpack.c.bf16 %v795_v22, %v787_v18  ;;  %v797_v34 = vld [vmem:[#allocation5 + $0x5d0] sm:$0xff]  ;;  %v812_v43 = vld [vmem:[#allocation5 + $0x648] sm:$0xff]  ;;  %v806_v46 = vld [vmem:[#allocation5 + $0x618] sm:$0xff] }
  0xa0   :  { %4335 = vmatpush1.bf16.msra.mxu1 %v6821_v48  ;;  %8642 = vst [vmem:[#allocation56_spill] sm:$0xff] %v6900_v30  ;;  %8643 = vst [vmem:[#allocation57_spill] sm:$0xff] %v6902_v31  ;;  %v6929_v38 = vpack.c.bf16 %v797_v34, %v789_v27  ;;  %v6934_v50 = vpack.c.bf16 %v812_v43, %v804_v2  ;;  %v814_v51 = vld [vmem:[#allocation5 + $0x658] sm:$0xff]  ;;  %v803_v55 = vld [vmem:[#allocation5 + $0x600] sm:$0xff] }
  0xa1   :  { %4337 = vmatprep.subr.bf16.mxu1 %v6828_v56  ;;  %8650 = vst [vmem:[#allocation64_spill] sm:$0xff] %v6924_v58  ;;  %8651 = vst [vmem:[#allocation65_spill] sm:$0xff] %v6926_v63  ;;  %v811_v0 = vld [vmem:[#allocation5 + $0x640] sm:$0xff]  ;;  %v6936_v1 = vpack.c.bf16 %v814_v51, %v806_v46  ;;  %v805_v9 = vld [vmem:[#allocation5 + $0x610] sm:$0xff] }
  0xa2   :  { %4271 = vmatpush1.bf16.msra.mxu0 %v6818_v45  ;;  %8652 = vst [vmem:[#allocation66_spill] sm:$0xff] %v6929_v38  ;;  %8653 = vst [vmem:[#allocation67_spill] sm:$0xff] %v6934_v50  ;;  %v6938_v6 = vpack.c.bf16 %v811_v0, %v803_v55  ;;  %v813_v13 = vld [vmem:[#allocation5 + $0x650] sm:$0xff]  ;;  %v820_v18 = vld [vmem:[#allocation5 + $0x688] sm:$0xff] }
  0xa3   :  { %4273 = vmatprep.subr.bf16.mxu0 %v6826_v52  ;;  %8654 = vst [vmem:[#allocation68_spill] sm:$0xff] %v6936_v1  ;;  %v6941_v17 = vpack.c.bf16 %v813_v13, %v805_v9  ;;  %v828_v22 = vld [vmem:[#allocation5 + $0x6c8] sm:$0xff]  ;;  %v822_v27 = vld [vmem:[#allocation5 + $0x698] sm:$0xff]  ;;  %v819_v43 = vld [vmem:[#allocation5 + $0x680] sm:$0xff] }
  0xa4   :  { %4339 = vmatpush1.bf16.msra.mxu1 %v6833_v61  ;;  %8655 = vst [vmem:[#allocation69_spill] sm:$0xff] %v6938_v6  ;;  %v6946_v34 = vpack.c.bf16 %v828_v22, %v820_v18  ;;  %v830_v2 = vld [vmem:[#allocation5 + $0x6d8] sm:$0xff]  ;;  %v827_v46 = vld [vmem:[#allocation5 + $0x6c0] sm:$0xff]  ;;  %v821_v0 = vld [vmem:[#allocation5 + $0x690] sm:$0xff] }
  0xa5   :  { %4341 = vmatprep.subr.bf16.mxu1 %v6840_v7  ;;  %8656 = vst [vmem:[#allocation70_spill] sm:$0xff] %v6941_v17  ;;  %v6948_v51 = vpack.c.bf16 %v830_v2, %v822_v27  ;;  %v6950_v55 = vpack.c.bf16 %v827_v46, %v819_v43  ;;  %v829_v9 = vld [vmem:[#allocation5 + $0x6d0] sm:$0xff]  ;;  %v836_v13 = vld [vmem:[#allocation5 + $0x708] sm:$0xff]  ;;  %v835_v27 = vld [vmem:[#allocation5 + $0x700] sm:$0xff] }
  0xa6   :  { %4275 = vmatpush1.bf16.msra.mxu0 %v6830_v57  ;;  %8657 = vst [vmem:[#allocation71_spill] sm:$0xff] %v6946_v34  ;;  %v843_v2 = vld [vmem:[#allocation5 + $0x740] sm:$0xff]  ;;  %v837_v43 = vld [vmem:[#allocation5 + $0x710] sm:$0xff] }
  0xa7   :  { %4277 = vmatprep.subr.bf16.mxu0 %v6838_v3  ;;  %8658 = vst [vmem:[#allocation72_spill] sm:$0xff] %v6948_v51  ;;  %8659 = vst [vmem:[#allocation73_spill] sm:$0xff] %v6950_v55  ;;  %v6962_v46 = vpack.c.bf16 %v843_v2, %v835_v27  ;;  %v861_v27 = vld [vmem:[#allocation5 + $0x7d0] sm:$0xff] }
  0xa8   :  { %4343 = vmatpush1.bf16.msra.mxu1 %v6845_v11 }
  0xa9   :  { %4345 = vmatprep.subr.bf16.mxu1 %v6852_v20  ;;  %8663 = vst [vmem:[#allocation77_spill] sm:$0xff] %v6962_v46 }
  0xaa   :  { %4279 = vmatpush1.bf16.msra.mxu0 %v6842_v8 }
  0xab   :  { %4281 = vmatprep.subr.bf16.mxu0 %v6850_v15 }
  0xac   :  { %4347 = vmatpush1.bf16.msra.mxu1 %v6857_v26 }
  0xad   :  { %4349 = vmatprep.subr.bf16.mxu1 %v6864_v35 }
  0xae   :  { %4283 = vmatpush1.bf16.msra.mxu0 %v6854_v21 }
  0xaf   :  { %4285 = vmatprep.subr.bf16.mxu0 %v6862_v29 }
  0xb0   :  { %4351 = vmatpush1.bf16.msra.mxu1 %v6869_v42 }
  0xb1   :  { %4353 = vmatprep.subr.bf16.mxu1 %v6876_v53 }
  0xb2   :  { %4287 = vmatpush1.bf16.msra.mxu0 %v6866_v37 }
  0xb3   :  { %4289 = vmatprep.subr.bf16.mxu0 %v6874_v47 }
  0xb4   :  { %4355 = vmatpush1.bf16.msra.mxu1 %v6881_v60 }
  0xb5   :  { %4357 = vmatprep.subr.bf16.mxu1 %v6888_v10 }
  0xb6   :  { %4291 = vmatpush1.bf16.msra.mxu0 %v6878_v54 }
  0xb7   :  { %4293 = vmatprep.subr.bf16.mxu0 %v6886_v4 }
  0xb8   :  { %4359 = vmatpush1.bf16.msra.mxu1 %v6893_v16 }
  0xb9   :  { %4361 = vmatprep.subr.bf16.mxu1 %v6900_v30 }
  0xba   :  { %4295 = vmatpush1.bf16.msra.mxu0 %v6890_v12 }
  0xbb   :  { %4297 = vmatprep.subr.bf16.mxu0 %v6898_v25 }
  0xbc   :  { %4363 = vmatpush1.bf16.msra.mxu1 %v6905_v39 }
  0xbd   :  { %4365 = vmatprep.subr.bf16.mxu1 %v6912_v59  ;;  %v650_v59 = vld [vmem:[#allocation5 + $0x138] sm:$0xff] }
  0xbe   :  { %4299 = vmatpush1.bf16.msra.mxu0 %v6902_v31 }
  0xbf   :  { %4301 = vmatprep.subr.bf16.mxu0 %v6910_v49  ;;  %v658_v49 = vld [vmem:[#allocation5 + $0x178] sm:$0xff] }
  0xc0   :  { %4367 = vmatpush1.bf16.msra.mxu1 %v6917_v5 }
  0xc1   :  { %4369 = vmatprep.subr.bf16.mxu1 %v6924_v58 }
  0xc2   :  { %4303 = vmatpush1.bf16.msra.mxu0 %v6914_v62  ;;  %v656_v62 = vld [vmem:[#allocation5 + $0x168] sm:$0xff] }
  0xc3   :  { %4305 = vmatprep.subr.bf16.mxu0 %v6922_v14 }
  0xc4   :  { %4371 = vmatpush1.bf16.msra.mxu1 %v6929_v38  ;;  %v846_v38 = vld [vmem:[#allocation5 + $0x758] sm:$0xff] }
  0xc5   :  { %4373 = vmatprep.subr.bf16.mxu1 %v6936_v1  ;;  %v844_v1 = vld [vmem:[#allocation5 + $0x748] sm:$0xff] }
  0xc6   :  { %4307 = vmatpush1.bf16.msra.mxu0 %v6926_v63  ;;  %v6957_v18 = vpack.c.bf16 %v844_v1, %v836_v13  ;;  %v851_v13 = vld [vmem:[#allocation5 + $0x780] sm:$0xff] }
  0xc7   :  { %4309 = vmatprep.subr.bf16.mxu0 %v6934_v50  ;;  %v838_v50 = vld [vmem:[#allocation5 + $0x718] sm:$0xff] }
  0xc8   :  { %4375 = vmatpush1.bf16.msra.mxu1 %v6941_v17  ;;  %8661 = vst [vmem:[#allocation75_spill] sm:$0xff] %v6957_v18  ;;  %v6959_v22 = vpack.c.bf16 %v846_v38, %v838_v50  ;;  %v854_v38 = vld [vmem:[#allocation5 + $0x798] sm:$0xff]  ;;  %v859_v17 = vld [vmem:[#allocation5 + $0x7c0] sm:$0xff] }
  0xc9   :  { %4377 = vmatprep.subr.bf16.mxu1 %v6948_v51  ;;  %v862_v50 = vld [vmem:[#allocation5 + $0x7d8] sm:$0xff]  ;;  %v6973_v2 = vpack.c.bf16 %v859_v17, %v851_v13 }
  0xca   :  { %4311 = vmatpush1.bf16.msra.mxu0 %v6938_v6  ;;  %v6953_v6 = vpack.c.bf16 %v829_v9, %v821_v0  ;;  %8662 = vst [vmem:[#allocation76_spill] sm:$0xff] %v6959_v22  ;;  %v845_v0 = vld [vmem:[#allocation5 + $0x750] sm:$0xff]  ;;  %v852_v9 = vld [vmem:[#allocation5 + $0x788] sm:$0xff] }
  0xcb   :  { %4313 = vmatprep.subr.bf16.mxu0 %v6946_v34  ;;  %v860_v34 = vld [vmem:[#allocation5 + $0x7c8] sm:$0xff]  ;;  %v6966_v51 = vpack.c.bf16 %v845_v0, %v837_v43  ;;  %8667 = vst [vmem:[#allocation81_spill] sm:$0xff] %v6973_v2 }
  0xcc   :  { %8660 = vst [vmem:[#allocation74_spill] sm:$0xff] %v6953_v6  ;;  %4379 = vmatpush1.bf16.msra.mxu1 %v6953_v6  ;;  %v6968_v1 = vpack.c.bf16 %v860_v34, %v852_v9  ;;  %v853_v6 = vld [vmem:[#allocation5 + $0x790] sm:$0xff]  ;;  %v616_v34 = vld [vmem:[#allocation5 + $0x28] sm:$0xff]  ;;  %v618_v9 = vld [vmem:[#allocation5 + $0x38] sm:$0xff] }
  0xcd   :  { %4381 = vmatprep.subr.bf16.mxu1 %v6959_v22  ;;  %8664 = vst [vmem:[#allocation78_spill] sm:$0xff] %v6966_v51  ;;  %v6977_v43 = vpack.c.bf16 %v861_v27, %v853_v6  ;;  %v624_v0 = vld [vmem:[#allocation5 + $0x68] sm:$0xff]  ;;  %v231_v6 = vlaneseq }
  0xce   :  { %4315 = vmatpush1.bf16.msra.mxu0 %v6950_v55  ;;  %8665 = vst [vmem:[#allocation79_spill] sm:$0xff] %v6968_v1  ;;  %v6970_v55 = vpack.c.bf16 %v862_v50, %v854_v38  ;;  %v6982_v38 = vpack.c.bf16 %v624_v0, %v616_v34  ;;  %v626_v50 = vld [vmem:[#allocation5 + $0x78] sm:$0xff] }
  0xcf   :  { %4317 = vmatprep.subr.bf16.mxu0 %v6957_v18  ;;  %8668 = vst [vmem:[#allocation82_spill] sm:$0xff] %v6977_v43  ;;  %v6984_v17 = vpack.c.bf16 %v626_v50, %v618_v9  ;;  %v6988_v13 = vshrl.u32 %v231_v6, 7 }
  0xd0   :  { %8666 = vst [vmem:[#allocation80_spill] sm:$0xff] %v6970_v55  ;;  %4383 = vmatpush1.bf16.msra.mxu1 %v6966_v51  ;;  %8669 = vst [vmem:[#allocation83_spill] sm:$0xff] %v6982_v38 }
  0xd1   :  { %4385 = vmatprep.subr.bf16.mxu1 %v6970_v55  ;;  %8670 = vst [vmem:[#allocation84_spill] sm:$0xff] %v6984_v17  ;;  %8671 = vst [vmem:[#allocation85_spill] sm:$0xff] %v6988_v13  ;;  %v6991_v27 = vsub.s32 0, %v6988_v13  ;;  %v6997_v34 = vsub.s32 1, %v6988_v13  ;;  %v245_v6 = vsub.s32 3, %v6988_v13  ;;  %v241_v51 = vsub.s32 2, %v6988_v13 }
  0xd2   :  { %4319 = vmatpush1.bf16.msra.mxu0 %v6962_v46 }
  0xd3   :  { %4321 = vmatprep.subr.bf16.mxu0 %v6968_v1  ;;  %8672 = vst [vmem:[#allocation86_spill] sm:$0xff] %v6991_v27  ;;  %8673 = vst [vmem:[#allocation87_spill] sm:$0xff] %v6997_v34 }
  0xd4   :  { %4387 = vmatpush1.bf16.msra.mxu1 %v6977_v43 }
  0xd5   :  { %4453 = vmatprep.subr.bf16.mxu1 %v6984_v17 }
  0xd6   :  { %4323 = vmatpush1.bf16.msra.mxu0 %v6973_v2  ;;  %v229_v2 = vld [vmem:[%s8267_s3] sm:$0xff]  ;;  %s6622_s3 = smov [#allocation10]  }
  0xd7   :  { %4389 = vmatprep.subr.bf16.mxu0 %v6982_v38  ;;  %v234_v0 = vrot.slane %v229_v2, %v6991_v27  ;;  %v238_v9 = vrot.slane %v229_v2, %v6997_v34  ;;  %v246_v22 = vrot.slane %v229_v2, %v245_v6  ;;  %v242_v63 = vrot.slane %v229_v2, %v241_v51  ;;  %s4021_s25 = sshll.u32 %s6622_s3, 4  ;;  %s4022_s25 = int_to_ptr.vmem [resolvable:$true] %s4021_s25 }
  0xd8   :  { %s6537_s11 = scalar_lea.vmem %s4022_s25, 512  ;;  %p6542_p5 = scmp.lt.s32.totalorder %s4022_s25, %s4022_s25 }
  0xd9   :  { %p6538_p4 = scmp.ne.s32.totalorder %s4022_s25, %s6537_s11  ;;  %p6543_p6 = scmp.lt.s32.totalorder %s6537_s11, %s6537_s11 }
  0xdb   :  { %p6544_p7 = por %p6543_p6, %p6542_p5 }
  0xdd   :  { %p6545_p8 = pnand %p6544_p7, %p6538_p4 }
 0x144   :  { %v369_v50 = vpop.f32.mrb[0].mxu0 }
 0x145   :  { %v7001_v38 = vadd.f32 %v369_v50, %v234_v0  ;;  %v371_v17 = vpop.f32.mrb[1].mxu0 }
 0x146   :  { %v7004_v43 = vadd.f32 %v371_v17, %v238_v9 }
 0x147   :  { %8674 = vst [vmem:[#allocation88_spill] sm:$0xff] %v7001_v38  ;;  %v4078_v55 = vmul.f32 -1.442695, %v7001_v38  ;;  %v446_v18 = vpop.f32.mrb[0].mxu1 }
 0x148   :  { %8675 = vst [vmem:[#allocation89_spill] sm:$0xff] %v7004_v43  ;;  %v4079_v1 = vmul.f32 -1.442695, %v7004_v43  ;;  %v375_v46 = vpop.f32.mrb[2].mxu0  ;;  %v448_v58 = vpop.f32.mrb[1].mxu1  ;;  %v7016_v43 = vadd.f32 %v446_v18, %v242_v63 }
 0x149   :  { %6193 = vpow2.f32 %v4078_v55  ;;  %v7009_v27 = vadd.f32 %v375_v46, %v234_v0  ;;  %v377_v34 = vpop.f32.mrb[3].mxu0  ;;  %v7013_v17 = vadd.f32 %v448_v58, %v246_v22 }
 0x14a   :  { %6195 = vpow2.f32 %v4079_v1  ;;  %v7011_v50 = vadd.f32 %v377_v34, %v238_v9  ;;  %8679 = vst [vmem:[#allocation93_spill] sm:$0xff] %v7016_v43  ;;  %v249_v9 = vsub.s32 4, %v6988_v13 }
 0x14b   :  { %8676 = vst [vmem:[#allocation90_spill] sm:$0xff] %v7009_v27  ;;  %8678 = vst [vmem:[#allocation92_spill] sm:$0xff] %v7013_v17  ;;  %v4080_v38 = vmul.f32 -1.442695, %v7013_v17  ;;  %v452_v14 = vpop.f32.mrb[2].mxu1 }
 0x14c   :  { %8677 = vst [vmem:[#allocation91_spill] sm:$0xff] %v7011_v50  ;;  %v7018_v5 = vadd.f32 %v452_v14, %v242_v63  ;;  %v454_v55 = vpop.f32.mrb[3].mxu1  ;;  %v253_v14 = vsub.s32 5, %v6988_v13 }
 0x14d   :  { %v7020_v6 = vadd.f32 %v454_v55, %v246_v22  ;;  %6197 = vpow2.f32 %v4080_v38 }
 0x14e   :  { %8680 = vst [vmem:[#allocation94_spill] sm:$0xff] %v7018_v5  ;;  %6199 = vtanh.f32 %v7016_v43  ;;  %v250_v5 = vrot.slane %v229_v2, %v249_v9 }
 0x14f   :  { %8681 = vst [vmem:[#allocation95_spill] sm:$0xff] %v7020_v6 }
 0x153   :  { %v6194_v46 = vpop.eup %6193 }
 0x154   :  { %v6196_v1 = vpop.eup %6195  ;;  %v882_v34 = vadd.f32 1.0, %v6194_v46  ;;  %v254_v46 = vrot.slane %v229_v2, %v253_v14 }
 0x155   :  { %v888_v51 = vadd.f32 1.0, %v6196_v1  ;;  %v257_v1 = vsub.s32 6, %v6988_v13 }
 0x156   :  { %6201 = vrcp.f32 %v882_v34 }
 0x157   :  { %6203 = vrcp.f32 %v888_v51  ;;  %v6198_v58 = vpop.eup %6197 }
 0x158   :  { %v6200_v0 = vpop.eup %6199  ;;  %v895_v50 = vadd.f32 1.0, %v6198_v58  ;;  %v261_v58 = vsub.s32 7, %v6988_v13 }
 0x15a   :  { %6205 = vrcp.f32 %v895_v50 }
 0x160   :  { %v6202_v18 = vpop.eup %6201 }
 0x161   :  { %v6204_v63 = vpop.eup %6203  ;;  %v899_v22 = vmul.f32 %v6202_v18, %v6200_v0  ;;  %v258_v0 = vrot.slane %v229_v2, %v257_v1 }
 0x162   :  { %v898_v55 = vmul.f32 0.0, %v6204_v63  ;;  %v262_v63 = vrot.slane %v229_v2, %v261_v58 }
 0x164   :  { %v7025_v38 = vadd.f32 %v899_v22, %v898_v55  ;;  %v6206_v55 = vpop.eup %6205 }
 0x166   :  { %8682 = vst [vmem:[#allocation96_spill] sm:$0xff] %v7025_v38  ;;  %v523_v6 = vpop.f32.mrb[4].mxu0  ;;  %6207 = vtanh.f32 %v7025_v38 }
 0x167   :  { %v7029_v34 = vadd.f32 %v523_v6, %v250_v5  ;;  %v525_v51 = vpop.f32.mrb[5].mxu0 }
 0x168   :  { %v7032_v27 = vadd.f32 %v525_v51, %v254_v46 }
 0x169   :  { %8683 = vst [vmem:[#allocation97_spill] sm:$0xff] %v7029_v34  ;;  %v600_v22 = vpop.f32.mrb[4].mxu1 }
 0x16a   :  { %8684 = vst [vmem:[#allocation98_spill] sm:$0xff] %v7032_v27  ;;  %v529_v43 = vpop.f32.mrb[6].mxu0  ;;  %v7040_v34 = vadd.f32 %v600_v22, %v258_v0  ;;  %v602_v38 = vpop.f32.mrb[5].mxu1 }
 0x16b   :  { %v7034_v18 = vadd.f32 %v529_v43, %v250_v5  ;;  %v531_v9 = vpop.f32.mrb[7].mxu0  ;;  %v7044_v27 = vadd.f32 %v602_v38, %v262_v63 }
 0x16c   :  { %v7036_v50 = vadd.f32 %v531_v9, %v254_v46  ;;  %8687 = vst [vmem:[#allocation101_spill] sm:$0xff] %v7040_v34 }
 0x16d   :  { %8685 = vst [vmem:[#allocation99_spill] sm:$0xff] %v7034_v18  ;;  %v8338_v14 = vrot.slane %v7034_v18, 6  ;;  %8688 = vst [vmem:[#allocation102_spill] sm:$0xff] %v7044_v27  ;;  %v606_v43 = vpop.f32.mrb[6].mxu1  ;;  %v642_v18 = vld [vmem:[#allocation5 + $0xf8] sm:$0xff] }
 0x16e   :  { %8686 = vst [vmem:[#allocation100_spill] sm:$0xff] %v7036_v50  ;;  %v8339_v6 = vrot.slane %v7036_v50, 6  ;;  %v608_v1 = vpop.f32.mrb[7].mxu1  ;;  %v7053_v9 = vadd.f32 %v606_v43, %v258_v0  ;;  %v634_v50 = vld [vmem:[#allocation5 + $0xb8] sm:$0xff] }
 0x16f   :  { %v4081_v51 = vmul.f32 -1.442695, %v8338_v14  ;;  %v7050_v58 = vadd.f32 %v608_v1, %v262_v63  ;;  %v7070_v17 = vpack.c.bf16 %v642_v18, %v634_v50  ;;  %v7082_v50 = vpack.c.bf16 %v658_v49, %v650_v59  ;;  %v663_v49 = vld [vmem:[#allocation5 + $0x1a0] sm:$0xff] }
 0x170   :  { %v6208_v5 = vpop.eup %6207  ;;  %v4082_v2 = vmul.f32 -1.442695, %v8339_v6  ;;  %8690 = vst [vmem:[#allocation104_spill] sm:$0xff] %v7053_v9  ;;  %v8347_v14 = vrot.slane %v7053_v9, 6  ;;  %v617_v9 = vld [vmem:[#allocation5 + $0x30] sm:$0xff]  ;;  %v671_v59 = vld [vmem:[#allocation5 + $0x1e0] sm:$0xff] }
 0x171   :  { %6209 = vpow2.f32 %v4081_v51  ;;  %v7048_v46 = vmul.f32 %v6208_v5, %v6206_v55  ;;  %8689 = vst [vmem:[#allocation103_spill] sm:$0xff] %v7050_v58  ;;  %v8342_v22 = vrot.slane %v7050_v58, 6  ;;  %v623_v58 = vld [vmem:[#allocation5 + $0x60] sm:$0xff]  ;;  %8694 = vst [vmem:[#allocation108_spill] sm:$0xff] %v7070_v17 }
 0x172   :  { %6211 = vpow2.f32 %v4082_v2  ;;  %8698 = vst [vmem:[#allocation112_spill] sm:$0xff] %v7082_v50 }
 0x173   :  { %927 = vst [vmem:[#allocation10] sm:$0x3] %v7048_v46  ;;  %v4083_v38 = vmul.f32 -1.442695, %v8342_v22 }
 0x175   :  { %6213 = vpow2.f32 %v4083_v38  ;;  %v615_v38 = vld [vmem:[#allocation5 + $0x20] sm:$0xff] }
 0x176   :  { %6215 = vtanh.f32 %v8347_v14  ;;  %v625_v14 = vld [vmem:[#allocation5 + $0x70] sm:$0xff] }
 0x17b   :  { %v6210_v6 = vpop.eup %6209 }
 0x17c   :  { %v6212_v51 = vpop.eup %6211  ;;  %v906_v55 = vadd.f32 1.0, %v6210_v6 }
 0x17d   :  { %v912_v63 = vadd.f32 1.0, %v6212_v51  ;;  %v632_v51 = vld [vmem:[#allocation5 + $0xa8] sm:$0xff] }
 0x17e   :  { %6217 = vrcp.f32 %v906_v55 }
 0x17f   :  { %6219 = vrcp.f32 %v912_v63  ;;  %v6214_v5 = vpop.eup %6213  ;;  %v640_v63 = vld [vmem:[#allocation5 + $0xe8] sm:$0xff] }
 0x180   :  { %v6216_v0 = vpop.eup %6215  ;;  %v919_v43 = vadd.f32 1.0, %v6214_v5  ;;  %v7064_v5 = vpack.c.bf16 %v623_v58, %v615_v38  ;;  %v655_v38 = vld [vmem:[#allocation5 + $0x160] sm:$0xff] }
 0x182   :  { %6221 = vrcp.f32 %v919_v43  ;;  %v641_v43 = vld [vmem:[#allocation5 + $0xf0] sm:$0xff] }
 0x188   :  { %v6218_v2 = vpop.eup %6217 }
 0x189   :  { %v6220_v1 = vpop.eup %6219  ;;  %v923_v34 = vmul.f32 %v6218_v2, %v6216_v0  ;;  %v7066_v0 = vpack.c.bf16 %v625_v14, %v617_v9  ;;  %v633_v2 = vld [vmem:[#allocation5 + $0xb0] sm:$0xff]  ;;  %v647_v9 = vld [vmem:[#allocation5 + $0x120] sm:$0xff] }
 0x18a   :  { %v922_v27 = vmul.f32 0.0, %v6220_v1  ;;  %v648_v1 = vld [vmem:[#allocation5 + $0x128] sm:$0xff]  ;;  %v7078_v58 = vpack.c.bf16 %v641_v43, %v633_v2  ;;  %v7088_v2 = vpack.c.bf16 %v655_v38, %v647_v9  ;;  %v7100_v9 = vpack.c.bf16 %v671_v59, %v663_v49  ;;  %v695_v59 = vld [vmem:[#allocation5 + $0x2a0] sm:$0xff] }
 0x18b   :  { %8692 = vst [vmem:[#allocation106_spill] sm:$0xff] %v7066_v0  ;;  %v7080_v18 = vpack.c.bf16 %v656_v62, %v648_v1  ;;  %v665_v1 = vld [vmem:[#allocation5 + $0x1b0] sm:$0xff] }
 0x18c   :  { %v7061_v22 = vadd.f32 %v923_v34, %v922_v27  ;;  %v6222_v6 = vpop.eup %6221  ;;  %v631_v27 = vld [vmem:[#allocation5 + $0xa0] sm:$0xff]  ;;  %8696 = vst [vmem:[#allocation110_spill] sm:$0xff] %v7078_v58  ;;  %8699 = vst [vmem:[#allocation113_spill] sm:$0xff] %v7088_v2 }
 0x18d   :  { %v639_v34 = vld [vmem:[#allocation5 + $0xe0] sm:$0xff]  ;;  %8697 = vst [vmem:[#allocation111_spill] sm:$0xff] %v7080_v18  ;;  %8703 = vst [vmem:[#allocation117_spill] sm:$0xff] %v7100_v9 }
 0x18e   :  { %8691 = vst [vmem:[#allocation105_spill] sm:$0xff] %v7061_v22  ;;  %6223 = vtanh.f32 %v7061_v22  ;;  %v7068_v22 = vpack.c.bf16 %v640_v63, %v632_v51  ;;  %v7076_v14 = vpack.c.bf16 %v639_v34, %v631_v27  ;;  %v657_v51 = vld [vmem:[#allocation5 + $0x170] sm:$0xff]  ;;  %v672_v63 = vld [vmem:[#allocation5 + $0x1e8] sm:$0xff]  ;;  %v666_v27 = vld [vmem:[#allocation5 + $0x1b8] sm:$0xff] }
 0x18f   :  { %v674_v34 = vld [vmem:[#allocation5 + $0x1f8] sm:$0xff] }
 0x190   :  { %8693 = vst [vmem:[#allocation107_spill] sm:$0xff] %v7068_v22  ;;  %8695 = vst [vmem:[#allocation109_spill] sm:$0xff] %v7076_v14  ;;  %v7096_v43 = vpack.c.bf16 %v674_v34, %v666_v27  ;;  %v681_v27 = vld [vmem:[#allocation5 + $0x230] sm:$0xff] }
 0x191   :  { %v689_v34 = vld [vmem:[#allocation5 + $0x270] sm:$0xff] }
 0x192   :  { %8702 = vst [vmem:[#allocation116_spill] sm:$0xff] %v7096_v43  ;;  %v7114_v49 = vpack.c.bf16 %v689_v34, %v681_v27  ;;  %v711_v27 = vld [vmem:[#allocation5 + $0x320] sm:$0xff] }
 0x193   :  { %v719_v34 = vld [vmem:[#allocation5 + $0x360] sm:$0xff] }
 0x194   :  { %8708 = vst [vmem:[#allocation122_spill] sm:$0xff] %v7114_v49 }
 0x198   :  { %v6224_v55 = vpop.eup %6223 }
 0x199   :  { %v926_v13 = vmul.f32 %v6224_v55, %v6222_v6  ;;  %v649_v6 = vld [vmem:[#allocation5 + $0x130] sm:$0xff]  ;;  %v664_v55 = vld [vmem:[#allocation5 + $0x1a8] sm:$0xff] }
 0x19a   :  { %v7090_v62 = vpack.c.bf16 %v657_v51, %v649_v6  ;;  %v679_v6 = vld [vmem:[#allocation5 + $0x220] sm:$0xff] }
 0x19b   :  { %929 = vst [vmem:[#allocation10 + $0x1e] sm:$0x3] %v926_v13  ;;  %1002 = vmatprep.mubr.f32.mxu0 %v926_v13  ;;  %1073 = vmatprep.mubr.f32.mxu1 %v926_v13  ;;  %v687_v51 = vld [vmem:[#allocation5 + $0x260] sm:$0xff] }
 0x19c   :  { %1003 = vmatmul.mubr.f32.vlgmr.msra.gmra.mrb[8].mxu0 %v7048_v46  ;;  %1074 = vmatmul.mubr.f32.vlgmr.msra.gmra.mrb[8].mxu1 %v7048_v46  ;;  %8700 = vst [vmem:[#allocation114_spill] sm:$0xff] %v7090_v62 }
 0x19d   :  { %4391 = vmatpush1.bf16.msra.mxu0 %v7064_v5  ;;  %4455 = vmatpush1.bf16.msra.mxu1 %v7066_v0  ;;  %v682_v0 = vld [vmem:[#allocation5 + $0x238] sm:$0xff] }
 0x19e   :  { %1144 = vmatprep.mubr.f32.mxu0 %v926_v13  ;;  %1215 = vmatprep.mubr.f32.mxu1 %v926_v13  ;;  %v7094_v13 = vpack.c.bf16 %v672_v63, %v664_v55 }
 0x19f   :  { %4393 = vmatprep.subr.bf16.mxu0 %v7068_v22  ;;  %4457 = vmatprep.subr.bf16.mxu1 %v7070_v17  ;;  %v673_v17 = vld [vmem:[#allocation5 + $0x1f0] sm:$0xff]  ;;  %v680_v22 = vld [vmem:[#allocation5 + $0x228] sm:$0xff] }
 0x1a0   :  { %8701 = vst [vmem:[#allocation115_spill] sm:$0xff] %v7094_v13  ;;  %v7102_v38 = vpack.c.bf16 %v673_v17, %v665_v1  ;;  %v7112_v17 = vpack.c.bf16 %v687_v51, %v679_v6  ;;  %v703_v1 = vld [vmem:[#allocation5 + $0x2e0] sm:$0xff] }
 0x1a1   :  { %4395 = vmatpush1.bf16.msra.mxu0 %v7076_v14  ;;  %4459 = vmatpush1.bf16.msra.mxu1 %v7078_v58  ;;  %v688_v14 = vld [vmem:[#allocation5 + $0x268] sm:$0xff]  ;;  %v690_v58 = vld [vmem:[#allocation5 + $0x278] sm:$0xff]  ;;  %v7124_v6 = vpack.c.bf16 %v703_v1, %v695_v59  ;;  %v7136_v59 = vpack.c.bf16 %v719_v34, %v711_v27 }
 0x1a2   :  { %4397 = vmatprep.subr.bf16.mxu0 %v7080_v18  ;;  %4461 = vmatprep.subr.bf16.mxu1 %v7082_v50  ;;  %8704 = vst [vmem:[#allocation118_spill] sm:$0xff] %v7102_v38  ;;  %v7106_v55 = vpack.c.bf16 %v688_v14, %v680_v22  ;;  %v7108_v63 = vpack.c.bf16 %v690_v58, %v682_v0  ;;  %v696_v50 = vld [vmem:[#allocation5 + $0x2a8] sm:$0xff]  ;;  %v698_v18 = vld [vmem:[#allocation5 + $0x2b8] sm:$0xff]  ;;  %8707 = vst [vmem:[#allocation121_spill] sm:$0xff] %v7112_v17 }
 0x1a3   :  { %v697_v14 = vld [vmem:[#allocation5 + $0x2b0] sm:$0xff]  ;;  %8711 = vst [vmem:[#allocation125_spill] sm:$0xff] %v7124_v6  ;;  %8715 = vst [vmem:[#allocation129_spill] sm:$0xff] %v7136_v59 }
 0x1a4   :  { %8705 = vst [vmem:[#allocation119_spill] sm:$0xff] %v7106_v55  ;;  %8706 = vst [vmem:[#allocation120_spill] sm:$0xff] %v7108_v63  ;;  %v705_v58 = vld [vmem:[#allocation5 + $0x2f0] sm:$0xff] }
 0x1a5   :  { %4399 = vmatpush1.bf16.msra.mxu0 %v7088_v2  ;;  %4463 = vmatpush1.bf16.msra.mxu1 %v7090_v62  ;;  %v704_v2 = vld [vmem:[#allocation5 + $0x2e8] sm:$0xff]  ;;  %v706_v62 = vld [vmem:[#allocation5 + $0x2f8] sm:$0xff]  ;;  %v7126_v51 = vpack.c.bf16 %v705_v58, %v697_v14  ;;  %v727_v14 = vld [vmem:[#allocation5 + $0x3a0] sm:$0xff] }
 0x1a6   :  { %4401 = vmatprep.subr.bf16.mxu0 %v7094_v13  ;;  %4465 = vmatprep.subr.bf16.mxu1 %v7096_v43  ;;  %v7118_v22 = vpack.c.bf16 %v704_v2, %v696_v50  ;;  %v7120_v0 = vpack.c.bf16 %v706_v62, %v698_v18  ;;  %v712_v43 = vld [vmem:[#allocation5 + $0x328] sm:$0xff]  ;;  %v714_v13 = vld [vmem:[#allocation5 + $0x338] sm:$0xff]  ;;  %v713_v2 = vld [vmem:[#allocation5 + $0x330] sm:$0xff] }
 0x1a7   :  { %8712 = vst [vmem:[#allocation126_spill] sm:$0xff] %v7126_v51  ;;  %v721_v62 = vld [vmem:[#allocation5 + $0x370] sm:$0xff]  ;;  %v735_v58 = vld [vmem:[#allocation5 + $0x3e0] sm:$0xff] }
 0x1a8   :  { %8709 = vst [vmem:[#allocation123_spill] sm:$0xff] %v7118_v22  ;;  %8710 = vst [vmem:[#allocation124_spill] sm:$0xff] %v7120_v0  ;;  %v7138_v1 = vpack.c.bf16 %v721_v62, %v713_v2  ;;  %v7148_v27 = vpack.c.bf16 %v735_v58, %v727_v14  ;;  %v743_v2 = vld [vmem:[#allocation5 + $0x420] sm:$0xff] }
 0x1a9   :  { %4403 = vmatpush1.bf16.msra.mxu0 %v7100_v9  ;;  %4467 = vmatpush1.bf16.msra.mxu1 %v7102_v38  ;;  %v720_v9 = vld [vmem:[#allocation5 + $0x368] sm:$0xff]  ;;  %v722_v38 = vld [vmem:[#allocation5 + $0x378] sm:$0xff]  ;;  %v751_v62 = vld [vmem:[#allocation5 + $0x460] sm:$0xff] }
 0x1aa   :  { %4405 = vmatprep.subr.bf16.mxu0 %v7106_v55  ;;  %4469 = vmatprep.subr.bf16.mxu1 %v7108_v63  ;;  %v7130_v18 = vpack.c.bf16 %v720_v9, %v712_v43  ;;  %v7132_v50 = vpack.c.bf16 %v722_v38, %v714_v13  ;;  %v728_v63 = vld [vmem:[#allocation5 + $0x3a8] sm:$0xff]  ;;  %v730_v55 = vld [vmem:[#allocation5 + $0x3b8] sm:$0xff]  ;;  %8716 = vst [vmem:[#allocation130_spill] sm:$0xff] %v7138_v1  ;;  %v729_v9 = vld [vmem:[#allocation5 + $0x3b0] sm:$0xff] }
 0x1ab   :  { %v737_v38 = vld [vmem:[#allocation5 + $0x3f0] sm:$0xff]  ;;  %8719 = vst [vmem:[#allocation133_spill] sm:$0xff] %v7148_v27  ;;  %v7160_v14 = vpack.c.bf16 %v751_v62, %v743_v2 }
 0x1ac   :  { %8713 = vst [vmem:[#allocation127_spill] sm:$0xff] %v7130_v18  ;;  %8714 = vst [vmem:[#allocation128_spill] sm:$0xff] %v7132_v50  ;;  %v7150_v34 = vpack.c.bf16 %v737_v38, %v729_v9  ;;  %v759_v9 = vld [vmem:[#allocation5 + $0x4a0] sm:$0xff] }
 0x1ad   :  { %4407 = vmatpush1.bf16.msra.mxu0 %v7112_v17  ;;  %4471 = vmatpush1.bf16.msra.mxu1 %v7114_v49  ;;  %v736_v17 = vld [vmem:[#allocation5 + $0x3e8] sm:$0xff]  ;;  %v738_v49 = vld [vmem:[#allocation5 + $0x3f8] sm:$0xff]  ;;  %8723 = vst [vmem:[#allocation137_spill] sm:$0xff] %v7160_v14  ;;  %v767_v38 = vld [vmem:[#allocation5 + $0x4e0] sm:$0xff] }
 0x1ae   :  { %4409 = vmatprep.subr.bf16.mxu0 %v7118_v22  ;;  %4473 = vmatprep.subr.bf16.mxu1 %v7120_v0  ;;  %v7142_v13 = vpack.c.bf16 %v736_v17, %v728_v63  ;;  %v7144_v43 = vpack.c.bf16 %v738_v49, %v730_v55  ;;  %v744_v0 = vld [vmem:[#allocation5 + $0x428] sm:$0xff]  ;;  %v746_v22 = vld [vmem:[#allocation5 + $0x438] sm:$0xff]  ;;  %8720 = vst [vmem:[#allocation134_spill] sm:$0xff] %v7150_v34  ;;  %v745_v17 = vld [vmem:[#allocation5 + $0x430] sm:$0xff] }
 0x1af   :  { %v753_v49 = vld [vmem:[#allocation5 + $0x470] sm:$0xff]  ;;  %v7172_v2 = vpack.c.bf16 %v767_v38, %v759_v9 }
 0x1b0   :  { %8717 = vst [vmem:[#allocation131_spill] sm:$0xff] %v7142_v13  ;;  %8718 = vst [vmem:[#allocation132_spill] sm:$0xff] %v7144_v43  ;;  %v7162_v58 = vpack.c.bf16 %v753_v49, %v745_v17  ;;  %v775_v17 = vld [vmem:[#allocation5 + $0x520] sm:$0xff] }
 0x1b1   :  { %4411 = vmatpush1.bf16.msra.mxu0 %v7124_v6  ;;  %4475 = vmatpush1.bf16.msra.mxu1 %v7126_v51  ;;  %v752_v6 = vld [vmem:[#allocation5 + $0x468] sm:$0xff]  ;;  %v754_v51 = vld [vmem:[#allocation5 + $0x478] sm:$0xff]  ;;  %8727 = vst [vmem:[#allocation141_spill] sm:$0xff] %v7172_v2  ;;  %v783_v49 = vld [vmem:[#allocation5 + $0x560] sm:$0xff] }
 0x1b2   :  { %4413 = vmatprep.subr.bf16.mxu0 %v7130_v18  ;;  %4477 = vmatprep.subr.bf16.mxu1 %v7132_v50  ;;  %v7154_v55 = vpack.c.bf16 %v752_v6, %v744_v0  ;;  %v7156_v63 = vpack.c.bf16 %v754_v51, %v746_v22  ;;  %v760_v50 = vld [vmem:[#allocation5 + $0x4a8] sm:$0xff]  ;;  %v762_v18 = vld [vmem:[#allocation5 + $0x4b8] sm:$0xff]  ;;  %8724 = vst [vmem:[#allocation138_spill] sm:$0xff] %v7162_v58  ;;  %v761_v6 = vld [vmem:[#allocation5 + $0x4b0] sm:$0xff] }
 0x1b3   :  { %v769_v51 = vld [vmem:[#allocation5 + $0x4f0] sm:$0xff]  ;;  %v7184_v9 = vpack.c.bf16 %v783_v49, %v775_v17 }
 0x1b4   :  { %8721 = vst [vmem:[#allocation135_spill] sm:$0xff] %v7154_v55  ;;  %8722 = vst [vmem:[#allocation136_spill] sm:$0xff] %v7156_v63  ;;  %v7174_v62 = vpack.c.bf16 %v769_v51, %v761_v6  ;;  %v791_v6 = vld [vmem:[#allocation5 + $0x5a0] sm:$0xff] }
 0x1b5   :  { %4415 = vmatpush1.bf16.msra.mxu0 %v7136_v59  ;;  %4479 = vmatpush1.bf16.msra.mxu1 %v7138_v1  ;;  %v768_v59 = vld [vmem:[#allocation5 + $0x4e8] sm:$0xff]  ;;  %v770_v1 = vld [vmem:[#allocation5 + $0x4f8] sm:$0xff]  ;;  %8731 = vst [vmem:[#allocation145_spill] sm:$0xff] %v7184_v9  ;;  %v799_v51 = vld [vmem:[#allocation5 + $0x5e0] sm:$0xff] }
 0x1b6   :  { %4417 = vmatprep.subr.bf16.mxu0 %v7142_v13  ;;  %4481 = vmatprep.subr.bf16.mxu1 %v7144_v43  ;;  %v7166_v22 = vpack.c.bf16 %v768_v59, %v760_v50  ;;  %v7168_v0 = vpack.c.bf16 %v770_v1, %v762_v18  ;;  %v776_v43 = vld [vmem:[#allocation5 + $0x528] sm:$0xff]  ;;  %v778_v13 = vld [vmem:[#allocation5 + $0x538] sm:$0xff]  ;;  %8728 = vst [vmem:[#allocation142_spill] sm:$0xff] %v7174_v62  ;;  %v777_v59 = vld [vmem:[#allocation5 + $0x530] sm:$0xff] }
 0x1b7   :  { %v785_v1 = vld [vmem:[#allocation5 + $0x570] sm:$0xff]  ;;  %v7196_v17 = vpack.c.bf16 %v799_v51, %v791_v6 }
 0x1b8   :  { %8725 = vst [vmem:[#allocation139_spill] sm:$0xff] %v7166_v22  ;;  %8726 = vst [vmem:[#allocation140_spill] sm:$0xff] %v7168_v0  ;;  %v7186_v38 = vpack.c.bf16 %v785_v1, %v777_v59  ;;  %v807_v59 = vld [vmem:[#allocation5 + $0x620] sm:$0xff] }
 0x1b9   :  { %4419 = vmatpush1.bf16.msra.mxu0 %v7148_v27  ;;  %4483 = vmatpush1.bf16.msra.mxu1 %v7150_v34  ;;  %v784_v27 = vld [vmem:[#allocation5 + $0x568] sm:$0xff]  ;;  %v786_v34 = vld [vmem:[#allocation5 + $0x578] sm:$0xff]  ;;  %8735 = vst [vmem:[#allocation149_spill] sm:$0xff] %v7196_v17  ;;  %v815_v1 = vld [vmem:[#allocation5 + $0x660] sm:$0xff] }
 0x1ba   :  { %4421 = vmatprep.subr.bf16.mxu0 %v7154_v55  ;;  %4485 = vmatprep.subr.bf16.mxu1 %v7156_v63  ;;  %v7178_v18 = vpack.c.bf16 %v784_v27, %v776_v43  ;;  %v7180_v50 = vpack.c.bf16 %v786_v34, %v778_v13  ;;  %v792_v63 = vld [vmem:[#allocation5 + $0x5a8] sm:$0xff]  ;;  %v794_v55 = vld [vmem:[#allocation5 + $0x5b8] sm:$0xff]  ;;  %8732 = vst [vmem:[#allocation146_spill] sm:$0xff] %v7186_v38  ;;  %v793_v27 = vld [vmem:[#allocation5 + $0x5b0] sm:$0xff] }
 0x1bb   :  { %v801_v34 = vld [vmem:[#allocation5 + $0x5f0] sm:$0xff]  ;;  %v7208_v6 = vpack.c.bf16 %v815_v1, %v807_v59 }
 0x1bc   :  { %8729 = vst [vmem:[#allocation143_spill] sm:$0xff] %v7178_v18  ;;  %8730 = vst [vmem:[#allocation144_spill] sm:$0xff] %v7180_v50  ;;  %v7198_v49 = vpack.c.bf16 %v801_v34, %v793_v27  ;;  %v823_v27 = vld [vmem:[#allocation5 + $0x6a0] sm:$0xff] }
 0x1bd   :  { %4423 = vmatpush1.bf16.msra.mxu0 %v7160_v14  ;;  %4487 = vmatpush1.bf16.msra.mxu1 %v7162_v58  ;;  %v800_v14 = vld [vmem:[#allocation5 + $0x5e8] sm:$0xff]  ;;  %v802_v58 = vld [vmem:[#allocation5 + $0x5f8] sm:$0xff]  ;;  %8739 = vst [vmem:[#allocation153_spill] sm:$0xff] %v7208_v6  ;;  %v831_v34 = vld [vmem:[#allocation5 + $0x6e0] sm:$0xff] }
 0x1be   :  { %4425 = vmatprep.subr.bf16.mxu0 %v7166_v22  ;;  %4489 = vmatprep.subr.bf16.mxu1 %v7168_v0  ;;  %v7190_v13 = vpack.c.bf16 %v800_v14, %v792_v63  ;;  %v7192_v43 = vpack.c.bf16 %v802_v58, %v794_v55  ;;  %v808_v0 = vld [vmem:[#allocation5 + $0x628] sm:$0xff]  ;;  %v810_v22 = vld [vmem:[#allocation5 + $0x638] sm:$0xff]  ;;  %8736 = vst [vmem:[#allocation150_spill] sm:$0xff] %v7198_v49  ;;  %v809_v14 = vld [vmem:[#allocation5 + $0x630] sm:$0xff] }
 0x1bf   :  { %v817_v58 = vld [vmem:[#allocation5 + $0x670] sm:$0xff]  ;;  %v7220_v59 = vpack.c.bf16 %v831_v34, %v823_v27 }
 0x1c0   :  { %8733 = vst [vmem:[#allocation147_spill] sm:$0xff] %v7190_v13  ;;  %8734 = vst [vmem:[#allocation148_spill] sm:$0xff] %v7192_v43  ;;  %v7210_v51 = vpack.c.bf16 %v817_v58, %v809_v14  ;;  %v839_v14 = vld [vmem:[#allocation5 + $0x720] sm:$0xff] }
 0x1c1   :  { %4427 = vmatpush1.bf16.msra.mxu0 %v7172_v2  ;;  %4491 = vmatpush1.bf16.msra.mxu1 %v7174_v62  ;;  %v816_v2 = vld [vmem:[#allocation5 + $0x668] sm:$0xff]  ;;  %v818_v62 = vld [vmem:[#allocation5 + $0x678] sm:$0xff]  ;;  %8743 = vst [vmem:[#allocation157_spill] sm:$0xff] %v7220_v59  ;;  %v847_v58 = vld [vmem:[#allocation5 + $0x760] sm:$0xff] }
 0x1c2   :  { %4429 = vmatprep.subr.bf16.mxu0 %v7178_v18  ;;  %4493 = vmatprep.subr.bf16.mxu1 %v7180_v50  ;;  %v7202_v55 = vpack.c.bf16 %v816_v2, %v808_v0  ;;  %v7204_v63 = vpack.c.bf16 %v818_v62, %v810_v22  ;;  %v824_v50 = vld [vmem:[#allocation5 + $0x6a8] sm:$0xff]  ;;  %v826_v18 = vld [vmem:[#allocation5 + $0x6b8] sm:$0xff]  ;;  %8740 = vst [vmem:[#allocation154_spill] sm:$0xff] %v7210_v51  ;;  %v825_v2 = vld [vmem:[#allocation5 + $0x6b0] sm:$0xff] }
 0x1c3   :  { %v833_v62 = vld [vmem:[#allocation5 + $0x6f0] sm:$0xff]  ;;  %v7232_v27 = vpack.c.bf16 %v847_v58, %v839_v14 }
 0x1c4   :  { %8737 = vst [vmem:[#allocation151_spill] sm:$0xff] %v7202_v55  ;;  %8738 = vst [vmem:[#allocation152_spill] sm:$0xff] %v7204_v63  ;;  %v7222_v1 = vpack.c.bf16 %v833_v62, %v825_v2  ;;  %v855_v2 = vld [vmem:[#allocation5 + $0x7a0] sm:$0xff]  ;;  %v865_v62 = vld [vmem:[#allocation5 + $0x7f0] sm:$0xff] }
 0x1c5   :  { %4431 = vmatpush1.bf16.msra.mxu0 %v7184_v9  ;;  %4495 = vmatpush1.bf16.msra.mxu1 %v7186_v38  ;;  %v832_v9 = vld [vmem:[#allocation5 + $0x6e8] sm:$0xff]  ;;  %v834_v38 = vld [vmem:[#allocation5 + $0x6f8] sm:$0xff]  ;;  %8747 = vst [vmem:[#allocation161_spill] sm:$0xff] %v7232_v27 }
 0x1c6   :  { %4433 = vmatprep.subr.bf16.mxu0 %v7190_v13  ;;  %4497 = vmatprep.subr.bf16.mxu1 %v7192_v43  ;;  %v7214_v22 = vpack.c.bf16 %v832_v9, %v824_v50  ;;  %v7216_v0 = vpack.c.bf16 %v834_v38, %v826_v18  ;;  %v840_v43 = vld [vmem:[#allocation5 + $0x728] sm:$0xff]  ;;  %v842_v13 = vld [vmem:[#allocation5 + $0x738] sm:$0xff]  ;;  %8744 = vst [vmem:[#allocation158_spill] sm:$0xff] %v7222_v1  ;;  %v841_v9 = vld [vmem:[#allocation5 + $0x730] sm:$0xff] }
 0x1c7   :  { %v849_v38 = vld [vmem:[#allocation5 + $0x770] sm:$0xff] }
 0x1c8   :  { %8741 = vst [vmem:[#allocation155_spill] sm:$0xff] %v7214_v22  ;;  %8742 = vst [vmem:[#allocation156_spill] sm:$0xff] %v7216_v0  ;;  %v7234_v34 = vpack.c.bf16 %v849_v38, %v841_v9  ;;  %v8758_v9 = vld [vmem:[#allocation64_spill] sm:$0xff]  ;;  %v8759_v38 = vld [vmem:[#allocation65_spill] sm:$0xff] }
 0x1c9   :  { %4435 = vmatpush1.bf16.msra.mxu0 %v7196_v17  ;;  %4499 = vmatpush1.bf16.msra.mxu1 %v7198_v49  ;;  %v848_v17 = vld [vmem:[#allocation5 + $0x768] sm:$0xff]  ;;  %v850_v49 = vld [vmem:[#allocation5 + $0x778] sm:$0xff] }
 0x1ca   :  { %4437 = vmatprep.subr.bf16.mxu0 %v7202_v55  ;;  %4501 = vmatprep.subr.bf16.mxu1 %v7204_v63  ;;  %v7226_v18 = vpack.c.bf16 %v848_v17, %v840_v43  ;;  %v7228_v50 = vpack.c.bf16 %v850_v49, %v842_v13  ;;  %v856_v63 = vld [vmem:[#allocation5 + $0x7a8] sm:$0xff]  ;;  %v858_v55 = vld [vmem:[#allocation5 + $0x7b8] sm:$0xff]  ;;  %8748 = vst [vmem:[#allocation162_spill] sm:$0xff] %v7234_v34  ;;  %v863_v17 = vld [vmem:[#allocation5 + $0x7e0] sm:$0xff] }
 0x1cb   :  { %v857_v49 = vld [vmem:[#allocation5 + $0x7b0] sm:$0xff]  ;;  %v7244_v14 = vpack.c.bf16 %v863_v17, %v855_v2  ;;  %v8760_v2 = vld [vmem:[#allocation66_spill] sm:$0xff]  ;;  %v8761_v17 = vld [vmem:[#allocation67_spill] sm:$0xff] }
 0x1cc   :  { %8745 = vst [vmem:[#allocation159_spill] sm:$0xff] %v7226_v18  ;;  %8746 = vst [vmem:[#allocation160_spill] sm:$0xff] %v7228_v50  ;;  %v7246_v58 = vpack.c.bf16 %v865_v62, %v857_v49  ;;  %v8762_v49 = vld [vmem:[#allocation68_spill] sm:$0xff]  ;;  %v8763_v62 = vld [vmem:[#allocation69_spill] sm:$0xff] }
 0x1cd   :  { %4439 = vmatpush1.bf16.msra.mxu0 %v7208_v6  ;;  %4503 = vmatpush1.bf16.msra.mxu1 %v7210_v51  ;;  %v864_v6 = vld [vmem:[#allocation5 + $0x7e8] sm:$0xff]  ;;  %v866_v51 = vld [vmem:[#allocation5 + $0x7f8] sm:$0xff]  ;;  %8751 = vst [vmem:[#allocation165_spill] sm:$0xff] %v7244_v14 }
 0x1ce   :  { %4441 = vmatprep.subr.bf16.mxu0 %v7214_v22  ;;  %4505 = vmatprep.subr.bf16.mxu1 %v7216_v0  ;;  %v7238_v13 = vpack.c.bf16 %v864_v6, %v856_v63  ;;  %v7240_v43 = vpack.c.bf16 %v866_v51, %v858_v55  ;;  %8752 = vst [vmem:[#allocation166_spill] sm:$0xff] %v7246_v58  ;;  %v8754_v55 = vld [vmem:[#allocation60_spill] sm:$0xff]  ;;  %v8755_v63 = vld [vmem:[#allocation61_spill] sm:$0xff]  ;;  %v8756_v6 = vld [vmem:[#allocation62_spill] sm:$0xff] }
 0x1cf   :  { %v8757_v51 = vld [vmem:[#allocation63_spill] sm:$0xff] }
 0x1d0   :  { %8749 = vst [vmem:[#allocation163_spill] sm:$0xff] %v7238_v13  ;;  %8750 = vst [vmem:[#allocation164_spill] sm:$0xff] %v7240_v43 }
 0x1d1   :  { %4443 = vmatpush1.bf16.msra.mxu0 %v7220_v59  ;;  %4507 = vmatpush1.bf16.msra.mxu1 %v7222_v1 }
 0x1d2   :  { %4445 = vmatprep.subr.bf16.mxu0 %v7226_v18  ;;  %4509 = vmatprep.subr.bf16.mxu1 %v7228_v50 }
 0x1d5   :  { %4447 = vmatpush1.bf16.msra.mxu0 %v7232_v27  ;;  %4511 = vmatpush1.bf16.msra.mxu1 %v7234_v34 }
 0x1d6   :  { %4449 = vmatprep.subr.bf16.mxu0 %v7238_v13  ;;  %4513 = vmatprep.subr.bf16.mxu1 %v7240_v43 }
 0x1d9   :  { %4451 = vmatpush1.bf16.msra.mxu0 %v7244_v14  ;;  %4515 = vmatpush1.bf16.msra.mxu1 %v7246_v58 }
 0x1da   :  { %4517 = vmatprep.subr.bf16.mxu0 %v6790_v19  ;;  %4581 = vmatprep.subr.bf16.mxu1 %v6792_v23 }
 0x1dc   :  { %1145 = vmatmul.mubr.f32.vlgmr.msra.gmra.mrb[10].mxu0 %v7048_v46  ;;  %1216 = vmatmul.mubr.f32.vlgmr.msra.gmra.mrb[10].mxu1 %v7048_v46  ;;  %v8753_v46 = vld [vmem:[#allocation59_spill] sm:$0xff] }
 0x1dd   :  { %4519 = vmatpush1.bf16.msra.mxu0 %v6794_v24  ;;  %4583 = vmatpush1.bf16.msra.mxu1 %v6797_v41 }
 0x1de   :  { %4521 = vmatprep.subr.bf16.mxu0 %v6802_v28  ;;  %4585 = vmatprep.subr.bf16.mxu1 %v6804_v32 }
 0x1e1   :  { %4523 = vmatpush1.bf16.msra.mxu0 %v6806_v33  ;;  %4587 = vmatpush1.bf16.msra.mxu1 %v6809_v36 }
 0x1e2   :  { %4525 = vmatprep.subr.bf16.mxu0 %v6814_v40  ;;  %4589 = vmatprep.subr.bf16.mxu1 %v6816_v44 }
 0x1e5   :  { %4527 = vmatpush1.bf16.msra.mxu0 %v6818_v45  ;;  %4591 = vmatpush1.bf16.msra.mxu1 %v6821_v48 }
 0x1e6   :  { %4529 = vmatprep.subr.bf16.mxu0 %v6826_v52  ;;  %4593 = vmatprep.subr.bf16.mxu1 %v6828_v56 }
 0x1e9   :  { %4531 = vmatpush1.bf16.msra.mxu0 %v6830_v57  ;;  %4595 = vmatpush1.bf16.msra.mxu1 %v6833_v61 }
 0x1ea   :  { %4533 = vmatprep.subr.bf16.mxu0 %v6838_v3  ;;  %4597 = vmatprep.subr.bf16.mxu1 %v6840_v7 }
 0x1ed   :  { %4535 = vmatpush1.bf16.msra.mxu0 %v6842_v8  ;;  %4599 = vmatpush1.bf16.msra.mxu1 %v6845_v11 }
 0x1ee   :  { %4537 = vmatprep.subr.bf16.mxu0 %v6850_v15  ;;  %4601 = vmatprep.subr.bf16.mxu1 %v6852_v20 }
 0x1f1   :  { %4539 = vmatpush1.bf16.msra.mxu0 %v6854_v21  ;;  %4603 = vmatpush1.bf16.msra.mxu1 %v6857_v26 }
 0x1f2   :  { %4541 = vmatprep.subr.bf16.mxu0 %v6862_v29  ;;  %4605 = vmatprep.subr.bf16.mxu1 %v6864_v35 }
 0x1f5   :  { %4543 = vmatpush1.bf16.msra.mxu0 %v6866_v37  ;;  %4607 = vmatpush1.bf16.msra.mxu1 %v6869_v42 }
 0x1f6   :  { %4545 = vmatprep.subr.bf16.mxu0 %v6874_v47  ;;  %4609 = vmatprep.subr.bf16.mxu1 %v6876_v53 }
 0x1f9   :  { %4547 = vmatpush1.bf16.msra.mxu0 %v6878_v54  ;;  %4611 = vmatpush1.bf16.msra.mxu1 %v6881_v60 }
 0x1fa   :  { %4549 = vmatprep.subr.bf16.mxu0 %v6886_v4  ;;  %4613 = vmatprep.subr.bf16.mxu1 %v6888_v10 }
 0x1fd   :  { %4551 = vmatpush1.bf16.msra.mxu0 %v6890_v12  ;;  %4615 = vmatpush1.bf16.msra.mxu1 %v6893_v16 }
 0x1fe   :  { %4553 = vmatprep.subr.bf16.mxu0 %v6898_v25  ;;  %4617 = vmatprep.subr.bf16.mxu1 %v6900_v30  ;;  %v8779_v30 = vld [vmem:[#allocation88_spill] sm:$0xff]  ;;  %v8780_v25 = vld [vmem:[#allocation89_spill] sm:$0xff] }
 0x201   :  { %4555 = vmatpush1.bf16.msra.mxu0 %v6902_v31  ;;  %4619 = vmatpush1.bf16.msra.mxu1 %v6905_v39 }
 0x202   :  { %4557 = vmatprep.subr.bf16.mxu0 %v8753_v46  ;;  %4621 = vmatprep.subr.bf16.mxu1 %v8754_v55  ;;  %v8764_v46 = vld [vmem:[#allocation70_spill] sm:$0xff]  ;;  %v8765_v55 = vld [vmem:[#allocation71_spill] sm:$0xff] }
 0x205   :  { %4559 = vmatpush1.bf16.msra.mxu0 %v8755_v63  ;;  %4623 = vmatpush1.bf16.msra.mxu1 %v8756_v6  ;;  %v8766_v63 = vld [vmem:[#allocation72_spill] sm:$0xff]  ;;  %v8767_v6 = vld [vmem:[#allocation73_spill] sm:$0xff] }
 0x206   :  { %4561 = vmatprep.subr.bf16.mxu0 %v8757_v51  ;;  %4625 = vmatprep.subr.bf16.mxu1 %v8758_v9  ;;  %v8768_v51 = vld [vmem:[#allocation74_spill] sm:$0xff]  ;;  %v8769_v9 = vld [vmem:[#allocation75_spill] sm:$0xff] }
 0x209   :  { %4563 = vmatpush1.bf16.msra.mxu0 %v8759_v38  ;;  %4627 = vmatpush1.bf16.msra.mxu1 %v8760_v2  ;;  %v8770_v38 = vld [vmem:[#allocation76_spill] sm:$0xff]  ;;  %v8771_v2 = vld [vmem:[#allocation77_spill] sm:$0xff] }
 0x20a   :  { %4565 = vmatprep.subr.bf16.mxu0 %v8761_v17  ;;  %4629 = vmatprep.subr.bf16.mxu1 %v8762_v49  ;;  %v8772_v17 = vld [vmem:[#allocation78_spill] sm:$0xff]  ;;  %v8773_v49 = vld [vmem:[#allocation79_spill] sm:$0xff] }
 0x20d   :  { %4567 = vmatpush1.bf16.msra.mxu0 %v8763_v62  ;;  %4631 = vmatpush1.bf16.msra.mxu1 %v8764_v46  ;;  %v8774_v62 = vld [vmem:[#allocation80_spill] sm:$0xff]  ;;  %v8775_v46 = vld [vmem:[#allocation81_spill] sm:$0xff] }
 0x20e   :  { %4569 = vmatprep.subr.bf16.mxu0 %v8765_v55  ;;  %4633 = vmatprep.subr.bf16.mxu1 %v8766_v63  ;;  %v8776_v55 = vld [vmem:[#allocation82_spill] sm:$0xff]  ;;  %v8777_v63 = vld [vmem:[#allocation83_spill] sm:$0xff] }
 0x211   :  { %4571 = vmatpush1.bf16.msra.mxu0 %v8767_v6  ;;  %4635 = vmatpush1.bf16.msra.mxu1 %v8768_v51  ;;  %v8778_v6 = vld [vmem:[#allocation84_spill] sm:$0xff] }
 0x212   :  { %4573 = vmatprep.subr.bf16.mxu0 %v8769_v9  ;;  %4637 = vmatprep.subr.bf16.mxu1 %v8770_v38 }
 0x215   :  { %4575 = vmatpush1.bf16.msra.mxu0 %v8771_v2  ;;  %4639 = vmatpush1.bf16.msra.mxu1 %v8772_v17 }
 0x216   :  { %4577 = vmatprep.subr.bf16.mxu0 %v8773_v49  ;;  %4641 = vmatprep.subr.bf16.mxu1 %v8774_v62 }
 0x219   :  { %4579 = vmatpush1.bf16.msra.mxu0 %v8775_v46  ;;  %4643 = vmatpush1.bf16.msra.mxu1 %v8776_v55  ;;  %v8781_v55 = vld [vmem:[#allocation92_spill] sm:$0xff] }
 0x21a   :  { %4645 = vmatprep.subr.bf16.mxu0 %v8777_v63  ;;  %4709 = vmatprep.subr.bf16.mxu1 %v8778_v6  ;;  %v8782_v6 = vld [vmem:[#allocation93_spill] sm:$0xff] }
 0x26f   :  { %v1004_v51 = vpop.f32.mrb[8].mxu0  ;;  %v1075_v9 = vpop.f32.mrb[8].mxu1 }
 0x270   :  { %v1230_v39 = vrot.slane %v1004_v51, 6  ;;  %v1006_v38 = vpop.f32.mrb[9].mxu0  ;;  %v1077_v31 = vpop.f32.mrb[9].mxu1  ;;  %v1232_v63 = vrot.slane %v1075_v9, 6 }
 0x271   :  { %v1231_v2 = vrot.slane %v1006_v38, 6  ;;  %v1233_v12 = vrot.slane %v1077_v31, 6  ;;  %v8783_v31 = vld [vmem:[#allocation96_spill] sm:$0xff] }
 0x272   :  { %v1246_v17 = vadd.f32 %v1230_v39, %v8779_v30  ;;  %v1248_v4 = vadd.f32 %v1232_v63, %v8782_v6  ;;  %v8790_v30 = vld [vmem:[#allocation104_spill] sm:$0xff] }
 0x273   :  { %v1247_v49 = vadd.f32 %v1231_v2, %v8780_v25  ;;  %v1249_v46 = vadd.f32 %v1233_v12, %v8781_v55  ;;  %v8488_v53 = vrot.slane %v8790_v30, 2 }
 0x274   :  { %v4084_v16 = vmul.f32 -1.442695, %v1246_v17 }
 0x275   :  { %v4085_v62 = vmul.f32 -1.442695, %v1247_v49  ;;  %v4086_v10 = vmul.f32 -1.442695, %v1249_v46 }
 0x276   :  { %6225 = vpow2.f32 %v4084_v16  ;;  %v1274_v16 = vrot.slane %v8783_v31, 6 }
 0x277   :  { %6227 = vpow2.f32 %v4085_v62 }
 0x278   :  { %6229 = vpow2.f32 %v4086_v10 }
 0x279   :  { %6231 = vtanh.f32 %v1248_v4 }
 0x280   :  { %v6226_v60 = vpop.eup %6225 }
 0x281   :  { %v6228_v51 = vpop.eup %6227  ;;  %v1257_v54 = vadd.f32 1.0, %v6226_v60  ;;  %v6621_v60 = vmov 1983009808  }
 0x282   :  { %v1263_v38 = vadd.f32 1.0, %v6228_v51  ;;  %v6230_v39 = vpop.eup %6229  ;;  %v1310_v10 = vunpack.c.l.s4 %v6621_v60 }
 0x283   :  { %6233 = vrcp.f32 %v1257_v54  ;;  %v6232_v2 = vpop.eup %6231  ;;  %v1270_v12 = vadd.f32 1.0, %v6230_v39  ;;  %v8785_v54 = vld [vmem:[#allocation85_spill] sm:$0xff] }
 0x284   :  { %6235 = vrcp.f32 %v1263_v38  ;;  %v1311_v4 = vunpack.c.0.s8 %v1310_v10 }
 0x285   :  { %6237 = vrcp.f32 %v1270_v12 }
 0x286   :  { %v7329_v51 = vsub.s32 %v1311_v4, %v8785_v54 }
 0x288   :  { %8786 = vst [vmem:[#allocation85_spill] sm:$0xff] %v7329_v51 }
 0x28d   :  { %v6234_v17 = vpop.eup %6233 }
 0x28e   :  { %v6236_v49 = vpop.eup %6235  ;;  %v1277_v62 = vmul.f32 %v6234_v17, %v6232_v2  ;;  %v8787_v17 = vld [vmem:[#allocation99_spill] sm:$0xff] }
 0x28f   :  { %v1276_v9 = vmul.f32 %v6236_v49, %v1274_v16  ;;  %v6238_v63 = vpop.eup %6237  ;;  %v8483_v16 = vrot.slane %v8787_v17, 2 }
 0x291   :  { %v7325_v46 = vadd.f32 %v1277_v62, %v1276_v9  ;;  %v8788_v9 = vld [vmem:[#allocation100_spill] sm:$0xff] }
 0x292   :  { %v8486_v60 = vrot.slane %v8788_v9, 2 }
 0x293   :  { %8784 = vst [vmem:[#allocation96_spill] sm:$0xff] %v7325_v46  ;;  %6239 = vtanh.f32 %v7325_v46 }
 0x29d   :  { %v6240_v38 = vpop.eup %6239 }
 0x29e   :  { %v1280_v6 = vmul.f32 %v6240_v38, %v6238_v63 }
 0x2a0   :  { %v1315_v31 = vrot.slane %v1280_v6, %v7329_v51 }
 0x2a2   :  { %v1316_v55 = vcombine.high %v1315_v31, %v1315_v31 }
 0x2a4   :  { %1319 = vst [vmem:[#allocation10 + $0x4] sm:$0x3] %v1316_v55  ;;  %v8789_v55 = vld [vmem:[#allocation103_spill] sm:$0xff] }
 0x2a5   :  { %v8485_v46 = vrot.slane %v8789_v55, 2 }
 0x2af   :  { %v1146_v39 = vpop.f32.mrb[10].mxu0  ;;  %v1217_v2 = vpop.f32.mrb[10].mxu1 }
 0x2b0   :  { %v1234_v49 = vrot.slane %v1146_v39, 6  ;;  %v1148_v62 = vpop.f32.mrb[11].mxu0  ;;  %v1219_v12 = vpop.f32.mrb[11].mxu1  ;;  %v1236_v25 = vrot.slane %v1217_v2, 6 }
 0x2b1   :  { %v1235_v10 = vrot.slane %v1148_v62, 6  ;;  %v1237_v31 = vrot.slane %v1219_v12, 6 }
 0x2b2   :  { %v1250_v4 = vadd.f32 %v1234_v49, %v8483_v16  ;;  %v1252_v49 = vadd.f32 %v1236_v25, %v8488_v53  ;;  %v8808_v53 = vld [vmem:[#allocation122_spill] sm:$0xff] }
 0x2b3   :  { %v1251_v63 = vadd.f32 %v1235_v10, %v8486_v60  ;;  %v1253_v39 = vadd.f32 %v1237_v31, %v8485_v46 }
 0x2b4   :  { %v4087_v54 = vmul.f32 -1.442695, %v1250_v4 }
 0x2b5   :  { %v4088_v38 = vmul.f32 -1.442695, %v1251_v63  ;;  %v4089_v62 = vmul.f32 -1.442695, %v1253_v39 }
 0x2b6   :  { %6241 = vpow2.f32 %v4087_v54 }
 0x2b7   :  { %6243 = vpow2.f32 %v4088_v38  ;;  %v8791_v38 = vld [vmem:[#allocation105_spill] sm:$0xff] }
 0x2b8   :  { %6245 = vpow2.f32 %v4089_v62  ;;  %v1301_v31 = vrot.slane %v8791_v38, 6  ;;  %v8798_v38 = vld [vmem:[#allocation112_spill] sm:$0xff] }
 0x2b9   :  { %6247 = vtanh.f32 %v1252_v49 }
 0x2c0   :  { %v6242_v16 = vpop.eup %6241 }
 0x2c1   :  { %v6244_v9 = vpop.eup %6243  ;;  %v1284_v10 = vadd.f32 1.0, %v6242_v16 }
 0x2c2   :  { %v1290_v12 = vadd.f32 1.0, %v6244_v9  ;;  %v6246_v4 = vpop.eup %6245 }
 0x2c3   :  { %6249 = vrcp.f32 %v1284_v10  ;;  %v6248_v63 = vpop.eup %6247  ;;  %v1297_v60 = vadd.f32 1.0, %v6246_v4  ;;  %v7349_v10 = vrot.slane %v1280_v6, 2  ;;  %v8794_v4 = vld [vmem:[#allocation108_spill] sm:$0xff]  ;;  %v8795_v6 = vld [vmem:[#allocation109_spill] sm:$0xff] }
 0x2c4   :  { %6251 = vrcp.f32 %v1290_v12 }
 0x2c5   :  { %6253 = vrcp.f32 %v1297_v60  ;;  %v8793_v60 = vld [vmem:[#allocation107_spill] sm:$0xff] }
 0x2cd   :  { %v6250_v54 = vpop.eup %6249 }
 0x2ce   :  { %v6252_v2 = vpop.eup %6251  ;;  %v1304_v46 = vmul.f32 %v6250_v54, %v6248_v63  ;;  %v8796_v63 = vld [vmem:[#allocation110_spill] sm:$0xff]  ;;  %v8797_v54 = vld [vmem:[#allocation111_spill] sm:$0xff] }
 0x2cf   :  { %v1303_v39 = vmul.f32 %v6252_v2, %v1301_v31  ;;  %v6254_v25 = vpop.eup %6253  ;;  %v8799_v31 = vld [vmem:[#allocation113_spill] sm:$0xff]  ;;  %v8800_v2 = vld [vmem:[#allocation114_spill] sm:$0xff] }
 0x2d1   :  { %v7345_v55 = vadd.f32 %v1304_v46, %v1303_v39  ;;  %v8792_v46 = vld [vmem:[#allocation106_spill] sm:$0xff]  ;;  %v8801_v39 = vld [vmem:[#allocation115_spill] sm:$0xff] }
 0x2d3   :  { %6255 = vtanh.f32 %v7345_v55 }
 0x2dd   :  { %v6256_v16 = vpop.eup %6255 }
 0x2de   :  { %v1307_v62 = vmul.f32 %v6256_v16, %v6254_v25  ;;  %v8802_v25 = vld [vmem:[#allocation116_spill] sm:$0xff]  ;;  %v8803_v16 = vld [vmem:[#allocation117_spill] sm:$0xff] }
 0x2e0   :  { %v1327_v9 = vrot.slane %v1307_v62, %v7329_v51  ;;  %v1333_v49 = vrot.slane %v1307_v62, 2  ;;  %v8804_v62 = vld [vmem:[#allocation118_spill] sm:$0xff]  ;;  %v8809_v51 = vld [vmem:[#allocation123_spill] sm:$0xff] }
 0x2e2   :  { %v1328_v12 = vcombine.high %v1327_v9, %v1327_v9  ;;  %1400 = vmatprep.mubr.f32.mxu0 %v1333_v49  ;;  %1471 = vmatprep.mubr.f32.mxu1 %v1333_v49  ;;  %v8805_v9 = vld [vmem:[#allocation119_spill] sm:$0xff] }
 0x2e3   :  { %1401 = vmatmul.mubr.f32.vlgmr.msra.gmra.mrb[12].mxu0 %v7349_v10  ;;  %1472 = vmatmul.mubr.f32.vlgmr.msra.gmra.mrb[12].mxu1 %v7349_v10 }
 0x2e4   :  { %1331 = vst [vmem:[#allocation10 + $0x1a] sm:$0x3] %v1328_v12  ;;  %4647 = vmatpush1.bf16.msra.mxu0 %v7064_v5  ;;  %4711 = vmatpush1.bf16.msra.mxu1 %v8792_v46  ;;  %v8807_v12 = vld [vmem:[#allocation121_spill] sm:$0xff] }
 0x2e5   :  { %1542 = vmatprep.mubr.f32.mxu0 %v1333_v49  ;;  %1613 = vmatprep.mubr.f32.mxu1 %v1333_v49  ;;  %v8806_v49 = vld [vmem:[#allocation120_spill] sm:$0xff] }
 0x2e6   :  { %4649 = vmatprep.subr.bf16.mxu0 %v8793_v60  ;;  %4713 = vmatprep.subr.bf16.mxu1 %v8794_v4 }
 0x2e8   :  { %4651 = vmatpush1.bf16.msra.mxu0 %v8795_v6  ;;  %4715 = vmatpush1.bf16.msra.mxu1 %v8796_v63 }
 0x2e9   :  { %4653 = vmatprep.subr.bf16.mxu0 %v8797_v54  ;;  %4717 = vmatprep.subr.bf16.mxu1 %v8798_v38 }
 0x2ec   :  { %4655 = vmatpush1.bf16.msra.mxu0 %v8799_v31  ;;  %4719 = vmatpush1.bf16.msra.mxu1 %v8800_v2  ;;  %v8810_v31 = vld [vmem:[#allocation124_spill] sm:$0xff]  ;;  %v8811_v2 = vld [vmem:[#allocation125_spill] sm:$0xff] }
 0x2ed   :  { %4657 = vmatprep.subr.bf16.mxu0 %v8801_v39  ;;  %4721 = vmatprep.subr.bf16.mxu1 %v8802_v25  ;;  %v8812_v39 = vld [vmem:[#allocation126_spill] sm:$0xff]  ;;  %v8813_v25 = vld [vmem:[#allocation127_spill] sm:$0xff] }
 0x2f0   :  { %4659 = vmatpush1.bf16.msra.mxu0 %v8803_v16  ;;  %4723 = vmatpush1.bf16.msra.mxu1 %v8804_v62  ;;  %v8814_v16 = vld [vmem:[#allocation128_spill] sm:$0xff]  ;;  %v8815_v62 = vld [vmem:[#allocation129_spill] sm:$0xff] }
 0x2f1   :  { %4661 = vmatprep.subr.bf16.mxu0 %v8805_v9  ;;  %4725 = vmatprep.subr.bf16.mxu1 %v8806_v49  ;;  %v8816_v9 = vld [vmem:[#allocation130_spill] sm:$0xff]  ;;  %v8817_v49 = vld [vmem:[#allocation131_spill] sm:$0xff] }
 0x2f4   :  { %4663 = vmatpush1.bf16.msra.mxu0 %v8807_v12  ;;  %4727 = vmatpush1.bf16.msra.mxu1 %v8808_v53  ;;  %v8818_v12 = vld [vmem:[#allocation132_spill] sm:$0xff]  ;;  %v8819_v53 = vld [vmem:[#allocation133_spill] sm:$0xff] }
 0x2f5   :  { %4665 = vmatprep.subr.bf16.mxu0 %v8809_v51  ;;  %4729 = vmatprep.subr.bf16.mxu1 %v8810_v31  ;;  %v8820_v51 = vld [vmem:[#allocation134_spill] sm:$0xff]  ;;  %v8821_v31 = vld [vmem:[#allocation135_spill] sm:$0xff] }
 0x2f8   :  { %4667 = vmatpush1.bf16.msra.mxu0 %v8811_v2  ;;  %4731 = vmatpush1.bf16.msra.mxu1 %v8812_v39  ;;  %v8822_v2 = vld [vmem:[#allocation136_spill] sm:$0xff]  ;;  %v8823_v39 = vld [vmem:[#allocation137_spill] sm:$0xff] }
 0x2f9   :  { %4669 = vmatprep.subr.bf16.mxu0 %v8813_v25  ;;  %4733 = vmatprep.subr.bf16.mxu1 %v8814_v16  ;;  %v8824_v25 = vld [vmem:[#allocation138_spill] sm:$0xff]  ;;  %v8825_v16 = vld [vmem:[#allocation139_spill] sm:$0xff] }
 0x2fc   :  { %4671 = vmatpush1.bf16.msra.mxu0 %v8815_v62  ;;  %4735 = vmatpush1.bf16.msra.mxu1 %v8816_v9  ;;  %v8826_v62 = vld [vmem:[#allocation140_spill] sm:$0xff]  ;;  %v8827_v9 = vld [vmem:[#allocation141_spill] sm:$0xff] }
 0x2fd   :  { %4673 = vmatprep.subr.bf16.mxu0 %v8817_v49  ;;  %4737 = vmatprep.subr.bf16.mxu1 %v8818_v12  ;;  %v8828_v49 = vld [vmem:[#allocation142_spill] sm:$0xff]  ;;  %v8829_v12 = vld [vmem:[#allocation143_spill] sm:$0xff] }
 0x300   :  { %4675 = vmatpush1.bf16.msra.mxu0 %v8819_v53  ;;  %4739 = vmatpush1.bf16.msra.mxu1 %v8820_v51  ;;  %v8830_v53 = vld [vmem:[#allocation144_spill] sm:$0xff]  ;;  %v8831_v51 = vld [vmem:[#allocation145_spill] sm:$0xff] }
 0x301   :  { %4677 = vmatprep.subr.bf16.mxu0 %v8821_v31  ;;  %4741 = vmatprep.subr.bf16.mxu1 %v8822_v2  ;;  %v8832_v31 = vld [vmem:[#allocation146_spill] sm:$0xff]  ;;  %v8833_v2 = vld [vmem:[#allocation147_spill] sm:$0xff] }
 0x304   :  { %4679 = vmatpush1.bf16.msra.mxu0 %v8823_v39  ;;  %4743 = vmatpush1.bf16.msra.mxu1 %v8824_v25  ;;  %v8834_v39 = vld [vmem:[#allocation148_spill] sm:$0xff]  ;;  %v8835_v25 = vld [vmem:[#allocation149_spill] sm:$0xff] }
 0x305   :  { %4681 = vmatprep.subr.bf16.mxu0 %v8825_v16  ;;  %4745 = vmatprep.subr.bf16.mxu1 %v8826_v62  ;;  %v8836_v16 = vld [vmem:[#allocation150_spill] sm:$0xff]  ;;  %v8837_v62 = vld [vmem:[#allocation151_spill] sm:$0xff] }
 0x308   :  { %4683 = vmatpush1.bf16.msra.mxu0 %v8827_v9  ;;  %4747 = vmatpush1.bf16.msra.mxu1 %v8828_v49  ;;  %v8838_v9 = vld [vmem:[#allocation152_spill] sm:$0xff]  ;;  %v8839_v49 = vld [vmem:[#allocation153_spill] sm:$0xff] }
 0x309   :  { %4685 = vmatprep.subr.bf16.mxu0 %v8829_v12  ;;  %4749 = vmatprep.subr.bf16.mxu1 %v8830_v53  ;;  %v8840_v12 = vld [vmem:[#allocation154_spill] sm:$0xff] }
 0x30c   :  { %4687 = vmatpush1.bf16.msra.mxu0 %v8831_v51  ;;  %4751 = vmatpush1.bf16.msra.mxu1 %v8832_v31 }
 0x30d   :  { %4689 = vmatprep.subr.bf16.mxu0 %v8833_v2  ;;  %4753 = vmatprep.subr.bf16.mxu1 %v8834_v39 }
 0x310   :  { %4691 = vmatpush1.bf16.msra.mxu0 %v8835_v25  ;;  %4755 = vmatpush1.bf16.msra.mxu1 %v8836_v16 }
 0x311   :  { %4693 = vmatprep.subr.bf16.mxu0 %v8837_v62  ;;  %4757 = vmatprep.subr.bf16.mxu1 %v8838_v9 }
 0x314   :  { %4695 = vmatpush1.bf16.msra.mxu0 %v8839_v49  ;;  %4759 = vmatpush1.bf16.msra.mxu1 %v8840_v12 }
 0x315   :  { %4697 = vmatprep.subr.bf16.mxu0 %v7214_v22  ;;  %4761 = vmatprep.subr.bf16.mxu1 %v7216_v0 }
 0x318   :  { %4699 = vmatpush1.bf16.msra.mxu0 %v7220_v59  ;;  %4763 = vmatpush1.bf16.msra.mxu1 %v7222_v1 }
 0x319   :  { %4701 = vmatprep.subr.bf16.mxu0 %v7226_v18  ;;  %4765 = vmatprep.subr.bf16.mxu1 %v7228_v50 }
 0x31c   :  { %4703 = vmatpush1.bf16.msra.mxu0 %v7232_v27  ;;  %4767 = vmatpush1.bf16.msra.mxu1 %v7234_v34 }
 0x31d   :  { %4705 = vmatprep.subr.bf16.mxu0 %v7238_v13  ;;  %4769 = vmatprep.subr.bf16.mxu1 %v7240_v43 }
 0x320   :  { %4707 = vmatpush1.bf16.msra.mxu0 %v7244_v14  ;;  %4771 = vmatpush1.bf16.msra.mxu1 %v7246_v58 }
 0x321   :  { %4773 = vmatprep.subr.bf16.mxu0 %v6790_v19  ;;  %4837 = vmatprep.subr.bf16.mxu1 %v6792_v23 }
 0x323   :  { %1543 = vmatmul.mubr.f32.vlgmr.msra.gmra.mrb[14].mxu0 %v7349_v10  ;;  %1614 = vmatmul.mubr.f32.vlgmr.msra.gmra.mrb[14].mxu1 %v7349_v10  ;;  %v8841_v10 = vld [vmem:[#allocation48_spill] sm:$0xff] }
 0x324   :  { %4775 = vmatpush1.bf16.msra.mxu0 %v6794_v24  ;;  %4839 = vmatpush1.bf16.msra.mxu1 %v6797_v41 }
 0x325   :  { %4777 = vmatprep.subr.bf16.mxu0 %v6802_v28  ;;  %4841 = vmatprep.subr.bf16.mxu1 %v6804_v32 }
 0x328   :  { %4779 = vmatpush1.bf16.msra.mxu0 %v6806_v33  ;;  %4843 = vmatpush1.bf16.msra.mxu1 %v6809_v36 }
 0x329   :  { %4781 = vmatprep.subr.bf16.mxu0 %v6814_v40  ;;  %4845 = vmatprep.subr.bf16.mxu1 %v6816_v44 }
 0x32c   :  { %4783 = vmatpush1.bf16.msra.mxu0 %v6818_v45  ;;  %4847 = vmatpush1.bf16.msra.mxu1 %v6821_v48 }
 0x32d   :  { %4785 = vmatprep.subr.bf16.mxu0 %v6826_v52  ;;  %4849 = vmatprep.subr.bf16.mxu1 %v6828_v56 }
 0x330   :  { %4787 = vmatpush1.bf16.msra.mxu0 %v6830_v57  ;;  %4851 = vmatpush1.bf16.msra.mxu1 %v6833_v61  ;;  %v8879_v61 = vld [vmem:[#allocation89_spill] sm:$0xff] }
 0x331   :  { %4789 = vmatprep.subr.bf16.mxu0 %v6838_v3  ;;  %4853 = vmatprep.subr.bf16.mxu1 %v6840_v7  ;;  %v8878_v3 = vld [vmem:[#allocation88_spill] sm:$0xff] }
 0x334   :  { %4791 = vmatpush1.bf16.msra.mxu0 %v6842_v8  ;;  %4855 = vmatpush1.bf16.msra.mxu1 %v6845_v11  ;;  %v8842_v11 = vld [vmem:[#allocation49_spill] sm:$0xff] }
 0x335   :  { %4793 = vmatprep.subr.bf16.mxu0 %v6850_v15  ;;  %4857 = vmatprep.subr.bf16.mxu1 %v6852_v20  ;;  %v8843_v15 = vld [vmem:[#allocation50_spill] sm:$0xff]  ;;  %v8844_v20 = vld [vmem:[#allocation51_spill] sm:$0xff] }
 0x338   :  { %4795 = vmatpush1.bf16.msra.mxu0 %v6854_v21  ;;  %4859 = vmatpush1.bf16.msra.mxu1 %v6857_v26  ;;  %v8845_v21 = vld [vmem:[#allocation52_spill] sm:$0xff]  ;;  %v8846_v26 = vld [vmem:[#allocation53_spill] sm:$0xff] }
 0x339   :  { %4797 = vmatprep.subr.bf16.mxu0 %v6862_v29  ;;  %4861 = vmatprep.subr.bf16.mxu1 %v6864_v35  ;;  %v8847_v29 = vld [vmem:[#allocation54_spill] sm:$0xff]  ;;  %v8848_v35 = vld [vmem:[#allocation55_spill] sm:$0xff] }
 0x33c   :  { %4799 = vmatpush1.bf16.msra.mxu0 %v6866_v37  ;;  %4863 = vmatpush1.bf16.msra.mxu1 %v6869_v42  ;;  %v8849_v37 = vld [vmem:[#allocation56_spill] sm:$0xff]  ;;  %v8850_v42 = vld [vmem:[#allocation57_spill] sm:$0xff] }
 0x33d   :  { %4801 = vmatprep.subr.bf16.mxu0 %v6874_v47  ;;  %4865 = vmatprep.subr.bf16.mxu1 %v8841_v10  ;;  %v8851_v47 = vld [vmem:[#allocation58_spill] sm:$0xff]  ;;  %v8852_v10 = vld [vmem:[#allocation59_spill] sm:$0xff] }
 0x340   :  { %4803 = vmatpush1.bf16.msra.mxu0 %v8842_v11  ;;  %4867 = vmatpush1.bf16.msra.mxu1 %v8843_v15  ;;  %v8853_v11 = vld [vmem:[#allocation60_spill] sm:$0xff]  ;;  %v8854_v15 = vld [vmem:[#allocation61_spill] sm:$0xff] }
 0x341   :  { %4805 = vmatprep.subr.bf16.mxu0 %v8844_v20  ;;  %4869 = vmatprep.subr.bf16.mxu1 %v8845_v21  ;;  %v8855_v20 = vld [vmem:[#allocation62_spill] sm:$0xff]  ;;  %v8856_v21 = vld [vmem:[#allocation63_spill] sm:$0xff] }
 0x344   :  { %4807 = vmatpush1.bf16.msra.mxu0 %v8846_v26  ;;  %4871 = vmatpush1.bf16.msra.mxu1 %v8847_v29  ;;  %v8857_v26 = vld [vmem:[#allocation64_spill] sm:$0xff]  ;;  %v8858_v29 = vld [vmem:[#allocation65_spill] sm:$0xff] }
 0x345   :  { %4809 = vmatprep.subr.bf16.mxu0 %v8848_v35  ;;  %4873 = vmatprep.subr.bf16.mxu1 %v8849_v37  ;;  %v8859_v35 = vld [vmem:[#allocation66_spill] sm:$0xff]  ;;  %v8860_v37 = vld [vmem:[#allocation67_spill] sm:$0xff] }
 0x348   :  { %4811 = vmatpush1.bf16.msra.mxu0 %v8850_v42  ;;  %4875 = vmatpush1.bf16.msra.mxu1 %v8851_v47  ;;  %v8861_v42 = vld [vmem:[#allocation68_spill] sm:$0xff]  ;;  %v8862_v47 = vld [vmem:[#allocation69_spill] sm:$0xff] }
 0x349   :  { %4813 = vmatprep.subr.bf16.mxu0 %v8852_v10  ;;  %4877 = vmatprep.subr.bf16.mxu1 %v8853_v11  ;;  %v8863_v10 = vld [vmem:[#allocation70_spill] sm:$0xff]  ;;  %v8864_v11 = vld [vmem:[#allocation71_spill] sm:$0xff] }
 0x34c   :  { %4815 = vmatpush1.bf16.msra.mxu0 %v8854_v15  ;;  %4879 = vmatpush1.bf16.msra.mxu1 %v8855_v20  ;;  %v8865_v15 = vld [vmem:[#allocation72_spill] sm:$0xff]  ;;  %v8866_v20 = vld [vmem:[#allocation73_spill] sm:$0xff] }
 0x34d   :  { %4817 = vmatprep.subr.bf16.mxu0 %v8856_v21  ;;  %4881 = vmatprep.subr.bf16.mxu1 %v8857_v26  ;;  %v8867_v21 = vld [vmem:[#allocation74_spill] sm:$0xff]  ;;  %v8868_v26 = vld [vmem:[#allocation75_spill] sm:$0xff] }
 0x350   :  { %4819 = vmatpush1.bf16.msra.mxu0 %v8858_v29  ;;  %4883 = vmatpush1.bf16.msra.mxu1 %v8859_v35  ;;  %v8869_v29 = vld [vmem:[#allocation76_spill] sm:$0xff]  ;;  %v8870_v35 = vld [vmem:[#allocation77_spill] sm:$0xff] }
 0x351   :  { %4821 = vmatprep.subr.bf16.mxu0 %v8860_v37  ;;  %4885 = vmatprep.subr.bf16.mxu1 %v8861_v42  ;;  %v8871_v37 = vld [vmem:[#allocation78_spill] sm:$0xff]  ;;  %v8872_v42 = vld [vmem:[#allocation79_spill] sm:$0xff] }
 0x354   :  { %4823 = vmatpush1.bf16.msra.mxu0 %v8862_v47  ;;  %4887 = vmatpush1.bf16.msra.mxu1 %v8863_v10  ;;  %v8873_v47 = vld [vmem:[#allocation80_spill] sm:$0xff]  ;;  %v8874_v10 = vld [vmem:[#allocation81_spill] sm:$0xff] }
 0x355   :  { %4825 = vmatprep.subr.bf16.mxu0 %v8864_v11  ;;  %4889 = vmatprep.subr.bf16.mxu1 %v8865_v15  ;;  %v8875_v11 = vld [vmem:[#allocation82_spill] sm:$0xff]  ;;  %v8876_v15 = vld [vmem:[#allocation83_spill] sm:$0xff] }
 0x358   :  { %4827 = vmatpush1.bf16.msra.mxu0 %v8866_v20  ;;  %4891 = vmatpush1.bf16.msra.mxu1 %v8867_v21  ;;  %v8877_v20 = vld [vmem:[#allocation84_spill] sm:$0xff] }
 0x359   :  { %4829 = vmatprep.subr.bf16.mxu0 %v8868_v26  ;;  %4893 = vmatprep.subr.bf16.mxu1 %v8869_v29 }
 0x35c   :  { %4831 = vmatpush1.bf16.msra.mxu0 %v8870_v35  ;;  %4895 = vmatpush1.bf16.msra.mxu1 %v8871_v37 }
 0x35d   :  { %4833 = vmatprep.subr.bf16.mxu0 %v8872_v42  ;;  %4897 = vmatprep.subr.bf16.mxu1 %v8873_v47 }
 0x360   :  { %4835 = vmatpush1.bf16.msra.mxu0 %v8874_v10  ;;  %4899 = vmatpush1.bf16.msra.mxu1 %v8875_v11  ;;  %v8880_v11 = vld [vmem:[#allocation92_spill] sm:$0xff] }
 0x361   :  { %4901 = vmatprep.subr.bf16.mxu0 %v8876_v15  ;;  %4965 = vmatprep.subr.bf16.mxu1 %v8877_v20  ;;  %v8881_v20 = vld [vmem:[#allocation93_spill] sm:$0xff] }
 0x3b6   :  { %v1402_v21 = vpop.f32.mrb[12].mxu0  ;;  %v1473_v26 = vpop.f32.mrb[12].mxu1 }
 0x3b7   :  { %v1628_v8 = vrot.slane %v1402_v21, 4  ;;  %v1404_v29 = vpop.f32.mrb[13].mxu0  ;;  %v1475_v7 = vpop.f32.mrb[13].mxu1  ;;  %v1630_v15 = vrot.slane %v1473_v26, 4 }
 0x3b8   :  { %v1629_v35 = vrot.slane %v1404_v29, 4  ;;  %v1631_v56 = vrot.slane %v1475_v7, 4  ;;  %v8882_v7 = vld [vmem:[#allocation96_spill] sm:$0xff] }
 0x3b9   :  { %v1644_v37 = vadd.f32 %v1628_v8, %v8878_v3  ;;  %v1646_v48 = vadd.f32 %v1630_v15, %v8881_v20 }
 0x3ba   :  { %v1645_v42 = vadd.f32 %v1629_v35, %v8879_v61  ;;  %v1647_v10 = vadd.f32 %v1631_v56, %v8880_v11 }
 0x3bb   :  { %v4090_v57 = vmul.f32 -1.442695, %v1644_v37 }
 0x3bc   :  { %v4091_v47 = vmul.f32 -1.442695, %v1645_v42  ;;  %v4092_v52 = vmul.f32 -1.442695, %v1647_v10 }
 0x3bd   :  { %6257 = vpow2.f32 %v4090_v57  ;;  %v1672_v57 = vrot.slane %v8882_v7, 6 }
 0x3be   :  { %6259 = vpow2.f32 %v4091_v47 }
 0x3bf   :  { %6261 = vpow2.f32 %v4092_v52 }
 0x3c0   :  { %6263 = vtanh.f32 %v1646_v48 }
 0x3c7   :  { %v6258_v45 = vpop.eup %6257 }
 0x3c8   :  { %v6260_v21 = vpop.eup %6259  ;;  %v1655_v44 = vadd.f32 1.0, %v6258_v45 }
 0x3c9   :  { %v1661_v29 = vadd.f32 1.0, %v6260_v21  ;;  %v6262_v8 = vpop.eup %6261 }
 0x3ca   :  { %6265 = vrcp.f32 %v1655_v44  ;;  %v6264_v35 = vpop.eup %6263  ;;  %v1668_v56 = vadd.f32 1.0, %v6262_v8 }
 0x3cb   :  { %6267 = vrcp.f32 %v1661_v29 }
 0x3cc   :  { %6269 = vrcp.f32 %v1668_v56 }
 0x3d4   :  { %v6266_v37 = vpop.eup %6265 }
 0x3d5   :  { %v6268_v42 = vpop.eup %6267  ;;  %v1675_v47 = vmul.f32 %v6266_v37, %v6264_v35  ;;  %v8884_v35 = vrot.slane %v8787_v17, 6  ;;  %v8885_v37 = vld [vmem:[#allocation100_spill] sm:$0xff] }
 0x3d6   :  { %v1674_v26 = vmul.f32 %v6268_v42, %v1672_v57  ;;  %v6270_v45 = vpop.eup %6269  ;;  %v8886_v57 = vrot.slane %v8885_v37, 6 }
 0x3d8   :  { %v7488_v10 = vadd.f32 %v1675_v47, %v1674_v26 }
 0x3da   :  { %8883 = vst [vmem:[#allocation104_spill] sm:$0xff] %v7488_v10  ;;  %6271 = vtanh.f32 %v7488_v10 }
 0x3e4   :  { %v6272_v52 = vpop.eup %6271 }
 0x3e5   :  { %v1678_v48 = vmul.f32 %v6272_v52, %v6270_v45  ;;  %v8887_v45 = vld [vmem:[#allocation103_spill] sm:$0xff] }
 0x3e6   :  { %v8888_v52 = vrot.slane %v8887_v45, 6 }
 0x3e7   :  { %v1707_v15 = vcombine.high %v1678_v48, %v1678_v48 }
 0x3e9   :  { %4096 = vst.sshfl [vmem:[#allocation10 + $0x8] sm:$0x3 pattern:$0x76325410] %v1707_v15 }
 0x3f6   :  { %v1544_v44 = vpop.f32.mrb[14].mxu0  ;;  %v1615_v21 = vpop.f32.mrb[14].mxu1 }
 0x3f7   :  { %v1632_v29 = vrot.slane %v1544_v44, 4  ;;  %v1546_v20 = vpop.f32.mrb[15].mxu0  ;;  %v1617_v11 = vpop.f32.mrb[15].mxu1  ;;  %v1634_v10 = vrot.slane %v1615_v21, 4  ;;  %v8889_v44 = vrot.slane %v8790_v30, 6 }
 0x3f8   :  { %v1633_v7 = vrot.slane %v1546_v20, 4  ;;  %v1635_v26 = vrot.slane %v1617_v11, 4 }
 0x3f9   :  { %v1648_v8 = vadd.f32 %v1632_v29, %v8884_v35  ;;  %v1650_v3 = vadd.f32 %v1634_v10, %v8889_v44  ;;  %v8894_v44 = vld [vmem:[#allocation117_spill] sm:$0xff] }
 0x3fa   :  { %v1649_v42 = vadd.f32 %v1633_v7, %v8886_v57  ;;  %v1651_v15 = vadd.f32 %v1635_v26, %v8888_v52  ;;  %v7503_v26 = vrot.slane %v1678_v48, 4  ;;  %v8891_v48 = vld [vmem:[#allocation114_spill] sm:$0xff]  ;;  %v8892_v52 = vld [vmem:[#allocation115_spill] sm:$0xff] }
 0x3fb   :  { %v4093_v47 = vmul.f32 -1.442695, %v1648_v8  ;;  %v1699_v8 = vrot.slane %v7345_v55, 6  ;;  %v8890_v55 = vld [vmem:[#allocation113_spill] sm:$0xff] }
 0x3fc   :  { %v4094_v56 = vmul.f32 -1.442695, %v1649_v42  ;;  %v4095_v61 = vmul.f32 -1.442695, %v1651_v15  ;;  %v8893_v15 = vld [vmem:[#allocation116_spill] sm:$0xff] }
 0x3fd   :  { %6273 = vpow2.f32 %v4093_v47 }
 0x3fe   :  { %6275 = vpow2.f32 %v4094_v56 }
 0x3ff   :  { %6277 = vpow2.f32 %v4095_v61 }
 0x400   :  { %6279 = vtanh.f32 %v1650_v3 }
 0x407   :  { %v6274_v20 = vpop.eup %6273 }
 0x408   :  { %v6276_v40 = vpop.eup %6275  ;;  %v1682_v17 = vadd.f32 1.0, %v6274_v20  ;;  %v8895_v20 = vld [vmem:[#allocation118_spill] sm:$0xff] }
 0x409   :  { %v1688_v29 = vadd.f32 1.0, %v6276_v40  ;;  %v6278_v7 = vpop.eup %6277 }
 0x40a   :  { %6281 = vrcp.f32 %v1682_v17  ;;  %v6280_v11 = vpop.eup %6279  ;;  %v1695_v21 = vadd.f32 1.0, %v6278_v7  ;;  %v8897_v7 = vld [vmem:[#allocation120_spill] sm:$0xff] }
 0x40b   :  { %6283 = vrcp.f32 %v1688_v29  ;;  %v8896_v29 = vld [vmem:[#allocation119_spill] sm:$0xff] }
 0x40c   :  { %6285 = vrcp.f32 %v1695_v21  ;;  %v8903_v21 = vld [vmem:[#allocation126_spill] sm:$0xff] }
 0x414   :  { %v6282_v35 = vpop.eup %6281 }
 0x415   :  { %v6284_v57 = vpop.eup %6283  ;;  %v1702_v42 = vmul.f32 %v6282_v35, %v6280_v11  ;;  %v8898_v11 = vld [vmem:[#allocation121_spill] sm:$0xff]  ;;  %v8899_v35 = vld [vmem:[#allocation122_spill] sm:$0xff] }
 0x416   :  { %v1701_v47 = vmul.f32 %v6284_v57, %v1699_v8  ;;  %v6286_v10 = vpop.eup %6285  ;;  %v8900_v8 = vld [vmem:[#allocation123_spill] sm:$0xff]  ;;  %v8901_v57 = vld [vmem:[#allocation124_spill] sm:$0xff] }
 0x418   :  { %v7500_v56 = vadd.f32 %v1702_v42, %v1701_v47  ;;  %v8902_v42 = vld [vmem:[#allocation125_spill] sm:$0xff]  ;;  %v8904_v47 = vld [vmem:[#allocation127_spill] sm:$0xff] }
 0x41a   :  { %6287 = vtanh.f32 %v7500_v56 }
 0x424   :  { %v6288_v61 = vpop.eup %6287 }
 0x425   :  { %v1705_v3 = vmul.f32 %v6288_v61, %v6286_v10  ;;  %v8905_v10 = vld [vmem:[#allocation128_spill] sm:$0xff]  ;;  %v8906_v61 = vld [vmem:[#allocation129_spill] sm:$0xff] }
 0x427   :  { %v1719_v40 = vcombine.high %v1705_v3, %v1705_v3  ;;  %v1731_v17 = vrot.slane %v1705_v3, 4  ;;  %v8907_v3 = vld [vmem:[#allocation130_spill] sm:$0xff] }
 0x429   :  { %4097 = vst.sshfl [vmem:[#allocation10 + $0x16] sm:$0x3 pattern:$0x76325410] %v1719_v40  ;;  %1798 = vmatprep.mubr.f32.mxu0 %v1731_v17  ;;  %1869 = vmatprep.mubr.f32.mxu1 %v1731_v17  ;;  %v8908_v40 = vld [vmem:[#allocation131_spill] sm:$0xff] }
 0x42a   :  { %1799 = vmatmul.mubr.f32.vlgmr.msra.gmra.mrb[16].mxu0 %v7503_v26  ;;  %1870 = vmatmul.mubr.f32.vlgmr.msra.gmra.mrb[16].mxu1 %v7503_v26 }
 0x42b   :  { %4903 = vmatpush1.bf16.msra.mxu0 %v7064_v5  ;;  %4967 = vmatpush1.bf16.msra.mxu1 %v8792_v46 }
 0x42c   :  { %1940 = vmatprep.mubr.f32.mxu0 %v1731_v17  ;;  %2011 = vmatprep.mubr.f32.mxu1 %v1731_v17  ;;  %v8909_v17 = vld [vmem:[#allocation132_spill] sm:$0xff] }
 0x42d   :  { %4905 = vmatprep.subr.bf16.mxu0 %v8793_v60  ;;  %4969 = vmatprep.subr.bf16.mxu1 %v8794_v4 }
 0x42f   :  { %4907 = vmatpush1.bf16.msra.mxu0 %v8795_v6  ;;  %4971 = vmatpush1.bf16.msra.mxu1 %v8796_v63 }
 0x430   :  { %4909 = vmatprep.subr.bf16.mxu0 %v8797_v54  ;;  %4973 = vmatprep.subr.bf16.mxu1 %v8798_v38 }
 0x433   :  { %4911 = vmatpush1.bf16.msra.mxu0 %v8890_v55  ;;  %4975 = vmatpush1.bf16.msra.mxu1 %v8891_v48 }
 0x434   :  { %4913 = vmatprep.subr.bf16.mxu0 %v8892_v52  ;;  %4977 = vmatprep.subr.bf16.mxu1 %v8893_v15 }
 0x437   :  { %4915 = vmatpush1.bf16.msra.mxu0 %v8894_v44  ;;  %4979 = vmatpush1.bf16.msra.mxu1 %v8895_v20 }
 0x438   :  { %4917 = vmatprep.subr.bf16.mxu0 %v8896_v29  ;;  %4981 = vmatprep.subr.bf16.mxu1 %v8897_v7 }
 0x43b   :  { %4919 = vmatpush1.bf16.msra.mxu0 %v8898_v11  ;;  %4983 = vmatpush1.bf16.msra.mxu1 %v8899_v35  ;;  %v8910_v35 = vld [vmem:[#allocation133_spill] sm:$0xff] }
 0x43c   :  { %4921 = vmatprep.subr.bf16.mxu0 %v8900_v8  ;;  %4985 = vmatprep.subr.bf16.mxu1 %v8901_v57  ;;  %v8911_v8 = vld [vmem:[#allocation134_spill] sm:$0xff]  ;;  %v8912_v57 = vld [vmem:[#allocation135_spill] sm:$0xff] }
 0x43f   :  { %4923 = vmatpush1.bf16.msra.mxu0 %v8902_v42  ;;  %4987 = vmatpush1.bf16.msra.mxu1 %v8903_v21  ;;  %v8913_v42 = vld [vmem:[#allocation136_spill] sm:$0xff]  ;;  %v8914_v21 = vld [vmem:[#allocation137_spill] sm:$0xff] }
 0x440   :  { %4925 = vmatprep.subr.bf16.mxu0 %v8904_v47  ;;  %4989 = vmatprep.subr.bf16.mxu1 %v8905_v10  ;;  %v8915_v47 = vld [vmem:[#allocation138_spill] sm:$0xff]  ;;  %v8916_v10 = vld [vmem:[#allocation139_spill] sm:$0xff] }
 0x443   :  { %4927 = vmatpush1.bf16.msra.mxu0 %v8906_v61  ;;  %4991 = vmatpush1.bf16.msra.mxu1 %v8907_v3  ;;  %v8917_v61 = vld [vmem:[#allocation140_spill] sm:$0xff]  ;;  %v8918_v3 = vld [vmem:[#allocation141_spill] sm:$0xff] }
 0x444   :  { %4929 = vmatprep.subr.bf16.mxu0 %v8908_v40  ;;  %4993 = vmatprep.subr.bf16.mxu1 %v8909_v17  ;;  %v8919_v40 = vld [vmem:[#allocation142_spill] sm:$0xff]  ;;  %v8920_v17 = vld [vmem:[#allocation143_spill] sm:$0xff] }
 0x447   :  { %4931 = vmatpush1.bf16.msra.mxu0 %v8910_v35  ;;  %4995 = vmatpush1.bf16.msra.mxu1 %v8911_v8 }
 0x448   :  { %4933 = vmatprep.subr.bf16.mxu0 %v8912_v57  ;;  %4997 = vmatprep.subr.bf16.mxu1 %v8913_v42 }
 0x44b   :  { %4935 = vmatpush1.bf16.msra.mxu0 %v8914_v21  ;;  %4999 = vmatpush1.bf16.msra.mxu1 %v8915_v47 }
 0x44c   :  { %4937 = vmatprep.subr.bf16.mxu0 %v8916_v10  ;;  %5001 = vmatprep.subr.bf16.mxu1 %v8917_v61 }
 0x44f   :  { %4939 = vmatpush1.bf16.msra.mxu0 %v8918_v3  ;;  %5003 = vmatpush1.bf16.msra.mxu1 %v8919_v40 }
 0x450   :  { %4941 = vmatprep.subr.bf16.mxu0 %v8920_v17  ;;  %5005 = vmatprep.subr.bf16.mxu1 %v8830_v53 }
 0x453   :  { %4943 = vmatpush1.bf16.msra.mxu0 %v8831_v51  ;;  %5007 = vmatpush1.bf16.msra.mxu1 %v8832_v31 }
 0x454   :  { %4945 = vmatprep.subr.bf16.mxu0 %v8833_v2  ;;  %5009 = vmatprep.subr.bf16.mxu1 %v8834_v39 }
 0x457   :  { %4947 = vmatpush1.bf16.msra.mxu0 %v8835_v25  ;;  %5011 = vmatpush1.bf16.msra.mxu1 %v8836_v16 }
 0x458   :  { %4949 = vmatprep.subr.bf16.mxu0 %v8837_v62  ;;  %5013 = vmatprep.subr.bf16.mxu1 %v8838_v9 }
 0x45b   :  { %4951 = vmatpush1.bf16.msra.mxu0 %v8839_v49  ;;  %5015 = vmatpush1.bf16.msra.mxu1 %v8840_v12 }
 0x45c   :  { %4953 = vmatprep.subr.bf16.mxu0 %v7214_v22  ;;  %5017 = vmatprep.subr.bf16.mxu1 %v7216_v0 }
 0x45f   :  { %4955 = vmatpush1.bf16.msra.mxu0 %v7220_v59  ;;  %5019 = vmatpush1.bf16.msra.mxu1 %v7222_v1 }
 0x460   :  { %4957 = vmatprep.subr.bf16.mxu0 %v7226_v18  ;;  %5021 = vmatprep.subr.bf16.mxu1 %v7228_v50 }
 0x463   :  { %4959 = vmatpush1.bf16.msra.mxu0 %v7232_v27  ;;  %5023 = vmatpush1.bf16.msra.mxu1 %v7234_v34  ;;  %v8979_v34 = vld [vmem:[#allocation88_spill] sm:$0xff]  ;;  %v8980_v27 = vld [vmem:[#allocation89_spill] sm:$0xff] }
 0x464   :  { %4961 = vmatprep.subr.bf16.mxu0 %v7238_v13  ;;  %5025 = vmatprep.subr.bf16.mxu1 %v7240_v43 }
 0x467   :  { %4963 = vmatpush1.bf16.msra.mxu0 %v7244_v14  ;;  %5027 = vmatpush1.bf16.msra.mxu1 %v7246_v58  ;;  %v8921_v58 = vld [vmem:[#allocation27_spill] sm:$0xff]  ;;  %v8924_v14 = vld [vmem:[#allocation30_spill] sm:$0xff] }
 0x468   :  { %5029 = vmatprep.subr.bf16.mxu0 %v6790_v19  ;;  %5093 = vmatprep.subr.bf16.mxu1 %v6792_v23  ;;  %v8922_v19 = vld [vmem:[#allocation28_spill] sm:$0xff]  ;;  %v8923_v23 = vld [vmem:[#allocation29_spill] sm:$0xff] }
 0x46a   :  { %1941 = vmatmul.mubr.f32.vlgmr.msra.gmra.mrb[18].mxu0 %v7503_v26  ;;  %2012 = vmatmul.mubr.f32.vlgmr.msra.gmra.mrb[18].mxu1 %v7503_v26  ;;  %v8925_v26 = vld [vmem:[#allocation31_spill] sm:$0xff] }
 0x46b   :  { %5031 = vmatpush1.bf16.msra.mxu0 %v6794_v24  ;;  %5095 = vmatpush1.bf16.msra.mxu1 %v6797_v41  ;;  %v8926_v24 = vld [vmem:[#allocation32_spill] sm:$0xff]  ;;  %v8927_v41 = vld [vmem:[#allocation33_spill] sm:$0xff] }
 0x46c   :  { %5033 = vmatprep.subr.bf16.mxu0 %v6802_v28  ;;  %5097 = vmatprep.subr.bf16.mxu1 %v6804_v32  ;;  %v8928_v28 = vld [vmem:[#allocation34_spill] sm:$0xff]  ;;  %v8929_v32 = vld [vmem:[#allocation35_spill] sm:$0xff] }
 0x46f   :  { %5035 = vmatpush1.bf16.msra.mxu0 %v6806_v33  ;;  %5099 = vmatpush1.bf16.msra.mxu1 %v6809_v36  ;;  %v8930_v33 = vld [vmem:[#allocation36_spill] sm:$0xff]  ;;  %v8931_v36 = vld [vmem:[#allocation37_spill] sm:$0xff] }
 0x470   :  { %5037 = vmatprep.subr.bf16.mxu0 %v8921_v58  ;;  %5101 = vmatprep.subr.bf16.mxu1 %v8922_v19  ;;  %v8932_v58 = vld [vmem:[#allocation38_spill] sm:$0xff]  ;;  %v8933_v19 = vld [vmem:[#allocation39_spill] sm:$0xff] }
 0x473   :  { %5039 = vmatpush1.bf16.msra.mxu0 %v8923_v23  ;;  %5103 = vmatpush1.bf16.msra.mxu1 %v8924_v14  ;;  %v8934_v23 = vld [vmem:[#allocation40_spill] sm:$0xff]  ;;  %v8935_v14 = vld [vmem:[#allocation41_spill] sm:$0xff] }
 0x474   :  { %5041 = vmatprep.subr.bf16.mxu0 %v8925_v26  ;;  %5105 = vmatprep.subr.bf16.mxu1 %v8926_v24  ;;  %v8936_v26 = vld [vmem:[#allocation42_spill] sm:$0xff]  ;;  %v8937_v24 = vld [vmem:[#allocation43_spill] sm:$0xff] }
 0x477   :  { %5043 = vmatpush1.bf16.msra.mxu0 %v8927_v41  ;;  %5107 = vmatpush1.bf16.msra.mxu1 %v8928_v28  ;;  %v8938_v41 = vld [vmem:[#allocation44_spill] sm:$0xff]  ;;  %v8939_v28 = vld [vmem:[#allocation45_spill] sm:$0xff] }
 0x478   :  { %5045 = vmatprep.subr.bf16.mxu0 %v8929_v32  ;;  %5109 = vmatprep.subr.bf16.mxu1 %v8930_v33  ;;  %v8940_v32 = vld [vmem:[#allocation46_spill] sm:$0xff]  ;;  %v8941_v33 = vld [vmem:[#allocation47_spill] sm:$0xff] }
 0x47b   :  { %5047 = vmatpush1.bf16.msra.mxu0 %v8931_v36  ;;  %5111 = vmatpush1.bf16.msra.mxu1 %v8932_v58  ;;  %v8942_v36 = vld [vmem:[#allocation48_spill] sm:$0xff]  ;;  %v8943_v58 = vld [vmem:[#allocation49_spill] sm:$0xff] }
 0x47c   :  { %5049 = vmatprep.subr.bf16.mxu0 %v8933_v19  ;;  %5113 = vmatprep.subr.bf16.mxu1 %v8934_v23  ;;  %v8944_v19 = vld [vmem:[#allocation50_spill] sm:$0xff]  ;;  %v8945_v23 = vld [vmem:[#allocation51_spill] sm:$0xff] }
 0x47f   :  { %5051 = vmatpush1.bf16.msra.mxu0 %v8935_v14  ;;  %5115 = vmatpush1.bf16.msra.mxu1 %v8936_v26  ;;  %v8946_v14 = vld [vmem:[#allocation52_spill] sm:$0xff]  ;;  %v8947_v26 = vld [vmem:[#allocation53_spill] sm:$0xff] }
 0x480   :  { %5053 = vmatprep.subr.bf16.mxu0 %v8937_v24  ;;  %5117 = vmatprep.subr.bf16.mxu1 %v8938_v41  ;;  %v8948_v24 = vld [vmem:[#allocation54_spill] sm:$0xff]  ;;  %v8949_v41 = vld [vmem:[#allocation55_spill] sm:$0xff] }
 0x483   :  { %5055 = vmatpush1.bf16.msra.mxu0 %v8939_v28  ;;  %5119 = vmatpush1.bf16.msra.mxu1 %v8940_v32  ;;  %v8950_v28 = vld [vmem:[#allocation56_spill] sm:$0xff]  ;;  %v8951_v32 = vld [vmem:[#allocation57_spill] sm:$0xff] }
 0x484   :  { %5057 = vmatprep.subr.bf16.mxu0 %v8941_v33  ;;  %5121 = vmatprep.subr.bf16.mxu1 %v8942_v36  ;;  %v8952_v33 = vld [vmem:[#allocation58_spill] sm:$0xff]  ;;  %v8953_v36 = vld [vmem:[#allocation59_spill] sm:$0xff] }
 0x487   :  { %5059 = vmatpush1.bf16.msra.mxu0 %v8943_v58  ;;  %5123 = vmatpush1.bf16.msra.mxu1 %v8944_v19  ;;  %v8954_v58 = vld [vmem:[#allocation60_spill] sm:$0xff]  ;;  %v8955_v19 = vld [vmem:[#allocation61_spill] sm:$0xff] }
 0x488   :  { %5061 = vmatprep.subr.bf16.mxu0 %v8945_v23  ;;  %5125 = vmatprep.subr.bf16.mxu1 %v8946_v14  ;;  %v8956_v23 = vld [vmem:[#allocation62_spill] sm:$0xff]  ;;  %v8957_v14 = vld [vmem:[#allocation63_spill] sm:$0xff] }
 0x48b   :  { %5063 = vmatpush1.bf16.msra.mxu0 %v8947_v26  ;;  %5127 = vmatpush1.bf16.msra.mxu1 %v8948_v24  ;;  %v8958_v26 = vld [vmem:[#allocation64_spill] sm:$0xff]  ;;  %v8959_v24 = vld [vmem:[#allocation65_spill] sm:$0xff] }
 0x48c   :  { %5065 = vmatprep.subr.bf16.mxu0 %v8949_v41  ;;  %5129 = vmatprep.subr.bf16.mxu1 %v8950_v28  ;;  %v8960_v41 = vld [vmem:[#allocation66_spill] sm:$0xff]  ;;  %v8961_v28 = vld [vmem:[#allocation67_spill] sm:$0xff] }
 0x48f   :  { %5067 = vmatpush1.bf16.msra.mxu0 %v8951_v32  ;;  %5131 = vmatpush1.bf16.msra.mxu1 %v8952_v33  ;;  %v8962_v32 = vld [vmem:[#allocation68_spill] sm:$0xff]  ;;  %v8963_v33 = vld [vmem:[#allocation69_spill] sm:$0xff] }
 0x490   :  { %5069 = vmatprep.subr.bf16.mxu0 %v8953_v36  ;;  %5133 = vmatprep.subr.bf16.mxu1 %v8954_v58  ;;  %v8964_v36 = vld [vmem:[#allocation70_spill] sm:$0xff]  ;;  %v8965_v58 = vld [vmem:[#allocation71_spill] sm:$0xff] }
 0x493   :  { %5071 = vmatpush1.bf16.msra.mxu0 %v8955_v19  ;;  %5135 = vmatpush1.bf16.msra.mxu1 %v8956_v23  ;;  %v8966_v19 = vld [vmem:[#allocation72_spill] sm:$0xff]  ;;  %v8967_v23 = vld [vmem:[#allocation73_spill] sm:$0xff] }
 0x494   :  { %5073 = vmatprep.subr.bf16.mxu0 %v8957_v14  ;;  %5137 = vmatprep.subr.bf16.mxu1 %v8958_v26  ;;  %v8968_v14 = vld [vmem:[#allocation74_spill] sm:$0xff]  ;;  %v8969_v26 = vld [vmem:[#allocation75_spill] sm:$0xff] }
 0x497   :  { %5075 = vmatpush1.bf16.msra.mxu0 %v8959_v24  ;;  %5139 = vmatpush1.bf16.msra.mxu1 %v8960_v41  ;;  %v8970_v24 = vld [vmem:[#allocation76_spill] sm:$0xff]  ;;  %v8971_v41 = vld [vmem:[#allocation77_spill] sm:$0xff] }
 0x498   :  { %5077 = vmatprep.subr.bf16.mxu0 %v8961_v28  ;;  %5141 = vmatprep.subr.bf16.mxu1 %v8962_v32  ;;  %v8972_v28 = vld [vmem:[#allocation78_spill] sm:$0xff]  ;;  %v8973_v32 = vld [vmem:[#allocation79_spill] sm:$0xff] }
 0x49b   :  { %5079 = vmatpush1.bf16.msra.mxu0 %v8963_v33  ;;  %5143 = vmatpush1.bf16.msra.mxu1 %v8964_v36  ;;  %v8974_v33 = vld [vmem:[#allocation80_spill] sm:$0xff]  ;;  %v8975_v36 = vld [vmem:[#allocation81_spill] sm:$0xff] }
 0x49c   :  { %5081 = vmatprep.subr.bf16.mxu0 %v8965_v58  ;;  %5145 = vmatprep.subr.bf16.mxu1 %v8966_v19  ;;  %v8976_v58 = vld [vmem:[#allocation82_spill] sm:$0xff]  ;;  %v8977_v19 = vld [vmem:[#allocation83_spill] sm:$0xff] }
 0x49f   :  { %5083 = vmatpush1.bf16.msra.mxu0 %v8967_v23  ;;  %5147 = vmatpush1.bf16.msra.mxu1 %v8968_v14  ;;  %v8978_v23 = vld [vmem:[#allocation84_spill] sm:$0xff] }
 0x4a0   :  { %5085 = vmatprep.subr.bf16.mxu0 %v8969_v26  ;;  %5149 = vmatprep.subr.bf16.mxu1 %v8970_v24 }
 0x4a3   :  { %5087 = vmatpush1.bf16.msra.mxu0 %v8971_v41  ;;  %5151 = vmatpush1.bf16.msra.mxu1 %v8972_v28 }
 0x4a4   :  { %5089 = vmatprep.subr.bf16.mxu0 %v8973_v32  ;;  %5153 = vmatprep.subr.bf16.mxu1 %v8974_v33 }
 0x4a7   :  { %5091 = vmatpush1.bf16.msra.mxu0 %v8975_v36  ;;  %5155 = vmatpush1.bf16.msra.mxu1 %v8976_v58  ;;  %v8981_v58 = vld [vmem:[#allocation92_spill] sm:$0xff] }
 0x4a8   :  { %5157 = vmatprep.subr.bf16.mxu0 %v8977_v19  ;;  %5221 = vmatprep.subr.bf16.mxu1 %v8978_v23  ;;  %v8982_v23 = vld [vmem:[#allocation93_spill] sm:$0xff] }
 0x4fd   :  { %v1800_v14 = vpop.f32.mrb[16].mxu0  ;;  %v1871_v26 = vpop.f32.mrb[16].mxu1 }
 0x4fe   :  { %v2026_v43 = vrot.slane %v1800_v14, 2  ;;  %v1802_v24 = vpop.f32.mrb[17].mxu0  ;;  %v1873_v13 = vpop.f32.mrb[17].mxu1  ;;  %v2028_v19 = vrot.slane %v1871_v26, 2 }
 0x4ff   :  { %v2027_v41 = vrot.slane %v1802_v24, 2  ;;  %v2029_v18 = vrot.slane %v1873_v13, 2 }
 0x500   :  { %v2042_v28 = vadd.f32 %v2026_v43, %v8979_v34  ;;  %v2044_v59 = vadd.f32 %v2028_v19, %v8982_v23 }
 0x501   :  { %v2043_v32 = vadd.f32 %v2027_v41, %v8980_v27  ;;  %v2045_v36 = vadd.f32 %v2029_v18, %v8981_v58  ;;  %v8983_v27 = vld [vmem:[#allocation104_spill] sm:$0xff] }
 0x502   :  { %v4098_v50 = vmul.f32 -1.442695, %v2042_v28 }
 0x503   :  { %v4099_v33 = vmul.f32 -1.442695, %v2043_v32  ;;  %v4100_v1 = vmul.f32 -1.442695, %v2045_v36 }
 0x504   :  { %6289 = vpow2.f32 %v4098_v50  ;;  %v2070_v50 = vrot.slane %v8983_v27, 6 }
 0x505   :  { %6291 = vpow2.f32 %v4099_v33 }
 0x506   :  { %6293 = vpow2.f32 %v4100_v1 }
 0x507   :  { %6295 = vtanh.f32 %v2044_v59 }
 0x50e   :  { %v6290_v0 = vpop.eup %6289 }
 0x50f   :  { %v6292_v14 = vpop.eup %6291  ;;  %v2053_v22 = vadd.f32 1.0, %v6290_v0 }
 0x510   :  { %v2059_v24 = vadd.f32 1.0, %v6292_v14  ;;  %v6294_v41 = vpop.eup %6293 }
 0x511   :  { %6297 = vrcp.f32 %v2053_v22  ;;  %v6296_v28 = vpop.eup %6295  ;;  %v2066_v18 = vadd.f32 1.0, %v6294_v41  ;;  %v8985_v22 = vld [vmem:[#allocation85_spill] sm:$0xff] }
 0x512   :  { %6299 = vrcp.f32 %v2059_v24 }
 0x513   :  { %6301 = vrcp.f32 %v2066_v18 }
 0x51b   :  { %v6298_v32 = vpop.eup %6297 }
 0x51c   :  { %v6300_v33 = vpop.eup %6299  ;;  %v2073_v34 = vmul.f32 %v6298_v32, %v6296_v28  ;;  %v8986_v32 = vld [vmem:[#allocation99_spill] sm:$0xff] }
 0x51d   :  { %v2072_v13 = vmul.f32 %v6300_v33, %v2070_v50  ;;  %v6302_v19 = vpop.eup %6301  ;;  %v8987_v27 = vrot.slane %v8986_v32, 2  ;;  %v8988_v33 = vrot.slane %v8885_v37, 2 }
 0x51f   :  { %v7642_v36 = vadd.f32 %v2073_v34, %v2072_v13 }
 0x521   :  { %8984 = vst [vmem:[#allocation105_spill] sm:$0xff] %v7642_v36  ;;  %6303 = vtanh.f32 %v7642_v36 }
 0x52b   :  { %v6304_v23 = vpop.eup %6303 }
 0x52c   :  { %v2076_v0 = vmul.f32 %v6304_v23, %v6302_v19  ;;  %v8989_v23 = vrot.slane %v8887_v45, 2 }
 0x52e   :  { %v2105_v59 = vcombine.high %v2076_v0, %v2076_v0 }
 0x530   :  { %v2112_v1 = vrot.slane %v2105_v59, %v8985_v22 }
 0x532   :  { %v2113_v43 = vcombine.high %v2112_v1, %v2112_v1 }
 0x534   :  { %2116 = vst [vmem:[#allocation10 + $0xc] sm:$0x3] %v2113_v43 }
 0x53d   :  { %v1942_v58 = vpop.f32.mrb[18].mxu0  ;;  %v2013_v26 = vpop.f32.mrb[18].mxu1 }
 0x53e   :  { %v2030_v14 = vrot.slane %v1942_v58, 2  ;;  %v1944_v24 = vpop.f32.mrb[19].mxu0  ;;  %v2015_v28 = vpop.f32.mrb[19].mxu1  ;;  %v2032_v1 = vrot.slane %v2013_v26, 2  ;;  %v8990_v58 = vrot.slane %v8790_v30, 2 }
 0x53f   :  { %v2031_v41 = vrot.slane %v1944_v24, 2  ;;  %v2033_v19 = vrot.slane %v2015_v28, 2 }
 0x540   :  { %v2046_v50 = vadd.f32 %v2030_v14, %v8987_v27  ;;  %v2048_v36 = vadd.f32 %v2032_v1, %v8990_v58  ;;  %v2097_v27 = vrot.slane %v7500_v56, 6  ;;  %v8993_v1 = vld [vmem:[#allocation124_spill] sm:$0xff]  ;;  %v8995_v58 = vld [vmem:[#allocation126_spill] sm:$0xff] }
 0x541   :  { %v2047_v34 = vadd.f32 %v2031_v41, %v8988_v33  ;;  %v2049_v59 = vadd.f32 %v2033_v19, %v8989_v23  ;;  %v7658_v19 = vrot.slane %v2076_v0, 6  ;;  %v8991_v0 = vld [vmem:[#allocation122_spill] sm:$0xff] }
 0x542   :  { %v4101_v18 = vmul.f32 -1.442695, %v2046_v50 }
 0x543   :  { %v4102_v13 = vmul.f32 -1.442695, %v2047_v34  ;;  %v4103_v43 = vmul.f32 -1.442695, %v2049_v59  ;;  %v8992_v59 = vld [vmem:[#allocation123_spill] sm:$0xff] }
 0x544   :  { %6305 = vpow2.f32 %v4101_v18 }
 0x545   :  { %6307 = vpow2.f32 %v4102_v13 }
 0x546   :  { %6309 = vpow2.f32 %v4103_v43  ;;  %v8994_v43 = vld [vmem:[#allocation125_spill] sm:$0xff] }
 0x547   :  { %6311 = vtanh.f32 %v2048_v36 }
 0x54e   :  { %v6306_v24 = vpop.eup %6305 }
 0x54f   :  { %v6308_v12 = vpop.eup %6307  ;;  %v2080_v32 = vadd.f32 1.0, %v6306_v24  ;;  %v8996_v24 = vld [vmem:[#allocation127_spill] sm:$0xff] }
 0x550   :  { %v2086_v37 = vadd.f32 1.0, %v6308_v12  ;;  %v6310_v14 = vpop.eup %6309 }
 0x551   :  { %6313 = vrcp.f32 %v2080_v32  ;;  %v6312_v28 = vpop.eup %6311  ;;  %v2093_v26 = vadd.f32 1.0, %v6310_v14  ;;  %v8997_v32 = vld [vmem:[#allocation128_spill] sm:$0xff]  ;;  %v8999_v14 = vld [vmem:[#allocation130_spill] sm:$0xff] }
 0x552   :  { %6315 = vrcp.f32 %v2086_v37  ;;  %v8998_v37 = vld [vmem:[#allocation129_spill] sm:$0xff] }
 0x553   :  { %6317 = vrcp.f32 %v2093_v26  ;;  %v9005_v26 = vld [vmem:[#allocation157_spill] sm:$0xff] }
 0x55b   :  { %v6314_v41 = vpop.eup %6313 }
 0x55c   :  { %v6316_v45 = vpop.eup %6315  ;;  %v2100_v50 = vmul.f32 %v6314_v41, %v6312_v28  ;;  %v9000_v28 = vld [vmem:[#allocation131_spill] sm:$0xff]  ;;  %v9001_v41 = vld [vmem:[#allocation132_spill] sm:$0xff] }
 0x55d   :  { %v2099_v33 = vmul.f32 %v6316_v45, %v2097_v27  ;;  %v6318_v30 = vpop.eup %6317  ;;  %v9002_v27 = vld [vmem:[#allocation154_spill] sm:$0xff]  ;;  %v9003_v45 = vld [vmem:[#allocation155_spill] sm:$0xff] }
 0x55f   :  { %v7655_v34 = vadd.f32 %v2100_v50, %v2099_v33  ;;  %v9004_v50 = vld [vmem:[#allocation156_spill] sm:$0xff]  ;;  %v9006_v33 = vld [vmem:[#allocation158_spill] sm:$0xff] }
 0x561   :  { %6319 = vtanh.f32 %v7655_v34 }
 0x56b   :  { %v6320_v18 = vpop.eup %6319 }
 0x56c   :  { %v2103_v36 = vmul.f32 %v6320_v18, %v6318_v30  ;;  %v9007_v30 = vld [vmem:[#allocation159_spill] sm:$0xff]  ;;  %v9008_v18 = vld [vmem:[#allocation160_spill] sm:$0xff] }
 0x56e   :  { %v2118_v12 = vcombine.high %v2103_v36, %v2103_v36  ;;  %v2143_v13 = vrot.slane %v2103_v36, 6  ;;  %v9009_v36 = vld [vmem:[#allocation161_spill] sm:$0xff] }
 0x570   :  { %v2125_v23 = vrot.slane %v2118_v12, %v8985_v22  ;;  %2210 = vmatprep.mubr.f32.mxu0 %v2143_v13  ;;  %2281 = vmatprep.mubr.f32.mxu1 %v2143_v13  ;;  %v9010_v12 = vld [vmem:[#allocation162_spill] sm:$0xff] }
 0x571   :  { %2211 = vmatmul.mubr.f32.vlgmr.msra.gmra.mrb[20].mxu0 %v7658_v19  ;;  %2282 = vmatmul.mubr.f32.vlgmr.msra.gmra.mrb[20].mxu1 %v7658_v19  ;;  %v9014_v22 = vld [vmem:[#allocation166_spill] sm:$0xff] }
 0x572   :  { %v2126_v56 = vcombine.high %v2125_v23, %v2125_v23  ;;  %5159 = vmatpush1.bf16.msra.mxu0 %v7064_v5  ;;  %5223 = vmatpush1.bf16.msra.mxu1 %v8792_v46  ;;  %v9012_v23 = vld [vmem:[#allocation164_spill] sm:$0xff] }
 0x573   :  { %2352 = vmatprep.mubr.f32.mxu0 %v2143_v13  ;;  %2423 = vmatprep.mubr.f32.mxu1 %v2143_v13  ;;  %v9011_v13 = vld [vmem:[#allocation163_spill] sm:$0xff] }
 0x574   :  { %2129 = vst [vmem:[#allocation10 + $0x12] sm:$0x3] %v2126_v56  ;;  %5161 = vmatprep.subr.bf16.mxu0 %v8793_v60  ;;  %5225 = vmatprep.subr.bf16.mxu1 %v8794_v4  ;;  %v9013_v56 = vld [vmem:[#allocation165_spill] sm:$0xff] }
 0x576   :  { %5163 = vmatpush1.bf16.msra.mxu0 %v8795_v6  ;;  %5227 = vmatpush1.bf16.msra.mxu1 %v8796_v63 }
 0x577   :  { %5165 = vmatprep.subr.bf16.mxu0 %v8797_v54  ;;  %5229 = vmatprep.subr.bf16.mxu1 %v8798_v38 }
 0x57a   :  { %5167 = vmatpush1.bf16.msra.mxu0 %v8890_v55  ;;  %5231 = vmatpush1.bf16.msra.mxu1 %v8891_v48 }
 0x57b   :  { %5169 = vmatprep.subr.bf16.mxu0 %v8892_v52  ;;  %5233 = vmatprep.subr.bf16.mxu1 %v8893_v15 }
 0x57e   :  { %5171 = vmatpush1.bf16.msra.mxu0 %v8894_v44  ;;  %5235 = vmatpush1.bf16.msra.mxu1 %v8895_v20 }
 0x57f   :  { %5173 = vmatprep.subr.bf16.mxu0 %v8896_v29  ;;  %5237 = vmatprep.subr.bf16.mxu1 %v8897_v7 }
 0x582   :  { %5175 = vmatpush1.bf16.msra.mxu0 %v8898_v11  ;;  %5239 = vmatpush1.bf16.msra.mxu1 %v8991_v0 }
 0x583   :  { %5177 = vmatprep.subr.bf16.mxu0 %v8992_v59  ;;  %5241 = vmatprep.subr.bf16.mxu1 %v8993_v1 }
 0x586   :  { %5179 = vmatpush1.bf16.msra.mxu0 %v8994_v43  ;;  %5243 = vmatpush1.bf16.msra.mxu1 %v8995_v58 }
 0x587   :  { %5181 = vmatprep.subr.bf16.mxu0 %v8996_v24  ;;  %5245 = vmatprep.subr.bf16.mxu1 %v8997_v32 }
 0x58a   :  { %5183 = vmatpush1.bf16.msra.mxu0 %v8998_v37  ;;  %5247 = vmatpush1.bf16.msra.mxu1 %v8999_v14 }
 0x58b   :  { %5185 = vmatprep.subr.bf16.mxu0 %v9000_v28  ;;  %5249 = vmatprep.subr.bf16.mxu1 %v9001_v41 }
 0x58e   :  { %5187 = vmatpush1.bf16.msra.mxu0 %v8910_v35  ;;  %5251 = vmatpush1.bf16.msra.mxu1 %v8911_v8 }
 0x58f   :  { %5189 = vmatprep.subr.bf16.mxu0 %v8912_v57  ;;  %5253 = vmatprep.subr.bf16.mxu1 %v8913_v42 }
 0x592   :  { %5191 = vmatpush1.bf16.msra.mxu0 %v8914_v21  ;;  %5255 = vmatpush1.bf16.msra.mxu1 %v8915_v47 }
 0x593   :  { %5193 = vmatprep.subr.bf16.mxu0 %v8916_v10  ;;  %5257 = vmatprep.subr.bf16.mxu1 %v8917_v61 }
 0x596   :  { %5195 = vmatpush1.bf16.msra.mxu0 %v8918_v3  ;;  %5259 = vmatpush1.bf16.msra.mxu1 %v8919_v40 }
 0x597   :  { %5197 = vmatprep.subr.bf16.mxu0 %v8920_v17  ;;  %5261 = vmatprep.subr.bf16.mxu1 %v8830_v53 }
 0x59a   :  { %5199 = vmatpush1.bf16.msra.mxu0 %v8831_v51  ;;  %5263 = vmatpush1.bf16.msra.mxu1 %v8832_v31 }
 0x59b   :  { %5201 = vmatprep.subr.bf16.mxu0 %v8833_v2  ;;  %5265 = vmatprep.subr.bf16.mxu1 %v8834_v39 }
 0x59e   :  { %5203 = vmatpush1.bf16.msra.mxu0 %v8835_v25  ;;  %5267 = vmatpush1.bf16.msra.mxu1 %v8836_v16 }
 0x59f   :  { %5205 = vmatprep.subr.bf16.mxu0 %v8837_v62  ;;  %5269 = vmatprep.subr.bf16.mxu1 %v8838_v9 }
 0x5a2   :  { %5207 = vmatpush1.bf16.msra.mxu0 %v8839_v49  ;;  %5271 = vmatpush1.bf16.msra.mxu1 %v9002_v27  ;;  %v9082_v27 = vld [vmem:[#allocation91_spill] sm:$0xff] }
 0x5a3   :  { %5209 = vmatprep.subr.bf16.mxu0 %v9003_v45  ;;  %5273 = vmatprep.subr.bf16.mxu1 %v9004_v50  ;;  %v9015_v50 = vld [vmem:[#allocation19_spill] sm:$0xff] }
 0x5a6   :  { %5211 = vmatpush1.bf16.msra.mxu0 %v9005_v26  ;;  %5275 = vmatpush1.bf16.msra.mxu1 %v9006_v33  ;;  %v9016_v26 = vld [vmem:[#allocation20_spill] sm:$0xff]  ;;  %v9081_v33 = vld [vmem:[#allocation90_spill] sm:$0xff] }
 0x5a7   :  { %5213 = vmatprep.subr.bf16.mxu0 %v9007_v30  ;;  %5277 = vmatprep.subr.bf16.mxu1 %v9008_v18  ;;  %v9017_v18 = vld [vmem:[#allocation21_spill] sm:$0xff]  ;;  %v9026_v30 = vld [vmem:[#allocation30_spill] sm:$0xff] }
 0x5aa   :  { %5215 = vmatpush1.bf16.msra.mxu0 %v9009_v36  ;;  %5279 = vmatpush1.bf16.msra.mxu1 %v9010_v12  ;;  %v9018_v36 = vld [vmem:[#allocation22_spill] sm:$0xff]  ;;  %v9019_v12 = vld [vmem:[#allocation23_spill] sm:$0xff] }
 0x5ab   :  { %5217 = vmatprep.subr.bf16.mxu0 %v9011_v13  ;;  %5281 = vmatprep.subr.bf16.mxu1 %v9012_v23  ;;  %v9020_v13 = vld [vmem:[#allocation24_spill] sm:$0xff]  ;;  %v9021_v23 = vld [vmem:[#allocation25_spill] sm:$0xff] }
 0x5ae   :  { %5219 = vmatpush1.bf16.msra.mxu0 %v9013_v56  ;;  %5283 = vmatpush1.bf16.msra.mxu1 %v9014_v22  ;;  %v9022_v56 = vld [vmem:[#allocation26_spill] sm:$0xff]  ;;  %v9023_v22 = vld [vmem:[#allocation27_spill] sm:$0xff] }
 0x5af   :  { %5285 = vmatprep.subr.bf16.mxu0 %v9015_v50  ;;  %5349 = vmatprep.subr.bf16.mxu1 %v9016_v26  ;;  %v9024_v50 = vld [vmem:[#allocation28_spill] sm:$0xff]  ;;  %v9025_v26 = vld [vmem:[#allocation29_spill] sm:$0xff] }
 0x5b1   :  { %2353 = vmatmul.mubr.f32.vlgmr.msra.gmra.mrb[22].mxu0 %v7658_v19  ;;  %2424 = vmatmul.mubr.f32.vlgmr.msra.gmra.mrb[22].mxu1 %v7658_v19  ;;  %v9027_v19 = vld [vmem:[#allocation31_spill] sm:$0xff] }
 0x5b2   :  { %5287 = vmatpush1.bf16.msra.mxu0 %v9017_v18  ;;  %5351 = vmatpush1.bf16.msra.mxu1 %v9018_v36  ;;  %v9028_v18 = vld [vmem:[#allocation32_spill] sm:$0xff]  ;;  %v9029_v36 = vld [vmem:[#allocation33_spill] sm:$0xff] }
 0x5b3   :  { %5289 = vmatprep.subr.bf16.mxu0 %v9019_v12  ;;  %5353 = vmatprep.subr.bf16.mxu1 %v9020_v13  ;;  %v9030_v12 = vld [vmem:[#allocation34_spill] sm:$0xff]  ;;  %v9031_v13 = vld [vmem:[#allocation35_spill] sm:$0xff] }
 0x5b6   :  { %5291 = vmatpush1.bf16.msra.mxu0 %v9021_v23  ;;  %5355 = vmatpush1.bf16.msra.mxu1 %v9022_v56  ;;  %v9032_v23 = vld [vmem:[#allocation36_spill] sm:$0xff]  ;;  %v9033_v56 = vld [vmem:[#allocation37_spill] sm:$0xff] }
 0x5b7   :  { %5293 = vmatprep.subr.bf16.mxu0 %v9023_v22  ;;  %5357 = vmatprep.subr.bf16.mxu1 %v9024_v50  ;;  %v9034_v22 = vld [vmem:[#allocation38_spill] sm:$0xff]  ;;  %v9035_v50 = vld [vmem:[#allocation39_spill] sm:$0xff] }
 0x5ba   :  { %5295 = vmatpush1.bf16.msra.mxu0 %v9025_v26  ;;  %5359 = vmatpush1.bf16.msra.mxu1 %v9026_v30  ;;  %v9036_v26 = vld [vmem:[#allocation40_spill] sm:$0xff]  ;;  %v9037_v30 = vld [vmem:[#allocation41_spill] sm:$0xff] }
 0x5bb   :  { %5297 = vmatprep.subr.bf16.mxu0 %v9027_v19  ;;  %5361 = vmatprep.subr.bf16.mxu1 %v9028_v18  ;;  %v9038_v19 = vld [vmem:[#allocation42_spill] sm:$0xff]  ;;  %v9039_v18 = vld [vmem:[#allocation43_spill] sm:$0xff] }
 0x5be   :  { %5299 = vmatpush1.bf16.msra.mxu0 %v9029_v36  ;;  %5363 = vmatpush1.bf16.msra.mxu1 %v9030_v12  ;;  %v9040_v36 = vld [vmem:[#allocation44_spill] sm:$0xff]  ;;  %v9041_v12 = vld [vmem:[#allocation45_spill] sm:$0xff] }
 0x5bf   :  { %5301 = vmatprep.subr.bf16.mxu0 %v9031_v13  ;;  %5365 = vmatprep.subr.bf16.mxu1 %v9032_v23  ;;  %v9042_v13 = vld [vmem:[#allocation46_spill] sm:$0xff]  ;;  %v9043_v23 = vld [vmem:[#allocation47_spill] sm:$0xff] }
 0x5c2   :  { %5303 = vmatpush1.bf16.msra.mxu0 %v9033_v56  ;;  %5367 = vmatpush1.bf16.msra.mxu1 %v9034_v22  ;;  %v9044_v56 = vld [vmem:[#allocation48_spill] sm:$0xff]  ;;  %v9045_v22 = vld [vmem:[#allocation49_spill] sm:$0xff] }
 0x5c3   :  { %5305 = vmatprep.subr.bf16.mxu0 %v9035_v50  ;;  %5369 = vmatprep.subr.bf16.mxu1 %v9036_v26  ;;  %v9046_v50 = vld [vmem:[#allocation50_spill] sm:$0xff]  ;;  %v9047_v26 = vld [vmem:[#allocation51_spill] sm:$0xff] }
 0x5c6   :  { %5307 = vmatpush1.bf16.msra.mxu0 %v9037_v30  ;;  %5371 = vmatpush1.bf16.msra.mxu1 %v9038_v19  ;;  %v9048_v30 = vld [vmem:[#allocation52_spill] sm:$0xff]  ;;  %v9049_v19 = vld [vmem:[#allocation53_spill] sm:$0xff] }
 0x5c7   :  { %5309 = vmatprep.subr.bf16.mxu0 %v9039_v18  ;;  %5373 = vmatprep.subr.bf16.mxu1 %v9040_v36  ;;  %v9050_v18 = vld [vmem:[#allocation54_spill] sm:$0xff]  ;;  %v9051_v36 = vld [vmem:[#allocation55_spill] sm:$0xff] }
 0x5ca   :  { %5311 = vmatpush1.bf16.msra.mxu0 %v9041_v12  ;;  %5375 = vmatpush1.bf16.msra.mxu1 %v9042_v13  ;;  %v9052_v12 = vld [vmem:[#allocation56_spill] sm:$0xff]  ;;  %v9053_v13 = vld [vmem:[#allocation57_spill] sm:$0xff] }
 0x5cb   :  { %5313 = vmatprep.subr.bf16.mxu0 %v9043_v23  ;;  %5377 = vmatprep.subr.bf16.mxu1 %v9044_v56  ;;  %v9054_v23 = vld [vmem:[#allocation58_spill] sm:$0xff]  ;;  %v9055_v56 = vld [vmem:[#allocation59_spill] sm:$0xff] }
 0x5ce   :  { %5315 = vmatpush1.bf16.msra.mxu0 %v9045_v22  ;;  %5379 = vmatpush1.bf16.msra.mxu1 %v9046_v50  ;;  %v9056_v22 = vld [vmem:[#allocation60_spill] sm:$0xff]  ;;  %v9057_v50 = vld [vmem:[#allocation61_spill] sm:$0xff] }
 0x5cf   :  { %5317 = vmatprep.subr.bf16.mxu0 %v9047_v26  ;;  %5381 = vmatprep.subr.bf16.mxu1 %v9048_v30  ;;  %v9058_v26 = vld [vmem:[#allocation62_spill] sm:$0xff]  ;;  %v9059_v30 = vld [vmem:[#allocation63_spill] sm:$0xff] }
 0x5d2   :  { %5319 = vmatpush1.bf16.msra.mxu0 %v9049_v19  ;;  %5383 = vmatpush1.bf16.msra.mxu1 %v9050_v18  ;;  %v9060_v19 = vld [vmem:[#allocation64_spill] sm:$0xff]  ;;  %v9061_v18 = vld [vmem:[#allocation65_spill] sm:$0xff] }
 0x5d3   :  { %5321 = vmatprep.subr.bf16.mxu0 %v9051_v36  ;;  %5385 = vmatprep.subr.bf16.mxu1 %v9052_v12  ;;  %v9062_v36 = vld [vmem:[#allocation66_spill] sm:$0xff]  ;;  %v9063_v12 = vld [vmem:[#allocation67_spill] sm:$0xff] }
 0x5d6   :  { %5323 = vmatpush1.bf16.msra.mxu0 %v9053_v13  ;;  %5387 = vmatpush1.bf16.msra.mxu1 %v9054_v23  ;;  %v9064_v13 = vld [vmem:[#allocation68_spill] sm:$0xff]  ;;  %v9065_v23 = vld [vmem:[#allocation69_spill] sm:$0xff] }
 0x5d7   :  { %5325 = vmatprep.subr.bf16.mxu0 %v9055_v56  ;;  %5389 = vmatprep.subr.bf16.mxu1 %v9056_v22  ;;  %v9066_v56 = vld [vmem:[#allocation70_spill] sm:$0xff]  ;;  %v9067_v22 = vld [vmem:[#allocation71_spill] sm:$0xff] }
 0x5da   :  { %5327 = vmatpush1.bf16.msra.mxu0 %v9057_v50  ;;  %5391 = vmatpush1.bf16.msra.mxu1 %v9058_v26  ;;  %v9068_v50 = vld [vmem:[#allocation72_spill] sm:$0xff]  ;;  %v9069_v26 = vld [vmem:[#allocation73_spill] sm:$0xff] }
 0x5db   :  { %5329 = vmatprep.subr.bf16.mxu0 %v9059_v30  ;;  %5393 = vmatprep.subr.bf16.mxu1 %v9060_v19  ;;  %v9070_v30 = vld [vmem:[#allocation74_spill] sm:$0xff]  ;;  %v9071_v19 = vld [vmem:[#allocation75_spill] sm:$0xff] }
 0x5de   :  { %5331 = vmatpush1.bf16.msra.mxu0 %v9061_v18  ;;  %5395 = vmatpush1.bf16.msra.mxu1 %v9062_v36  ;;  %v9072_v18 = vld [vmem:[#allocation76_spill] sm:$0xff]  ;;  %v9073_v36 = vld [vmem:[#allocation77_spill] sm:$0xff] }
 0x5df   :  { %5333 = vmatprep.subr.bf16.mxu0 %v9063_v12  ;;  %5397 = vmatprep.subr.bf16.mxu1 %v9064_v13  ;;  %v9074_v12 = vld [vmem:[#allocation78_spill] sm:$0xff]  ;;  %v9075_v13 = vld [vmem:[#allocation79_spill] sm:$0xff] }
 0x5e2   :  { %5335 = vmatpush1.bf16.msra.mxu0 %v9065_v23  ;;  %5399 = vmatpush1.bf16.msra.mxu1 %v9066_v56  ;;  %v9076_v23 = vld [vmem:[#allocation80_spill] sm:$0xff]  ;;  %v9077_v56 = vld [vmem:[#allocation81_spill] sm:$0xff] }
 0x5e3   :  { %5337 = vmatprep.subr.bf16.mxu0 %v9067_v22  ;;  %5401 = vmatprep.subr.bf16.mxu1 %v9068_v50  ;;  %v9078_v22 = vld [vmem:[#allocation82_spill] sm:$0xff]  ;;  %v9079_v50 = vld [vmem:[#allocation83_spill] sm:$0xff] }
 0x5e6   :  { %5339 = vmatpush1.bf16.msra.mxu0 %v9069_v26  ;;  %5403 = vmatpush1.bf16.msra.mxu1 %v9070_v30  ;;  %v9080_v26 = vld [vmem:[#allocation84_spill] sm:$0xff] }
 0x5e7   :  { %5341 = vmatprep.subr.bf16.mxu0 %v9071_v19  ;;  %5405 = vmatprep.subr.bf16.mxu1 %v9072_v18 }
 0x5ea   :  { %5343 = vmatpush1.bf16.msra.mxu0 %v9073_v36  ;;  %5407 = vmatpush1.bf16.msra.mxu1 %v9074_v12 }
 0x5eb   :  { %5345 = vmatprep.subr.bf16.mxu0 %v9075_v13  ;;  %5409 = vmatprep.subr.bf16.mxu1 %v9076_v23  ;;  %v9083_v23 = vld [vmem:[#allocation95_spill] sm:$0xff] }
 0x5ee   :  { %5347 = vmatpush1.bf16.msra.mxu0 %v9077_v56  ;;  %5411 = vmatpush1.bf16.msra.mxu1 %v9078_v22  ;;  %v9084_v22 = vld [vmem:[#allocation94_spill] sm:$0xff] }
 0x5ef   :  { %5413 = vmatprep.subr.bf16.mxu0 %v9079_v50  ;;  %5477 = vmatprep.subr.bf16.mxu1 %v9080_v26 }
 0x644   :  { %v2212_v30 = vpop.f32.mrb[20].mxu0  ;;  %v2283_v19 = vpop.f32.mrb[20].mxu1 }
 0x645   :  { %v2430_v18 = vadd.f32 %v2212_v30, %v9081_v33  ;;  %v2214_v45 = vpop.f32.mrb[21].mxu0  ;;  %v2285_v36 = vpop.f32.mrb[21].mxu1  ;;  %v2432_v62 = vadd.f32 %v2283_v19, %v9084_v22 }
 0x646   :  { %v2431_v12 = vadd.f32 %v2214_v45, %v9082_v27  ;;  %v2433_v56 = vadd.f32 %v2285_v36, %v9083_v23 }
 0x647   :  { %v4104_v49 = vmul.f32 -1.442695, %v2430_v18  ;;  %v9085_v18 = vld [vmem:[#allocation105_spill] sm:$0xff] }
 0x648   :  { %v4105_v13 = vmul.f32 -1.442695, %v2431_v12  ;;  %v4106_v9 = vmul.f32 -1.442695, %v2433_v56  ;;  %v2458_v12 = vrot.slane %v9085_v18, 6  ;;  %v9088_v18 = vld [vmem:[#allocation98_spill] sm:$0xff] }
 0x649   :  { %6321 = vpow2.f32 %v4104_v49  ;;  %v8588_v22 = vrot.slane %v9088_v18, 6 }
 0x64a   :  { %6323 = vpow2.f32 %v4105_v13 }
 0x64b   :  { %6325 = vpow2.f32 %v4106_v9 }
 0x64c   :  { %6327 = vtanh.f32 %v2432_v62 }
 0x653   :  { %v6322_v50 = vpop.eup %6321 }
 0x654   :  { %v6324_v16 = vpop.eup %6323  ;;  %v2441_v26 = vadd.f32 1.0, %v6322_v50 }
 0x655   :  { %v2447_v25 = vadd.f32 1.0, %v6324_v16  ;;  %v6326_v30 = vpop.eup %6325 }
 0x656   :  { %6329 = vrcp.f32 %v2441_v26  ;;  %v6328_v33 = vpop.eup %6327  ;;  %v2454_v27 = vadd.f32 1.0, %v6326_v30 }
 0x657   :  { %6331 = vrcp.f32 %v2447_v25  ;;  %v9087_v25 = vld [vmem:[#allocation97_spill] sm:$0xff] }
 0x658   :  { %6333 = vrcp.f32 %v2454_v27  ;;  %v8584_v16 = vrot.slane %v9087_v25, 6 }
 0x660   :  { %v6330_v45 = vpop.eup %6329 }
 0x661   :  { %v6332_v49 = vpop.eup %6331  ;;  %v2461_v13 = vmul.f32 %v6330_v45, %v6328_v33 }
 0x662   :  { %v2460_v36 = vmul.f32 %v6332_v49, %v2458_v12  ;;  %v6334_v50 = vpop.eup %6333 }
 0x664   :  { %v7798_v56 = vadd.f32 %v2461_v13, %v2460_v36  ;;  %v9089_v13 = vld [vmem:[#allocation102_spill] sm:$0xff] }
 0x665   :  { %v8587_v36 = vrot.slane %v9089_v13, 6 }
 0x666   :  { %9086 = vst [vmem:[#allocation106_spill] sm:$0xff] %v7798_v56  ;;  %6335 = vtanh.f32 %v7798_v56 }
 0x670   :  { %v6336_v9 = vpop.eup %6335 }
 0x671   :  { %v7801_v62 = vmul.f32 %v6336_v9, %v6334_v50  ;;  %v9090_v9 = vld [vmem:[#allocation101_spill] sm:$0xff] }
 0x672   :  { %v8590_v56 = vrot.slane %v9090_v9, 6 }
 0x673   :  { %2492 = vst [vmem:[#allocation10 + $0x10] sm:$0x3] %v7801_v62 }
 0x684   :  { %v2354_v26 = vpop.f32.mrb[22].mxu0  ;;  %v2425_v19 = vpop.f32.mrb[22].mxu1 }
 0x685   :  { %v2434_v33 = vadd.f32 %v2354_v26, %v8584_v16  ;;  %v2356_v30 = vpop.f32.mrb[23].mxu0  ;;  %v2427_v45 = vpop.f32.mrb[23].mxu1  ;;  %v2436_v26 = vadd.f32 %v2425_v19, %v8590_v56  ;;  %v9107_v56 = vld [vmem:[#allocation164_spill] sm:$0xff] }
 0x686   :  { %v2435_v27 = vadd.f32 %v2356_v30, %v8588_v22  ;;  %v2437_v50 = vadd.f32 %v2427_v45, %v8587_v36 }
 0x687   :  { %v4107_v12 = vmul.f32 -1.442695, %v2434_v33 }
 0x688   :  { %v4108_v49 = vmul.f32 -1.442695, %v2435_v27  ;;  %v4109_v23 = vmul.f32 -1.442695, %v2437_v50 }
 0x689   :  { %6337 = vpow2.f32 %v4107_v12 }
 0x68a   :  { %6339 = vpow2.f32 %v4108_v49  ;;  %v2485_v49 = vrot.slane %v7655_v34, 6  ;;  %v9093_v34 = vld [vmem:[#allocation150_spill] sm:$0xff] }
 0x68b   :  { %6341 = vpow2.f32 %v4109_v23 }
 0x68c   :  { %6343 = vtanh.f32 %v2436_v26  ;;  %v9096_v26 = vld [vmem:[#allocation153_spill] sm:$0xff] }
 0x693   :  { %v6338_v16 = vpop.eup %6337 }
 0x694   :  { %v6340_v25 = vpop.eup %6339  ;;  %v2468_v39 = vadd.f32 1.0, %v6338_v16 }
 0x695   :  { %v2474_v33 = vadd.f32 1.0, %v6340_v25  ;;  %v6342_v30 = vpop.eup %6341  ;;  %v9094_v25 = vld [vmem:[#allocation151_spill] sm:$0xff] }
 0x696   :  { %6345 = vrcp.f32 %v2468_v39  ;;  %v6344_v27 = vpop.eup %6343  ;;  %v2481_v22 = vadd.f32 1.0, %v6342_v30  ;;  %v9091_v39 = vld [vmem:[#allocation148_spill] sm:$0xff]  ;;  %v9098_v30 = vld [vmem:[#allocation155_spill] sm:$0xff] }
 0x697   :  { %6347 = vrcp.f32 %v2474_v33  ;;  %v9097_v33 = vld [vmem:[#allocation154_spill] sm:$0xff] }
 0x698   :  { %6349 = vrcp.f32 %v2481_v22  ;;  %v9092_v22 = vld [vmem:[#allocation149_spill] sm:$0xff] }
 0x6a0   :  { %v6346_v12 = vpop.eup %6345 }
 0x6a1   :  { %v6348_v45 = vpop.eup %6347  ;;  %v2488_v36 = vmul.f32 %v6346_v12, %v6344_v27  ;;  %v9099_v27 = vld [vmem:[#allocation156_spill] sm:$0xff]  ;;  %v9100_v12 = vld [vmem:[#allocation157_spill] sm:$0xff] }
 0x6a2   :  { %v2487_v50 = vmul.f32 %v6348_v45, %v2485_v49  ;;  %v6350_v16 = vpop.eup %6349  ;;  %v9101_v49 = vld [vmem:[#allocation158_spill] sm:$0xff]  ;;  %v9102_v45 = vld [vmem:[#allocation159_spill] sm:$0xff] }
 0x6a4   :  { %v7817_v13 = vadd.f32 %v2488_v36, %v2487_v50  ;;  %v9095_v36 = vld [vmem:[#allocation152_spill] sm:$0xff] }
 0x6a5   :  { %v9103_v50 = vld [vmem:[#allocation160_spill] sm:$0xff] }
 0x6a6   :  { %6351 = vtanh.f32 %v7817_v13 }
 0x6b0   :  { %v6352_v23 = vpop.eup %6351 }
 0x6b1   :  { %v2491_v19 = vmul.f32 %v6352_v23, %v6350_v16  ;;  %v9104_v16 = vld [vmem:[#allocation161_spill] sm:$0xff]  ;;  %v9105_v23 = vld [vmem:[#allocation162_spill] sm:$0xff] }
 0x6b3   :  { %2493 = vst [vmem:[#allocation10 + $0xe] sm:$0x3] %v2491_v19  ;;  %2566 = vmatprep.mubr.f32.mxu0 %v2491_v19  ;;  %2637 = vmatprep.mubr.f32.mxu1 %v2491_v19 }
 0x6b4   :  { %2567 = vmatmul.mubr.f32.vlgmr.msra.gmra.mrb[24].mxu0 %v7801_v62  ;;  %2638 = vmatmul.mubr.f32.vlgmr.msra.gmra.mrb[24].mxu1 %v7801_v62 }
 0x6b5   :  { %5415 = vmatpush1.bf16.msra.mxu0 %v7064_v5  ;;  %5479 = vmatpush1.bf16.msra.mxu1 %v8792_v46 }
 0x6b6   :  { %2708 = vmatprep.mubr.f32.mxu0 %v2491_v19  ;;  %2779 = vmatprep.mubr.f32.mxu1 %v2491_v19  ;;  %v9106_v19 = vld [vmem:[#allocation163_spill] sm:$0xff] }
 0x6b7   :  { %5417 = vmatprep.subr.bf16.mxu0 %v8793_v60  ;;  %5481 = vmatprep.subr.bf16.mxu1 %v8794_v4 }
 0x6b9   :  { %5419 = vmatpush1.bf16.msra.mxu0 %v8795_v6  ;;  %5483 = vmatpush1.bf16.msra.mxu1 %v8796_v63 }
 0x6ba   :  { %5421 = vmatprep.subr.bf16.mxu0 %v8797_v54  ;;  %5485 = vmatprep.subr.bf16.mxu1 %v8798_v38 }
 0x6bd   :  { %5423 = vmatpush1.bf16.msra.mxu0 %v8890_v55  ;;  %5487 = vmatpush1.bf16.msra.mxu1 %v8891_v48 }
 0x6be   :  { %5425 = vmatprep.subr.bf16.mxu0 %v8892_v52  ;;  %5489 = vmatprep.subr.bf16.mxu1 %v8893_v15 }
 0x6c1   :  { %5427 = vmatpush1.bf16.msra.mxu0 %v8894_v44  ;;  %5491 = vmatpush1.bf16.msra.mxu1 %v8895_v20 }
 0x6c2   :  { %5429 = vmatprep.subr.bf16.mxu0 %v8896_v29  ;;  %5493 = vmatprep.subr.bf16.mxu1 %v8897_v7 }
 0x6c5   :  { %5431 = vmatpush1.bf16.msra.mxu0 %v8898_v11  ;;  %5495 = vmatpush1.bf16.msra.mxu1 %v8991_v0 }
 0x6c6   :  { %5433 = vmatprep.subr.bf16.mxu0 %v8992_v59  ;;  %5497 = vmatprep.subr.bf16.mxu1 %v8993_v1 }
 0x6c9   :  { %5435 = vmatpush1.bf16.msra.mxu0 %v8994_v43  ;;  %5499 = vmatpush1.bf16.msra.mxu1 %v8995_v58 }
 0x6ca   :  { %5437 = vmatprep.subr.bf16.mxu0 %v8996_v24  ;;  %5501 = vmatprep.subr.bf16.mxu1 %v8997_v32 }
 0x6cd   :  { %5439 = vmatpush1.bf16.msra.mxu0 %v8998_v37  ;;  %5503 = vmatpush1.bf16.msra.mxu1 %v8999_v14 }
 0x6ce   :  { %5441 = vmatprep.subr.bf16.mxu0 %v9000_v28  ;;  %5505 = vmatprep.subr.bf16.mxu1 %v9001_v41 }
 0x6d1   :  { %5443 = vmatpush1.bf16.msra.mxu0 %v8910_v35  ;;  %5507 = vmatpush1.bf16.msra.mxu1 %v8911_v8 }
 0x6d2   :  { %5445 = vmatprep.subr.bf16.mxu0 %v8912_v57  ;;  %5509 = vmatprep.subr.bf16.mxu1 %v8913_v42 }
 0x6d5   :  { %5447 = vmatpush1.bf16.msra.mxu0 %v8914_v21  ;;  %5511 = vmatpush1.bf16.msra.mxu1 %v8915_v47 }
 0x6d6   :  { %5449 = vmatprep.subr.bf16.mxu0 %v8916_v10  ;;  %5513 = vmatprep.subr.bf16.mxu1 %v8917_v61 }
 0x6d9   :  { %5451 = vmatpush1.bf16.msra.mxu0 %v8918_v3  ;;  %5515 = vmatpush1.bf16.msra.mxu1 %v8919_v40 }
 0x6da   :  { %5453 = vmatprep.subr.bf16.mxu0 %v8920_v17  ;;  %5517 = vmatprep.subr.bf16.mxu1 %v8830_v53 }
 0x6dd   :  { %5455 = vmatpush1.bf16.msra.mxu0 %v8831_v51  ;;  %5519 = vmatpush1.bf16.msra.mxu1 %v8832_v31 }
 0x6de   :  { %5457 = vmatprep.subr.bf16.mxu0 %v8833_v2  ;;  %5521 = vmatprep.subr.bf16.mxu1 %v9091_v39 }
 0x6e1   :  { %5459 = vmatpush1.bf16.msra.mxu0 %v9092_v22  ;;  %5523 = vmatpush1.bf16.msra.mxu1 %v9093_v34 }
 0x6e2   :  { %5461 = vmatprep.subr.bf16.mxu0 %v9094_v25  ;;  %5525 = vmatprep.subr.bf16.mxu1 %v9095_v36  ;;  %v9176_v36 = vld [vmem:[#allocation90_spill] sm:$0xff]  ;;  %v9177_v25 = vld [vmem:[#allocation91_spill] sm:$0xff] }
 0x6e5   :  { %5463 = vmatpush1.bf16.msra.mxu0 %v9096_v26  ;;  %5527 = vmatpush1.bf16.msra.mxu1 %v9097_v33  ;;  %v9108_v33 = vld [vmem:[#allocation165_spill] sm:$0xff] }
 0x6e6   :  { %5465 = vmatprep.subr.bf16.mxu0 %v9098_v30  ;;  %5529 = vmatprep.subr.bf16.mxu1 %v9099_v27  ;;  %v9109_v30 = vld [vmem:[#allocation166_spill] sm:$0xff]  ;;  %v9110_v27 = vld [vmem:[#allocation19_spill] sm:$0xff] }
 0x6e9   :  { %5467 = vmatpush1.bf16.msra.mxu0 %v9100_v12  ;;  %5531 = vmatpush1.bf16.msra.mxu1 %v9101_v49  ;;  %v9111_v12 = vld [vmem:[#allocation20_spill] sm:$0xff] }
 0x6ea   :  { %5469 = vmatprep.subr.bf16.mxu0 %v9102_v45  ;;  %5533 = vmatprep.subr.bf16.mxu1 %v9103_v50  ;;  %v9112_v50 = vld [vmem:[#allocation21_spill] sm:$0xff]  ;;  %v9121_v45 = vld [vmem:[#allocation30_spill] sm:$0xff] }
 0x6ed   :  { %5471 = vmatpush1.bf16.msra.mxu0 %v9104_v16  ;;  %5535 = vmatpush1.bf16.msra.mxu1 %v9105_v23  ;;  %v9113_v16 = vld [vmem:[#allocation22_spill] sm:$0xff]  ;;  %v9114_v23 = vld [vmem:[#allocation23_spill] sm:$0xff] }
 0x6ee   :  { %5473 = vmatprep.subr.bf16.mxu0 %v9106_v19  ;;  %5537 = vmatprep.subr.bf16.mxu1 %v9107_v56  ;;  %v9115_v19 = vld [vmem:[#allocation24_spill] sm:$0xff]  ;;  %v9116_v56 = vld [vmem:[#allocation25_spill] sm:$0xff] }
 0x6f1   :  { %5475 = vmatpush1.bf16.msra.mxu0 %v9108_v33  ;;  %5539 = vmatpush1.bf16.msra.mxu1 %v9109_v30  ;;  %v9117_v33 = vld [vmem:[#allocation26_spill] sm:$0xff]  ;;  %v9118_v30 = vld [vmem:[#allocation27_spill] sm:$0xff] }
 0x6f2   :  { %5541 = vmatprep.subr.bf16.mxu0 %v9110_v27  ;;  %5605 = vmatprep.subr.bf16.mxu1 %v9111_v12  ;;  %v9119_v27 = vld [vmem:[#allocation28_spill] sm:$0xff]  ;;  %v9120_v12 = vld [vmem:[#allocation29_spill] sm:$0xff] }
 0x6f4   :  { %2709 = vmatmul.mubr.f32.vlgmr.msra.gmra.mrb[26].mxu0 %v7801_v62  ;;  %2780 = vmatmul.mubr.f32.vlgmr.msra.gmra.mrb[26].mxu1 %v7801_v62  ;;  %v9122_v62 = vld [vmem:[#allocation31_spill] sm:$0xff] }
 0x6f5   :  { %5543 = vmatpush1.bf16.msra.mxu0 %v9112_v50  ;;  %5607 = vmatpush1.bf16.msra.mxu1 %v9113_v16  ;;  %v9123_v50 = vld [vmem:[#allocation32_spill] sm:$0xff]  ;;  %v9124_v16 = vld [vmem:[#allocation33_spill] sm:$0xff] }
 0x6f6   :  { %5545 = vmatprep.subr.bf16.mxu0 %v9114_v23  ;;  %5609 = vmatprep.subr.bf16.mxu1 %v9115_v19  ;;  %v9125_v23 = vld [vmem:[#allocation34_spill] sm:$0xff]  ;;  %v9126_v19 = vld [vmem:[#allocation35_spill] sm:$0xff] }
 0x6f9   :  { %5547 = vmatpush1.bf16.msra.mxu0 %v9116_v56  ;;  %5611 = vmatpush1.bf16.msra.mxu1 %v9117_v33  ;;  %v9127_v56 = vld [vmem:[#allocation36_spill] sm:$0xff]  ;;  %v9128_v33 = vld [vmem:[#allocation37_spill] sm:$0xff] }
 0x6fa   :  { %5549 = vmatprep.subr.bf16.mxu0 %v9118_v30  ;;  %5613 = vmatprep.subr.bf16.mxu1 %v9119_v27  ;;  %v9129_v30 = vld [vmem:[#allocation38_spill] sm:$0xff]  ;;  %v9130_v27 = vld [vmem:[#allocation39_spill] sm:$0xff] }
 0x6fd   :  { %5551 = vmatpush1.bf16.msra.mxu0 %v9120_v12  ;;  %5615 = vmatpush1.bf16.msra.mxu1 %v9121_v45  ;;  %v9131_v12 = vld [vmem:[#allocation40_spill] sm:$0xff]  ;;  %v9132_v45 = vld [vmem:[#allocation41_spill] sm:$0xff] }
 0x6fe   :  { %5553 = vmatprep.subr.bf16.mxu0 %v9122_v62  ;;  %5617 = vmatprep.subr.bf16.mxu1 %v9123_v50  ;;  %v9133_v62 = vld [vmem:[#allocation42_spill] sm:$0xff]  ;;  %v9134_v50 = vld [vmem:[#allocation43_spill] sm:$0xff] }
 0x701   :  { %5555 = vmatpush1.bf16.msra.mxu0 %v9124_v16  ;;  %5619 = vmatpush1.bf16.msra.mxu1 %v9125_v23  ;;  %v9135_v16 = vld [vmem:[#allocation44_spill] sm:$0xff]  ;;  %v9136_v23 = vld [vmem:[#allocation45_spill] sm:$0xff] }
 0x702   :  { %5557 = vmatprep.subr.bf16.mxu0 %v9126_v19  ;;  %5621 = vmatprep.subr.bf16.mxu1 %v9127_v56  ;;  %v9137_v19 = vld [vmem:[#allocation46_spill] sm:$0xff]  ;;  %v9138_v56 = vld [vmem:[#allocation47_spill] sm:$0xff] }
 0x705   :  { %5559 = vmatpush1.bf16.msra.mxu0 %v9128_v33  ;;  %5623 = vmatpush1.bf16.msra.mxu1 %v9129_v30  ;;  %v9139_v33 = vld [vmem:[#allocation48_spill] sm:$0xff]  ;;  %v9140_v30 = vld [vmem:[#allocation49_spill] sm:$0xff] }
 0x706   :  { %5561 = vmatprep.subr.bf16.mxu0 %v9130_v27  ;;  %5625 = vmatprep.subr.bf16.mxu1 %v9131_v12  ;;  %v9141_v27 = vld [vmem:[#allocation50_spill] sm:$0xff]  ;;  %v9142_v12 = vld [vmem:[#allocation51_spill] sm:$0xff] }
 0x709   :  { %5563 = vmatpush1.bf16.msra.mxu0 %v9132_v45  ;;  %5627 = vmatpush1.bf16.msra.mxu1 %v9133_v62  ;;  %v9143_v45 = vld [vmem:[#allocation52_spill] sm:$0xff]  ;;  %v9144_v62 = vld [vmem:[#allocation53_spill] sm:$0xff] }
 0x70a   :  { %5565 = vmatprep.subr.bf16.mxu0 %v9134_v50  ;;  %5629 = vmatprep.subr.bf16.mxu1 %v9135_v16  ;;  %v9145_v50 = vld [vmem:[#allocation54_spill] sm:$0xff]  ;;  %v9146_v16 = vld [vmem:[#allocation55_spill] sm:$0xff] }
 0x70d   :  { %5567 = vmatpush1.bf16.msra.mxu0 %v9136_v23  ;;  %5631 = vmatpush1.bf16.msra.mxu1 %v9137_v19  ;;  %v9147_v23 = vld [vmem:[#allocation56_spill] sm:$0xff]  ;;  %v9148_v19 = vld [vmem:[#allocation57_spill] sm:$0xff] }
 0x70e   :  { %5569 = vmatprep.subr.bf16.mxu0 %v9138_v56  ;;  %5633 = vmatprep.subr.bf16.mxu1 %v9139_v33  ;;  %v9149_v56 = vld [vmem:[#allocation58_spill] sm:$0xff]  ;;  %v9150_v33 = vld [vmem:[#allocation59_spill] sm:$0xff] }
 0x711   :  { %5571 = vmatpush1.bf16.msra.mxu0 %v9140_v30  ;;  %5635 = vmatpush1.bf16.msra.mxu1 %v9141_v27  ;;  %v9151_v30 = vld [vmem:[#allocation60_spill] sm:$0xff]  ;;  %v9152_v27 = vld [vmem:[#allocation61_spill] sm:$0xff] }
 0x712   :  { %5573 = vmatprep.subr.bf16.mxu0 %v9142_v12  ;;  %5637 = vmatprep.subr.bf16.mxu1 %v9143_v45  ;;  %v9153_v12 = vld [vmem:[#allocation62_spill] sm:$0xff]  ;;  %v9154_v45 = vld [vmem:[#allocation63_spill] sm:$0xff] }
 0x715   :  { %5575 = vmatpush1.bf16.msra.mxu0 %v9144_v62  ;;  %5639 = vmatpush1.bf16.msra.mxu1 %v9145_v50  ;;  %v9155_v62 = vld [vmem:[#allocation64_spill] sm:$0xff]  ;;  %v9156_v50 = vld [vmem:[#allocation65_spill] sm:$0xff] }
 0x716   :  { %5577 = vmatprep.subr.bf16.mxu0 %v9146_v16  ;;  %5641 = vmatprep.subr.bf16.mxu1 %v9147_v23  ;;  %v9157_v16 = vld [vmem:[#allocation66_spill] sm:$0xff]  ;;  %v9158_v23 = vld [vmem:[#allocation67_spill] sm:$0xff] }
 0x719   :  { %5579 = vmatpush1.bf16.msra.mxu0 %v9148_v19  ;;  %5643 = vmatpush1.bf16.msra.mxu1 %v9149_v56  ;;  %v9159_v19 = vld [vmem:[#allocation68_spill] sm:$0xff]  ;;  %v9160_v56 = vld [vmem:[#allocation69_spill] sm:$0xff] }
 0x71a   :  { %5581 = vmatprep.subr.bf16.mxu0 %v9150_v33  ;;  %5645 = vmatprep.subr.bf16.mxu1 %v9151_v30  ;;  %v9161_v33 = vld [vmem:[#allocation70_spill] sm:$0xff]  ;;  %v9162_v30 = vld [vmem:[#allocation71_spill] sm:$0xff] }
 0x71d   :  { %5583 = vmatpush1.bf16.msra.mxu0 %v9152_v27  ;;  %5647 = vmatpush1.bf16.msra.mxu1 %v9153_v12  ;;  %v9163_v27 = vld [vmem:[#allocation72_spill] sm:$0xff]  ;;  %v9164_v12 = vld [vmem:[#allocation73_spill] sm:$0xff] }
 0x71e   :  { %5585 = vmatprep.subr.bf16.mxu0 %v9154_v45  ;;  %5649 = vmatprep.subr.bf16.mxu1 %v9155_v62  ;;  %v9165_v45 = vld [vmem:[#allocation74_spill] sm:$0xff]  ;;  %v9166_v62 = vld [vmem:[#allocation75_spill] sm:$0xff] }
 0x721   :  { %5587 = vmatpush1.bf16.msra.mxu0 %v9156_v50  ;;  %5651 = vmatpush1.bf16.msra.mxu1 %v9157_v16  ;;  %v9167_v50 = vld [vmem:[#allocation76_spill] sm:$0xff]  ;;  %v9168_v16 = vld [vmem:[#allocation77_spill] sm:$0xff] }
 0x722   :  { %5589 = vmatprep.subr.bf16.mxu0 %v9158_v23  ;;  %5653 = vmatprep.subr.bf16.mxu1 %v9159_v19  ;;  %v9169_v23 = vld [vmem:[#allocation78_spill] sm:$0xff]  ;;  %v9170_v19 = vld [vmem:[#allocation79_spill] sm:$0xff] }
 0x725   :  { %5591 = vmatpush1.bf16.msra.mxu0 %v9160_v56  ;;  %5655 = vmatpush1.bf16.msra.mxu1 %v9161_v33  ;;  %v9171_v56 = vld [vmem:[#allocation80_spill] sm:$0xff]  ;;  %v9172_v33 = vld [vmem:[#allocation81_spill] sm:$0xff] }
 0x726   :  { %5593 = vmatprep.subr.bf16.mxu0 %v9162_v30  ;;  %5657 = vmatprep.subr.bf16.mxu1 %v9163_v27  ;;  %v9173_v30 = vld [vmem:[#allocation82_spill] sm:$0xff]  ;;  %v9174_v27 = vld [vmem:[#allocation83_spill] sm:$0xff] }
 0x729   :  { %5595 = vmatpush1.bf16.msra.mxu0 %v9164_v12  ;;  %5659 = vmatpush1.bf16.msra.mxu1 %v9165_v45  ;;  %v9175_v12 = vld [vmem:[#allocation84_spill] sm:$0xff] }
 0x72a   :  { %5597 = vmatprep.subr.bf16.mxu0 %v9166_v62  ;;  %5661 = vmatprep.subr.bf16.mxu1 %v9167_v50 }
 0x72d   :  { %5599 = vmatpush1.bf16.msra.mxu0 %v9168_v16  ;;  %5663 = vmatpush1.bf16.msra.mxu1 %v9169_v23 }
 0x72e   :  { %5601 = vmatprep.subr.bf16.mxu0 %v9170_v19  ;;  %5665 = vmatprep.subr.bf16.mxu1 %v9171_v56 }
 0x731   :  { %5603 = vmatpush1.bf16.msra.mxu0 %v9172_v33  ;;  %5667 = vmatpush1.bf16.msra.mxu1 %v9173_v30  ;;  %v9178_v30 = vld [vmem:[#allocation95_spill] sm:$0xff] }
 0x732   :  { %5669 = vmatprep.subr.bf16.mxu0 %v9174_v27  ;;  %5733 = vmatprep.subr.bf16.mxu1 %v9175_v12  ;;  %v9179_v12 = vld [vmem:[#allocation94_spill] sm:$0xff] }
 0x787   :  { %v2568_v45 = vpop.f32.mrb[24].mxu0  ;;  %v2639_v62 = vpop.f32.mrb[24].mxu1 }
 0x788   :  { %v2794_v49 = vrot.slane %v2568_v45, 6  ;;  %v2570_v50 = vpop.f32.mrb[25].mxu0  ;;  %v2641_v26 = vpop.f32.mrb[25].mxu1  ;;  %v2796_v27 = vrot.slane %v2639_v62, 6 }
 0x789   :  { %v2795_v16 = vrot.slane %v2570_v50, 6  ;;  %v2797_v22 = vrot.slane %v2641_v26, 6  ;;  %v9180_v26 = vld [vmem:[#allocation106_spill] sm:$0xff] }
 0x78a   :  { %v2810_v23 = vadd.f32 %v2794_v49, %v9176_v36  ;;  %v2812_v2 = vadd.f32 %v2796_v27, %v9179_v12  ;;  %v9182_v27 = vld [vmem:[#allocation85_spill] sm:$0xff] }
 0x78b   :  { %v2811_v19 = vadd.f32 %v2795_v16, %v9177_v25  ;;  %v2813_v33 = vadd.f32 %v2797_v22, %v9178_v30  ;;  %v9183_v30 = vld [vmem:[#allocation97_spill] sm:$0xff] }
 0x78c   :  { %v4110_v34 = vmul.f32 -1.442695, %v2810_v23 }
 0x78d   :  { %v4111_v56 = vmul.f32 -1.442695, %v2811_v19  ;;  %v4112_v39 = vmul.f32 -1.442695, %v2813_v33 }
 0x78e   :  { %6353 = vpow2.f32 %v4110_v34  ;;  %v2838_v34 = vrot.slane %v9180_v26, 6  ;;  %v8595_v26 = vrot.slane %v9183_v30, 2 }
 0x78f   :  { %6355 = vpow2.f32 %v4111_v56 }
 0x790   :  { %6357 = vpow2.f32 %v4112_v39 }
 0x791   :  { %6359 = vtanh.f32 %v2812_v2 }
 0x798   :  { %v6354_v31 = vpop.eup %6353 }
 0x799   :  { %v6356_v45 = vpop.eup %6355  ;;  %v2821_v51 = vadd.f32 1.0, %v6354_v31 }
 0x79a   :  { %v2827_v50 = vadd.f32 1.0, %v6356_v45  ;;  %v6358_v49 = vpop.eup %6357 }
 0x79b   :  { %6361 = vrcp.f32 %v2821_v51  ;;  %v6360_v16 = vpop.eup %6359  ;;  %v2834_v22 = vadd.f32 1.0, %v6358_v49 }
 0x79c   :  { %6363 = vrcp.f32 %v2827_v50 }
 0x79d   :  { %6365 = vrcp.f32 %v2834_v22 }
 0x7a5   :  { %v6362_v23 = vpop.eup %6361 }
 0x7a6   :  { %v6364_v56 = vpop.eup %6363  ;;  %v2841_v19 = vmul.f32 %v6362_v23, %v6360_v16  ;;  %v8598_v23 = vrot.slane %v9088_v18, 2 }
 0x7a7   :  { %v2840_v62 = vmul.f32 %v6364_v56, %v2838_v34  ;;  %v6366_v31 = vpop.eup %6365 }
 0x7a9   :  { %v7957_v33 = vadd.f32 %v2841_v19, %v2840_v62 }
 0x7ab   :  { %9181 = vst [vmem:[#allocation107_spill] sm:$0xff] %v7957_v33  ;;  %6367 = vtanh.f32 %v7957_v33  ;;  %v8599_v33 = vrot.slane %v9090_v9, 2 }
 0x7b5   :  { %v6368_v39 = vpop.eup %6367 }
 0x7b6   :  { %v2844_v2 = vmul.f32 %v6368_v39, %v6366_v31  ;;  %v9184_v39 = vld [vmem:[#allocation102_spill] sm:$0xff] }
 0x7b8   :  { %v2879_v51 = vrot.slane %v2844_v2, %v9182_v27 }
 0x7ba   :  { %v2880_v45 = vcombine.high %v2879_v51, %v2879_v51  ;;  %v8597_v51 = vrot.slane %v9184_v39, 2 }
 0x7bc   :  { %2882 = vst [vmem:[#allocation10 + $0x14] sm:$0x3] %v2880_v45 }
 0x7c7   :  { %v2710_v50 = vpop.f32.mrb[26].mxu0  ;;  %v2781_v12 = vpop.f32.mrb[26].mxu1 }
 0x7c8   :  { %v2798_v25 = vrot.slane %v2710_v50, 6  ;;  %v2712_v16 = vpop.f32.mrb[27].mxu0  ;;  %v2783_v49 = vpop.f32.mrb[27].mxu1  ;;  %v2800_v50 = vrot.slane %v2781_v12, 6 }
 0x7c9   :  { %v2799_v34 = vrot.slane %v2712_v16, 6  ;;  %v2801_v31 = vrot.slane %v2783_v49, 6 }
 0x7ca   :  { %v2814_v56 = vadd.f32 %v2798_v25, %v8595_v26  ;;  %v2816_v25 = vadd.f32 %v2800_v50, %v8599_v33  ;;  %v9201_v33 = vld [vmem:[#allocation161_spill] sm:$0xff] }
 0x7cb   :  { %v2815_v19 = vadd.f32 %v2799_v34, %v8598_v23  ;;  %v2817_v45 = vadd.f32 %v2801_v31, %v8597_v51 }
 0x7cc   :  { %v4113_v22 = vmul.f32 -1.442695, %v2814_v56 }
 0x7cd   :  { %v4114_v62 = vmul.f32 -1.442695, %v2815_v19  ;;  %v4115_v16 = vmul.f32 -1.442695, %v2817_v45 }
 0x7ce   :  { %6369 = vpow2.f32 %v4113_v22 }
 0x7cf   :  { %6371 = vpow2.f32 %v4114_v62  ;;  %v2865_v62 = vrot.slane %v7817_v13, 6  ;;  %v9185_v13 = vld [vmem:[#allocation145_spill] sm:$0xff] }
 0x7d0   :  { %6373 = vpow2.f32 %v4115_v16 }
 0x7d1   :  { %6375 = vtanh.f32 %v2816_v25 }
 0x7d8   :  { %v6370_v26 = vpop.eup %6369 }
 0x7d9   :  { %v6372_v18 = vpop.eup %6371  ;;  %v2848_v34 = vadd.f32 1.0, %v6370_v26 }
 0x7da   :  { %v2854_v49 = vadd.f32 1.0, %v6372_v18  ;;  %v6374_v56 = vpop.eup %6373 }
 0x7db   :  { %6377 = vrcp.f32 %v2848_v34  ;;  %v6376_v19 = vpop.eup %6375  ;;  %v2861_v51 = vadd.f32 1.0, %v6374_v56  ;;  %v7978_v34 = vrot.slane %v2844_v2, 2  ;;  %v9186_v2 = vld [vmem:[#allocation146_spill] sm:$0xff]  ;;  %v9188_v56 = vld [vmem:[#allocation148_spill] sm:$0xff] }
 0x7dc   :  { %6379 = vrcp.f32 %v2854_v49 }
 0x7dd   :  { %6381 = vrcp.f32 %v2861_v51  ;;  %v9187_v51 = vld [vmem:[#allocation147_spill] sm:$0xff] }
 0x7e5   :  { %v6378_v22 = vpop.eup %6377 }
 0x7e6   :  { %v6380_v12 = vpop.eup %6379  ;;  %v2868_v31 = vmul.f32 %v6378_v22, %v6376_v19  ;;  %v9189_v19 = vld [vmem:[#allocation149_spill] sm:$0xff]  ;;  %v9190_v22 = vld [vmem:[#allocation150_spill] sm:$0xff] }
 0x7e7   :  { %v2867_v45 = vmul.f32 %v6380_v12, %v2865_v62  ;;  %v6382_v26 = vpop.eup %6381  ;;  %v9191_v62 = vld [vmem:[#allocation151_spill] sm:$0xff]  ;;  %v9192_v12 = vld [vmem:[#allocation152_spill] sm:$0xff] }
 0x7e9   :  { %v7974_v23 = vadd.f32 %v2868_v31, %v2867_v45  ;;  %v9193_v31 = vld [vmem:[#allocation153_spill] sm:$0xff]  ;;  %v9194_v45 = vld [vmem:[#allocation154_spill] sm:$0xff] }
 0x7eb   :  { %6383 = vtanh.f32 %v7974_v23 }
 0x7f5   :  { %v6384_v50 = vpop.eup %6383 }
 0x7f6   :  { %v2871_v16 = vmul.f32 %v6384_v50, %v6382_v26  ;;  %v9195_v26 = vld [vmem:[#allocation155_spill] sm:$0xff]  ;;  %v9196_v50 = vld [vmem:[#allocation156_spill] sm:$0xff] }
 0x7f8   :  { %v2890_v18 = vrot.slane %v2871_v16, %v9182_v27  ;;  %v2895_v25 = vrot.slane %v2871_v16, 2  ;;  %v9197_v16 = vld [vmem:[#allocation157_spill] sm:$0xff]  ;;  %v9202_v27 = vld [vmem:[#allocation162_spill] sm:$0xff] }
 0x7fa   :  { %v2891_v49 = vcombine.high %v2890_v18, %v2890_v18  ;;  %2962 = vmatprep.mubr.f32.mxu0 %v2895_v25  ;;  %3033 = vmatprep.mubr.f32.mxu1 %v2895_v25  ;;  %v9198_v18 = vld [vmem:[#allocation158_spill] sm:$0xff] }
 0x7fb   :  { %2963 = vmatmul.mubr.f32.vlgmr.msra.gmra.mrb[28].mxu0 %v7978_v34  ;;  %3034 = vmatmul.mubr.f32.vlgmr.msra.gmra.mrb[28].mxu1 %v7978_v34 }
 0x7fc   :  { %2893 = vst [vmem:[#allocation10 + $0xa] sm:$0x3] %v2891_v49  ;;  %5671 = vmatpush1.bf16.msra.mxu0 %v7064_v5  ;;  %5735 = vmatpush1.bf16.msra.mxu1 %v8792_v46  ;;  %v9200_v49 = vld [vmem:[#allocation160_spill] sm:$0xff] }
 0x7fd   :  { %3104 = vmatprep.mubr.f32.mxu0 %v2895_v25  ;;  %3175 = vmatprep.mubr.f32.mxu1 %v2895_v25  ;;  %v9199_v25 = vld [vmem:[#allocation159_spill] sm:$0xff] }
 0x7fe   :  { %5673 = vmatprep.subr.bf16.mxu0 %v8793_v60  ;;  %5737 = vmatprep.subr.bf16.mxu1 %v8794_v4 }
 0x800   :  { %5675 = vmatpush1.bf16.msra.mxu0 %v8795_v6  ;;  %5739 = vmatpush1.bf16.msra.mxu1 %v8796_v63 }
 0x801   :  { %5677 = vmatprep.subr.bf16.mxu0 %v8797_v54  ;;  %5741 = vmatprep.subr.bf16.mxu1 %v8798_v38 }
 0x804   :  { %5679 = vmatpush1.bf16.msra.mxu0 %v8890_v55  ;;  %5743 = vmatpush1.bf16.msra.mxu1 %v8891_v48 }
 0x805   :  { %5681 = vmatprep.subr.bf16.mxu0 %v8892_v52  ;;  %5745 = vmatprep.subr.bf16.mxu1 %v8893_v15 }
 0x808   :  { %5683 = vmatpush1.bf16.msra.mxu0 %v8894_v44  ;;  %5747 = vmatpush1.bf16.msra.mxu1 %v8895_v20 }
 0x809   :  { %5685 = vmatprep.subr.bf16.mxu0 %v8896_v29  ;;  %5749 = vmatprep.subr.bf16.mxu1 %v8897_v7 }
 0x80c   :  { %5687 = vmatpush1.bf16.msra.mxu0 %v8898_v11  ;;  %5751 = vmatpush1.bf16.msra.mxu1 %v8991_v0 }
 0x80d   :  { %5689 = vmatprep.subr.bf16.mxu0 %v8992_v59  ;;  %5753 = vmatprep.subr.bf16.mxu1 %v8993_v1 }
 0x810   :  { %5691 = vmatpush1.bf16.msra.mxu0 %v8994_v43  ;;  %5755 = vmatpush1.bf16.msra.mxu1 %v8995_v58 }
 0x811   :  { %5693 = vmatprep.subr.bf16.mxu0 %v8996_v24  ;;  %5757 = vmatprep.subr.bf16.mxu1 %v8997_v32 }
 0x814   :  { %5695 = vmatpush1.bf16.msra.mxu0 %v8998_v37  ;;  %5759 = vmatpush1.bf16.msra.mxu1 %v8999_v14 }
 0x815   :  { %5697 = vmatprep.subr.bf16.mxu0 %v9000_v28  ;;  %5761 = vmatprep.subr.bf16.mxu1 %v9001_v41 }
 0x818   :  { %5699 = vmatpush1.bf16.msra.mxu0 %v8910_v35  ;;  %5763 = vmatpush1.bf16.msra.mxu1 %v8911_v8 }
 0x819   :  { %5701 = vmatprep.subr.bf16.mxu0 %v8912_v57  ;;  %5765 = vmatprep.subr.bf16.mxu1 %v8913_v42 }
 0x81c   :  { %5703 = vmatpush1.bf16.msra.mxu0 %v8914_v21  ;;  %5767 = vmatpush1.bf16.msra.mxu1 %v8915_v47 }
 0x81d   :  { %5705 = vmatprep.subr.bf16.mxu0 %v8916_v10  ;;  %5769 = vmatprep.subr.bf16.mxu1 %v8917_v61 }
 0x820   :  { %5707 = vmatpush1.bf16.msra.mxu0 %v8918_v3  ;;  %5771 = vmatpush1.bf16.msra.mxu1 %v8919_v40 }
 0x821   :  { %5709 = vmatprep.subr.bf16.mxu0 %v8920_v17  ;;  %5773 = vmatprep.subr.bf16.mxu1 %v8830_v53 }
 0x824   :  { %5711 = vmatpush1.bf16.msra.mxu0 %v9185_v13  ;;  %5775 = vmatpush1.bf16.msra.mxu1 %v9186_v2 }
 0x825   :  { %5713 = vmatprep.subr.bf16.mxu0 %v9187_v51  ;;  %5777 = vmatprep.subr.bf16.mxu1 %v9188_v56 }
 0x828   :  { %5715 = vmatpush1.bf16.msra.mxu0 %v9189_v19  ;;  %5779 = vmatpush1.bf16.msra.mxu1 %v9190_v22  ;;  %v9273_v22 = vld [vmem:[#allocation91_spill] sm:$0xff] }
 0x829   :  { %5717 = vmatprep.subr.bf16.mxu0 %v9191_v62  ;;  %5781 = vmatprep.subr.bf16.mxu1 %v9192_v12  ;;  %v9203_v12 = vld [vmem:[#allocation163_spill] sm:$0xff] }
 0x82c   :  { %5719 = vmatpush1.bf16.msra.mxu0 %v9193_v31  ;;  %5783 = vmatpush1.bf16.msra.mxu1 %v9194_v45  ;;  %v9204_v31 = vld [vmem:[#allocation164_spill] sm:$0xff]  ;;  %v9205_v45 = vld [vmem:[#allocation165_spill] sm:$0xff] }
 0x82d   :  { %5721 = vmatprep.subr.bf16.mxu0 %v9195_v26  ;;  %5785 = vmatprep.subr.bf16.mxu1 %v9196_v50  ;;  %v9206_v26 = vld [vmem:[#allocation166_spill] sm:$0xff]  ;;  %v9207_v50 = vld [vmem:[#allocation19_spill] sm:$0xff] }
 0x830   :  { %5723 = vmatpush1.bf16.msra.mxu0 %v9197_v16  ;;  %5787 = vmatpush1.bf16.msra.mxu1 %v9198_v18  ;;  %v9208_v16 = vld [vmem:[#allocation20_spill] sm:$0xff] }
 0x831   :  { %5725 = vmatprep.subr.bf16.mxu0 %v9199_v25  ;;  %5789 = vmatprep.subr.bf16.mxu1 %v9200_v49  ;;  %v9209_v49 = vld [vmem:[#allocation21_spill] sm:$0xff]  ;;  %v9218_v25 = vld [vmem:[#allocation30_spill] sm:$0xff] }
 0x834   :  { %5727 = vmatpush1.bf16.msra.mxu0 %v9201_v33  ;;  %5791 = vmatpush1.bf16.msra.mxu1 %v9202_v27  ;;  %v9210_v33 = vld [vmem:[#allocation22_spill] sm:$0xff]  ;;  %v9211_v27 = vld [vmem:[#allocation23_spill] sm:$0xff] }
 0x835   :  { %5729 = vmatprep.subr.bf16.mxu0 %v9203_v12  ;;  %5793 = vmatprep.subr.bf16.mxu1 %v9204_v31  ;;  %v9212_v12 = vld [vmem:[#allocation24_spill] sm:$0xff]  ;;  %v9213_v31 = vld [vmem:[#allocation25_spill] sm:$0xff] }
 0x838   :  { %5731 = vmatpush1.bf16.msra.mxu0 %v9205_v45  ;;  %5795 = vmatpush1.bf16.msra.mxu1 %v9206_v26  ;;  %v9214_v45 = vld [vmem:[#allocation26_spill] sm:$0xff]  ;;  %v9215_v26 = vld [vmem:[#allocation27_spill] sm:$0xff] }
 0x839   :  { %5797 = vmatprep.subr.bf16.mxu0 %v9207_v50  ;;  %5861 = vmatprep.subr.bf16.mxu1 %v9208_v16  ;;  %v9216_v50 = vld [vmem:[#allocation28_spill] sm:$0xff]  ;;  %v9217_v16 = vld [vmem:[#allocation29_spill] sm:$0xff] }
 0x83b   :  { %3105 = vmatmul.mubr.f32.vlgmr.msra.gmra.mrb[30].mxu0 %v7978_v34  ;;  %3176 = vmatmul.mubr.f32.vlgmr.msra.gmra.mrb[30].mxu1 %v7978_v34  ;;  %v9219_v34 = vld [vmem:[#allocation31_spill] sm:$0xff] }
 0x83c   :  { %5799 = vmatpush1.bf16.msra.mxu0 %v9209_v49  ;;  %5863 = vmatpush1.bf16.msra.mxu1 %v9210_v33  ;;  %v9220_v49 = vld [vmem:[#allocation32_spill] sm:$0xff]  ;;  %v9221_v33 = vld [vmem:[#allocation33_spill] sm:$0xff] }
 0x83d   :  { %5801 = vmatprep.subr.bf16.mxu0 %v9211_v27  ;;  %5865 = vmatprep.subr.bf16.mxu1 %v9212_v12  ;;  %v9222_v27 = vld [vmem:[#allocation34_spill] sm:$0xff]  ;;  %v9223_v12 = vld [vmem:[#allocation35_spill] sm:$0xff] }
 0x840   :  { %5803 = vmatpush1.bf16.msra.mxu0 %v9213_v31  ;;  %5867 = vmatpush1.bf16.msra.mxu1 %v9214_v45  ;;  %v9224_v31 = vld [vmem:[#allocation36_spill] sm:$0xff]  ;;  %v9225_v45 = vld [vmem:[#allocation37_spill] sm:$0xff] }
 0x841   :  { %5805 = vmatprep.subr.bf16.mxu0 %v9215_v26  ;;  %5869 = vmatprep.subr.bf16.mxu1 %v9216_v50  ;;  %v9226_v26 = vld [vmem:[#allocation38_spill] sm:$0xff]  ;;  %v9227_v50 = vld [vmem:[#allocation39_spill] sm:$0xff] }
 0x844   :  { %5807 = vmatpush1.bf16.msra.mxu0 %v9217_v16  ;;  %5871 = vmatpush1.bf16.msra.mxu1 %v9218_v25  ;;  %v9228_v16 = vld [vmem:[#allocation40_spill] sm:$0xff]  ;;  %v9229_v25 = vld [vmem:[#allocation41_spill] sm:$0xff] }
 0x845   :  { %5809 = vmatprep.subr.bf16.mxu0 %v9219_v34  ;;  %5873 = vmatprep.subr.bf16.mxu1 %v9220_v49  ;;  %v9230_v34 = vld [vmem:[#allocation42_spill] sm:$0xff]  ;;  %v9231_v49 = vld [vmem:[#allocation43_spill] sm:$0xff] }
 0x848   :  { %5811 = vmatpush1.bf16.msra.mxu0 %v9221_v33  ;;  %5875 = vmatpush1.bf16.msra.mxu1 %v9222_v27  ;;  %v9232_v33 = vld [vmem:[#allocation44_spill] sm:$0xff]  ;;  %v9233_v27 = vld [vmem:[#allocation45_spill] sm:$0xff] }
 0x849   :  { %5813 = vmatprep.subr.bf16.mxu0 %v9223_v12  ;;  %5877 = vmatprep.subr.bf16.mxu1 %v9224_v31  ;;  %v9234_v12 = vld [vmem:[#allocation46_spill] sm:$0xff]  ;;  %v9235_v31 = vld [vmem:[#allocation47_spill] sm:$0xff] }
 0x84c   :  { %5815 = vmatpush1.bf16.msra.mxu0 %v9225_v45  ;;  %5879 = vmatpush1.bf16.msra.mxu1 %v9226_v26  ;;  %v9236_v45 = vld [vmem:[#allocation48_spill] sm:$0xff]  ;;  %v9237_v26 = vld [vmem:[#allocation49_spill] sm:$0xff] }
 0x84d   :  { %5817 = vmatprep.subr.bf16.mxu0 %v9227_v50  ;;  %5881 = vmatprep.subr.bf16.mxu1 %v9228_v16  ;;  %v9238_v50 = vld [vmem:[#allocation50_spill] sm:$0xff]  ;;  %v9239_v16 = vld [vmem:[#allocation51_spill] sm:$0xff] }
 0x850   :  { %5819 = vmatpush1.bf16.msra.mxu0 %v9229_v25  ;;  %5883 = vmatpush1.bf16.msra.mxu1 %v9230_v34  ;;  %v9240_v25 = vld [vmem:[#allocation52_spill] sm:$0xff]  ;;  %v9241_v34 = vld [vmem:[#allocation53_spill] sm:$0xff] }
 0x851   :  { %5821 = vmatprep.subr.bf16.mxu0 %v9231_v49  ;;  %5885 = vmatprep.subr.bf16.mxu1 %v9232_v33  ;;  %v9242_v49 = vld [vmem:[#allocation54_spill] sm:$0xff]  ;;  %v9243_v33 = vld [vmem:[#allocation55_spill] sm:$0xff] }
 0x854   :  { %5823 = vmatpush1.bf16.msra.mxu0 %v9233_v27  ;;  %5887 = vmatpush1.bf16.msra.mxu1 %v9234_v12  ;;  %v9244_v27 = vld [vmem:[#allocation56_spill] sm:$0xff]  ;;  %v9245_v12 = vld [vmem:[#allocation57_spill] sm:$0xff] }
 0x855   :  { %5825 = vmatprep.subr.bf16.mxu0 %v9235_v31  ;;  %5889 = vmatprep.subr.bf16.mxu1 %v9236_v45  ;;  %v9246_v31 = vld [vmem:[#allocation58_spill] sm:$0xff]  ;;  %v9247_v45 = vld [vmem:[#allocation59_spill] sm:$0xff] }
 0x858   :  { %5827 = vmatpush1.bf16.msra.mxu0 %v9237_v26  ;;  %5891 = vmatpush1.bf16.msra.mxu1 %v9238_v50  ;;  %v9248_v26 = vld [vmem:[#allocation60_spill] sm:$0xff]  ;;  %v9249_v50 = vld [vmem:[#allocation61_spill] sm:$0xff] }
 0x859   :  { %5829 = vmatprep.subr.bf16.mxu0 %v9239_v16  ;;  %5893 = vmatprep.subr.bf16.mxu1 %v9240_v25  ;;  %v9250_v16 = vld [vmem:[#allocation62_spill] sm:$0xff]  ;;  %v9251_v25 = vld [vmem:[#allocation63_spill] sm:$0xff] }
 0x85c   :  { %5831 = vmatpush1.bf16.msra.mxu0 %v9241_v34  ;;  %5895 = vmatpush1.bf16.msra.mxu1 %v9242_v49  ;;  %v9252_v34 = vld [vmem:[#allocation64_spill] sm:$0xff]  ;;  %v9253_v49 = vld [vmem:[#allocation65_spill] sm:$0xff] }
 0x85d   :  { %5833 = vmatprep.subr.bf16.mxu0 %v9243_v33  ;;  %5897 = vmatprep.subr.bf16.mxu1 %v9244_v27  ;;  %v9254_v33 = vld [vmem:[#allocation66_spill] sm:$0xff]  ;;  %v9255_v27 = vld [vmem:[#allocation67_spill] sm:$0xff] }
 0x860   :  { %5835 = vmatpush1.bf16.msra.mxu0 %v9245_v12  ;;  %5899 = vmatpush1.bf16.msra.mxu1 %v9246_v31  ;;  %v9256_v12 = vld [vmem:[#allocation68_spill] sm:$0xff]  ;;  %v9257_v31 = vld [vmem:[#allocation69_spill] sm:$0xff] }
 0x861   :  { %5837 = vmatprep.subr.bf16.mxu0 %v9247_v45  ;;  %5901 = vmatprep.subr.bf16.mxu1 %v9248_v26  ;;  %v9258_v45 = vld [vmem:[#allocation70_spill] sm:$0xff]  ;;  %v9259_v26 = vld [vmem:[#allocation71_spill] sm:$0xff] }
 0x864   :  { %5839 = vmatpush1.bf16.msra.mxu0 %v9249_v50  ;;  %5903 = vmatpush1.bf16.msra.mxu1 %v9250_v16  ;;  %v9260_v50 = vld [vmem:[#allocation72_spill] sm:$0xff]  ;;  %v9261_v16 = vld [vmem:[#allocation73_spill] sm:$0xff] }
 0x865   :  { %5841 = vmatprep.subr.bf16.mxu0 %v9251_v25  ;;  %5905 = vmatprep.subr.bf16.mxu1 %v9252_v34  ;;  %v9262_v25 = vld [vmem:[#allocation74_spill] sm:$0xff]  ;;  %v9263_v34 = vld [vmem:[#allocation75_spill] sm:$0xff] }
 0x868   :  { %5843 = vmatpush1.bf16.msra.mxu0 %v9253_v49  ;;  %5907 = vmatpush1.bf16.msra.mxu1 %v9254_v33  ;;  %v9264_v49 = vld [vmem:[#allocation76_spill] sm:$0xff]  ;;  %v9265_v33 = vld [vmem:[#allocation77_spill] sm:$0xff] }
 0x869   :  { %5845 = vmatprep.subr.bf16.mxu0 %v9255_v27  ;;  %5909 = vmatprep.subr.bf16.mxu1 %v9256_v12  ;;  %v9266_v27 = vld [vmem:[#allocation78_spill] sm:$0xff]  ;;  %v9267_v12 = vld [vmem:[#allocation79_spill] sm:$0xff] }
 0x86c   :  { %5847 = vmatpush1.bf16.msra.mxu0 %v9257_v31  ;;  %5911 = vmatpush1.bf16.msra.mxu1 %v9258_v45  ;;  %v9268_v31 = vld [vmem:[#allocation80_spill] sm:$0xff]  ;;  %v9269_v45 = vld [vmem:[#allocation81_spill] sm:$0xff] }
 0x86d   :  { %5849 = vmatprep.subr.bf16.mxu0 %v9259_v26  ;;  %5913 = vmatprep.subr.bf16.mxu1 %v9260_v50  ;;  %v9270_v26 = vld [vmem:[#allocation82_spill] sm:$0xff]  ;;  %v9271_v50 = vld [vmem:[#allocation83_spill] sm:$0xff] }
 0x870   :  { %5851 = vmatpush1.bf16.msra.mxu0 %v9261_v16  ;;  %5915 = vmatpush1.bf16.msra.mxu1 %v9262_v25  ;;  %v9272_v16 = vld [vmem:[#allocation84_spill] sm:$0xff] }
 0x871   :  { %5853 = vmatprep.subr.bf16.mxu0 %v9263_v34  ;;  %5917 = vmatprep.subr.bf16.mxu1 %v9264_v49 }
 0x874   :  { %5855 = vmatpush1.bf16.msra.mxu0 %v9265_v33  ;;  %5919 = vmatpush1.bf16.msra.mxu1 %v9266_v27 }
 0x875   :  { %5857 = vmatprep.subr.bf16.mxu0 %v9267_v12  ;;  %5921 = vmatprep.subr.bf16.mxu1 %v9268_v31 }
 0x878   :  { %5859 = vmatpush1.bf16.msra.mxu0 %v9269_v45  ;;  %5923 = vmatpush1.bf16.msra.mxu1 %v9270_v26  ;;  %v9274_v45 = vld [vmem:[#allocation95_spill] sm:$0xff] }
 0x879   :  { %5925 = vmatprep.subr.bf16.mxu0 %v9271_v50  ;;  %5989 = vmatprep.subr.bf16.mxu1 %v9272_v16  ;;  %v9275_v16 = vld [vmem:[#allocation94_spill] sm:$0xff] }
 0x8ce   :  { %v2964_v25 = vpop.f32.mrb[28].mxu0  ;;  %v3035_v34 = vpop.f32.mrb[28].mxu1 }
 0x8cf   :  { %v3190_v18 = vrot.slane %v2964_v25, 4  ;;  %v2966_v49 = vpop.f32.mrb[29].mxu0  ;;  %v3037_v62 = vpop.f32.mrb[29].mxu1  ;;  %v3192_v50 = vrot.slane %v3035_v34, 4 }
 0x8d0   :  { %v3191_v33 = vrot.slane %v2966_v49, 4  ;;  %v3193_v56 = vrot.slane %v3037_v62, 4  ;;  %v9276_v62 = vld [vmem:[#allocation107_spill] sm:$0xff] }
 0x8d1   :  { %v3206_v27 = vadd.f32 %v3190_v18, %v9176_v36  ;;  %v3208_v2 = vadd.f32 %v3192_v50, %v9275_v16 }
 0x8d2   :  { %v3207_v12 = vadd.f32 %v3191_v33, %v9273_v22  ;;  %v3209_v26 = vadd.f32 %v3193_v56, %v9274_v45 }
 0x8d3   :  { %v4116_v19 = vmul.f32 -1.442695, %v3206_v27 }
 0x8d4   :  { %v4117_v31 = vmul.f32 -1.442695, %v3207_v12  ;;  %v4118_v51 = vmul.f32 -1.442695, %v3209_v26 }
 0x8d5   :  { %6385 = vpow2.f32 %v4116_v19  ;;  %v3234_v19 = vrot.slane %v9276_v62, 6 }
 0x8d6   :  { %6387 = vpow2.f32 %v4117_v31 }
 0x8d7   :  { %6389 = vpow2.f32 %v4118_v51 }
 0x8d8   :  { %6391 = vtanh.f32 %v3208_v2 }
 0x8df   :  { %v6386_v13 = vpop.eup %6385 }
 0x8e0   :  { %v6388_v25 = vpop.eup %6387  ;;  %v3217_v53 = vadd.f32 1.0, %v6386_v13 }
 0x8e1   :  { %v3223_v49 = vadd.f32 1.0, %v6388_v25  ;;  %v6390_v18 = vpop.eup %6389 }
 0x8e2   :  { %6393 = vrcp.f32 %v3217_v53  ;;  %v6392_v33 = vpop.eup %6391  ;;  %v3230_v56 = vadd.f32 1.0, %v6390_v18 }
 0x8e3   :  { %6395 = vrcp.f32 %v3223_v49 }
 0x8e4   :  { %6397 = vrcp.f32 %v3230_v56 }
 0x8ec   :  { %v6394_v27 = vpop.eup %6393 }
 0x8ed   :  { %v6396_v12 = vpop.eup %6395  ;;  %v3237_v31 = vmul.f32 %v6394_v27, %v6392_v33  ;;  %v9278_v33 = vrot.slane %v9183_v30, 6  ;;  %v9279_v27 = vld [vmem:[#allocation98_spill] sm:$0xff] }
 0x8ee   :  { %v3236_v34 = vmul.f32 %v6396_v12, %v3234_v19  ;;  %v6398_v13 = vpop.eup %6397  ;;  %v9280_v19 = vrot.slane %v9279_v27, 6 }
 0x8f0   :  { %v8117_v26 = vadd.f32 %v3237_v31, %v3236_v34 }
 0x8f2   :  { %9277 = vst [vmem:[#allocation108_spill] sm:$0xff] %v8117_v26  ;;  %6399 = vtanh.f32 %v8117_v26 }
 0x8fc   :  { %v6400_v51 = vpop.eup %6399 }
 0x8fd   :  { %v3240_v2 = vmul.f32 %v6400_v51, %v6398_v13  ;;  %v9281_v13 = vrot.slane %v9184_v39, 6 }
 0x8ff   :  { %v3269_v50 = vcombine.high %v3240_v2, %v3240_v2 }
 0x901   :  { %4122 = vst.sshfl [vmem:[#allocation10 + $0x18] sm:$0x3 pattern:$0x76325410] %v3269_v50 }
 0x90e   :  { %v3106_v53 = vpop.f32.mrb[30].mxu0  ;;  %v3177_v25 = vpop.f32.mrb[30].mxu1 }
 0x90f   :  { %v3194_v49 = vrot.slane %v3106_v53, 4  ;;  %v3108_v16 = vpop.f32.mrb[31].mxu0  ;;  %v3179_v45 = vpop.f32.mrb[31].mxu1  ;;  %v3196_v50 = vrot.slane %v3177_v25, 4  ;;  %v9282_v53 = vrot.slane %v9090_v9, 6 }
 0x910   :  { %v3195_v62 = vrot.slane %v3108_v16, 4  ;;  %v3197_v34 = vrot.slane %v3179_v45, 4 }
 0x911   :  { %v3210_v18 = vadd.f32 %v3194_v49, %v9278_v33  ;;  %v3212_v22 = vadd.f32 %v3196_v50, %v9282_v53  ;;  %v3691_v50 = vld [vmem:[#allocation7 + $0x18] sm:$0xff] }
 0x912   :  { %v3211_v12 = vadd.f32 %v3195_v62, %v9280_v19  ;;  %v3213_v51 = vadd.f32 %v3197_v34, %v9281_v13  ;;  %v8132_v13 = vrot.slane %v3240_v2, 4  ;;  %v3861_v2 = vld [vmem:[#allocation8 + $0x50] sm:$0xff]  ;;  %v3866_v53 = vld [vmem:[#allocation8 + $0x78] sm:$0xff] }
 0x913   :  { %v4119_v31 = vmul.f32 -1.442695, %v3210_v18  ;;  %v3261_v18 = vrot.slane %v7974_v23, 6 }
 0x914   :  { %v4120_v56 = vmul.f32 -1.442695, %v3211_v12  ;;  %v4121_v26 = vmul.f32 -1.442695, %v3213_v51  ;;  %v3864_v51 = vld [vmem:[#allocation8 + $0x68] sm:$0xff] }
 0x915   :  { %6401 = vpow2.f32 %v4119_v31 }
 0x916   :  { %6403 = vpow2.f32 %v4120_v56 }
 0x917   :  { %6405 = vpow2.f32 %v4121_v26 }
 0x918   :  { %6407 = vtanh.f32 %v3212_v22 }
 0x91f   :  { %v6402_v16 = vpop.eup %6401 }
 0x920   :  { %v6404_v36 = vpop.eup %6403  ;;  %v3244_v30 = vadd.f32 1.0, %v6402_v16 }
 0x921   :  { %v3250_v49 = vadd.f32 1.0, %v6404_v36  ;;  %v6406_v62 = vpop.eup %6405 }
 0x922   :  { %6409 = vrcp.f32 %v3244_v30  ;;  %v6408_v45 = vpop.eup %6407  ;;  %v3257_v25 = vadd.f32 1.0, %v6406_v62  ;;  %v3690_v62 = vld [vmem:[#allocation7 + $0x10] sm:$0xff] }
 0x923   :  { %6411 = vrcp.f32 %v3250_v49  ;;  %v3688_v49 = vld [vmem:[#allocation7] sm:$0xff] }
 0x924   :  { %6413 = vrcp.f32 %v3257_v25 }
 0x92c   :  { %v6410_v33 = vpop.eup %6409 }
 0x92d   :  { %v6412_v19 = vpop.eup %6411  ;;  %v3264_v12 = vmul.f32 %v6410_v33, %v6408_v45  ;;  %v6054_v45 = vpack.c.bf16 %v3690_v62, %v3688_v49  ;;  %v3693_v33 = vld [vmem:[#allocation7 + $0x28] sm:$0xff]  ;;  %v3711_v49 = vld [vmem:[#allocation7 + $0xb8] sm:$0xff]  ;;  %v3883_v62 = vld [vmem:[#allocation8 + $0x100] sm:$0xff] }
 0x92e   :  { %v3263_v31 = vmul.f32 %v6412_v19, %v3261_v18  ;;  %v6414_v34 = vpop.eup %6413  ;;  %v3695_v18 = vld [vmem:[#allocation7 + $0x38] sm:$0xff] }
 0x92f   :  { %v6056_v25 = vpack.c.bf16 %v3695_v18, %v3693_v33  ;;  %v3885_v33 = vld [vmem:[#allocation8 + $0x110] sm:$0xff]  ;;  %v3708_v18 = vld [vmem:[#allocation7 + $0xa0] sm:$0xff] }
 0x930   :  { %v8129_v56 = vadd.f32 %v3264_v12, %v3263_v31  ;;  %v3863_v12 = vld [vmem:[#allocation8 + $0x60] sm:$0xff] }
 0x931   :  { %v3692_v31 = vld [vmem:[#allocation7 + $0x20] sm:$0xff] }
 0x932   :  { %6415 = vtanh.f32 %v8129_v56 }
 0x93c   :  { %v6416_v26 = vpop.eup %6415 }
 0x93d   :  { %v3267_v22 = vmul.f32 %v6416_v26, %v6414_v34  ;;  %v6128_v34 = vpack.c.bf16 %v3866_v53, %v3864_v51  ;;  %v3865_v26 = vld [vmem:[#allocation8 + $0x70] sm:$0xff]  ;;  %v3884_v51 = vld [vmem:[#allocation8 + $0x108] sm:$0xff] }
 0x93f   :  { %v3280_v36 = vcombine.high %v3267_v22, %v3267_v22  ;;  %v3291_v30 = vrot.slane %v3267_v22, 4  ;;  %v3868_v22 = vld [vmem:[#allocation8 + $0x88] sm:$0xff] }
 0x941   :  { %4123 = vst.sshfl [vmem:[#allocation10 + $0x6] sm:$0x3 pattern:$0x76325410] %v3280_v36  ;;  %3358 = vmatprep.mubr.f32.mxu0 %v3291_v30  ;;  %3429 = vmatprep.mubr.f32.mxu1 %v3291_v30  ;;  %v3694_v36 = vld [vmem:[#allocation7 + $0x30] sm:$0xff] }
 0x942   :  { %3359 = vmatmul.mubr.f32.vlgmr.msra.gmra.mrb[32].mxu0 %v8132_v13  ;;  %3430 = vmatmul.mubr.f32.vlgmr.msra.gmra.mrb[32].mxu1 %v8132_v13 }
 0x943   :  { %5927 = vmatpush1.bf16.msra.mxu0 %v7064_v5  ;;  %5991 = vmatpush1.bf16.msra.mxu1 %v8792_v46  ;;  %v9283_v5 = vld [vmem:[#allocation144_spill] sm:$0xff]  ;;  %v9284_v46 = vld [vmem:[#allocation145_spill] sm:$0xff] }
 0x944   :  { %3500 = vmatprep.mubr.f32.mxu0 %v3291_v30  ;;  %3571 = vmatprep.mubr.f32.mxu1 %v3291_v30  ;;  %v3870_v30 = vld [vmem:[#allocation8 + $0x98] sm:$0xff] }
 0x945   :  { %5929 = vmatprep.subr.bf16.mxu0 %v8793_v60  ;;  %5993 = vmatprep.subr.bf16.mxu1 %v8794_v4  ;;  %v9285_v60 = vld [vmem:[#allocation146_spill] sm:$0xff]  ;;  %v9286_v4 = vld [vmem:[#allocation147_spill] sm:$0xff] }
 0x947   :  { %5931 = vmatpush1.bf16.msra.mxu0 %v8795_v6  ;;  %5995 = vmatpush1.bf16.msra.mxu1 %v8796_v63  ;;  %v9287_v6 = vld [vmem:[#allocation148_spill] sm:$0xff]  ;;  %v9288_v63 = vld [vmem:[#allocation149_spill] sm:$0xff] }
 0x948   :  { %5933 = vmatprep.subr.bf16.mxu0 %v8797_v54  ;;  %5997 = vmatprep.subr.bf16.mxu1 %v8798_v38  ;;  %v9289_v54 = vld [vmem:[#allocation150_spill] sm:$0xff]  ;;  %v9290_v38 = vld [vmem:[#allocation151_spill] sm:$0xff] }
 0x94b   :  { %5935 = vmatpush1.bf16.msra.mxu0 %v8890_v55  ;;  %5999 = vmatpush1.bf16.msra.mxu1 %v8891_v48  ;;  %v9291_v55 = vld [vmem:[#allocation152_spill] sm:$0xff]  ;;  %v9292_v48 = vld [vmem:[#allocation153_spill] sm:$0xff] }
 0x94c   :  { %5937 = vmatprep.subr.bf16.mxu0 %v8892_v52  ;;  %6001 = vmatprep.subr.bf16.mxu1 %v8893_v15  ;;  %v9293_v52 = vld [vmem:[#allocation154_spill] sm:$0xff]  ;;  %v9294_v15 = vld [vmem:[#allocation155_spill] sm:$0xff] }
 0x94f   :  { %5939 = vmatpush1.bf16.msra.mxu0 %v8894_v44  ;;  %6003 = vmatpush1.bf16.msra.mxu1 %v8895_v20  ;;  %v9295_v44 = vld [vmem:[#allocation156_spill] sm:$0xff]  ;;  %v9296_v20 = vld [vmem:[#allocation157_spill] sm:$0xff] }
 0x950   :  { %5941 = vmatprep.subr.bf16.mxu0 %v8896_v29  ;;  %6005 = vmatprep.subr.bf16.mxu1 %v8897_v7  ;;  %v9297_v29 = vld [vmem:[#allocation158_spill] sm:$0xff]  ;;  %v9298_v7 = vld [vmem:[#allocation159_spill] sm:$0xff] }
 0x953   :  { %5943 = vmatpush1.bf16.msra.mxu0 %v8898_v11  ;;  %6007 = vmatpush1.bf16.msra.mxu1 %v8991_v0  ;;  %v9299_v11 = vld [vmem:[#allocation160_spill] sm:$0xff]  ;;  %v3856_v0 = vld [vmem:[#allocation8 + $0x28] sm:$0xff] }
 0x954   :  { %5945 = vmatprep.subr.bf16.mxu0 %v8992_v59  ;;  %6009 = vmatprep.subr.bf16.mxu1 %v8993_v1  ;;  %v3858_v59 = vld [vmem:[#allocation8 + $0x38] sm:$0xff] }
 0x957   :  { %5947 = vmatpush1.bf16.msra.mxu0 %v8994_v43  ;;  %6011 = vmatpush1.bf16.msra.mxu1 %v8995_v58  ;;  %v6120_v43 = vpack.c.bf16 %v3858_v59, %v3856_v0  ;;  %v3855_v58 = vld [vmem:[#allocation8 + $0x20] sm:$0xff]  ;;  %v3880_v59 = vld [vmem:[#allocation8 + $0xe8] sm:$0xff] }
 0x958   :  { %5949 = vmatprep.subr.bf16.mxu0 %v8996_v24  ;;  %6013 = vmatprep.subr.bf16.mxu1 %v8997_v32  ;;  %v3857_v24 = vld [vmem:[#allocation8 + $0x30] sm:$0xff]  ;;  %v3860_v32 = vld [vmem:[#allocation8 + $0x48] sm:$0xff] }
 0x95b   :  { %5951 = vmatpush1.bf16.msra.mxu0 %v8998_v37  ;;  %6015 = vmatpush1.bf16.msra.mxu1 %v8999_v14  ;;  %v3862_v37 = vld [vmem:[#allocation8 + $0x58] sm:$0xff]  ;;  %v6122_v14 = vpack.c.bf16 %v3857_v24, %v3855_v58  ;;  %v3705_v58 = vld [vmem:[#allocation7 + $0x88] sm:$0xff] }
 0x95c   :  { %5953 = vmatprep.subr.bf16.mxu0 %v9000_v28  ;;  %6017 = vmatprep.subr.bf16.mxu1 %v9001_v41  ;;  %v3859_v28 = vld [vmem:[#allocation8 + $0x40] sm:$0xff]  ;;  %v3689_v41 = vld [vmem:[#allocation7 + $0x8] sm:$0xff]  ;;  %v6124_v23 = vpack.c.bf16 %v3862_v37, %v3860_v32  ;;  %v3707_v24 = vld [vmem:[#allocation7 + $0x98] sm:$0xff] }
 0x95d   :  { %v6052_v16 = vpack.c.bf16 %v3691_v50, %v3689_v41  ;;  %v6126_v19 = vpack.c.bf16 %v3861_v2, %v3859_v28  ;;  %v3879_v32 = vld [vmem:[#allocation8 + $0xe0] sm:$0xff]  ;;  %v6068_v37 = vpack.c.bf16 %v3707_v24, %v3705_v58  ;;  %v3706_v41 = vld [vmem:[#allocation7 + $0x90] sm:$0xff]  ;;  %v3886_v50 = vld [vmem:[#allocation8 + $0x118] sm:$0xff] }
 0x95e   :  { %v3704_v28 = vld [vmem:[#allocation7 + $0x80] sm:$0xff]  ;;  %v6148_v53 = vpack.c.bf16 %v3886_v50, %v3884_v51  ;;  %v3725_v58 = vld [vmem:[#allocation7 + $0x128] sm:$0xff]  ;;  %v3727_v24 = vld [vmem:[#allocation7 + $0x138] sm:$0xff] }
 0x95f   :  { %5955 = vmatpush1.bf16.msra.mxu0 %v8910_v35  ;;  %6019 = vmatpush1.bf16.msra.mxu1 %v8911_v8  ;;  %v9300_v35 = vld [vmem:[#allocation161_spill] sm:$0xff]  ;;  %v9301_v8 = vld [vmem:[#allocation162_spill] sm:$0xff]  ;;  %v6070_v2 = vpack.c.bf16 %v3706_v41, %v3704_v28  ;;  %v3726_v41 = vld [vmem:[#allocation7 + $0x130] sm:$0xff] }
 0x960   :  { %5957 = vmatprep.subr.bf16.mxu0 %v8912_v57  ;;  %6021 = vmatprep.subr.bf16.mxu1 %v8913_v42  ;;  %v9302_v57 = vld [vmem:[#allocation163_spill] sm:$0xff]  ;;  %v9303_v42 = vld [vmem:[#allocation164_spill] sm:$0xff]  ;;  %v3724_v28 = vld [vmem:[#allocation7 + $0x120] sm:$0xff] }
 0x961   :  { %v3904_v51 = vld [vmem:[#allocation8 + $0x1a8] sm:$0xff]  ;;  %v3906_v50 = vld [vmem:[#allocation8 + $0x1b8] sm:$0xff] }
 0x963   :  { %5959 = vmatpush1.bf16.msra.mxu0 %v8914_v21  ;;  %6023 = vmatpush1.bf16.msra.mxu1 %v8915_v47  ;;  %v9304_v21 = vld [vmem:[#allocation165_spill] sm:$0xff]  ;;  %v9305_v47 = vld [vmem:[#allocation166_spill] sm:$0xff] }
 0x964   :  { %5961 = vmatprep.subr.bf16.mxu0 %v8916_v10  ;;  %6025 = vmatprep.subr.bf16.mxu1 %v8917_v61  ;;  %v3852_v10 = vld [vmem:[#allocation8 + $0x8] sm:$0xff]  ;;  %v3854_v61 = vld [vmem:[#allocation8 + $0x18] sm:$0xff] }
 0x967   :  { %5963 = vmatpush1.bf16.msra.mxu0 %v8918_v3  ;;  %6027 = vmatpush1.bf16.msra.mxu1 %v8919_v40  ;;  %v3851_v3 = vld [vmem:[#allocation8] sm:$0xff]  ;;  %v6116_v40 = vpack.c.bf16 %v3854_v61, %v3852_v10  ;;  %v3877_v61 = vld [vmem:[#allocation8 + $0xd0] sm:$0xff] }
 0x968   :  { %5965 = vmatprep.subr.bf16.mxu0 %v8920_v17  ;;  %6029 = vmatprep.subr.bf16.mxu1 %v9283_v5  ;;  %v3853_v17 = vld [vmem:[#allocation8 + $0x10] sm:$0xff]  ;;  %v3697_v5 = vld [vmem:[#allocation7 + $0x48] sm:$0xff] }
 0x969   :  { %v6118_v1 = vpack.c.bf16 %v3853_v17, %v3851_v3  ;;  %v3702_v17 = vld [vmem:[#allocation7 + $0x70] sm:$0xff] }
 0x96b   :  { %5967 = vmatpush1.bf16.msra.mxu0 %v9284_v46  ;;  %6031 = vmatpush1.bf16.msra.mxu1 %v9285_v60  ;;  %v3699_v46 = vld [vmem:[#allocation7 + $0x58] sm:$0xff] }
 0x96c   :  { %5969 = vmatprep.subr.bf16.mxu0 %v9286_v4  ;;  %6033 = vmatprep.subr.bf16.mxu1 %v9287_v6  ;;  %v6060_v60 = vpack.c.bf16 %v3699_v46, %v3697_v5  ;;  %v3696_v4 = vld [vmem:[#allocation7 + $0x40] sm:$0xff]  ;;  %v3698_v6 = vld [vmem:[#allocation7 + $0x50] sm:$0xff] }
 0x96d   :  { %v3889_v5 = vld [vmem:[#allocation8 + $0x130] sm:$0xff]  ;;  %v3712_v46 = vld [vmem:[#allocation7 + $0xc0] sm:$0xff] }
 0x96f   :  { %5971 = vmatpush1.bf16.msra.mxu0 %v9288_v63  ;;  %6035 = vmatpush1.bf16.msra.mxu1 %v9289_v54  ;;  %v6130_v63 = vpack.c.bf16 %v3865_v26, %v3863_v12  ;;  %v6132_v54 = vpack.c.bf16 %v3870_v30, %v3868_v22  ;;  %v6150_v12 = vpack.c.bf16 %v3885_v33, %v3883_v62  ;;  %v3713_v22 = vld [vmem:[#allocation7 + $0xc8] sm:$0xff]  ;;  %v3887_v30 = vld [vmem:[#allocation8 + $0x120] sm:$0xff] }
 0x970   :  { %5973 = vmatprep.subr.bf16.mxu0 %v9290_v38  ;;  %6037 = vmatprep.subr.bf16.mxu1 %v9291_v55  ;;  %v3867_v38 = vld [vmem:[#allocation8 + $0x80] sm:$0xff]  ;;  %v3869_v55 = vld [vmem:[#allocation8 + $0x90] sm:$0xff] }
 0x971   :  { %v3903_v62 = vld [vmem:[#allocation8 + $0x1a0] sm:$0xff] }
 0x973   :  { %5975 = vmatpush1.bf16.msra.mxu0 %v9292_v48  ;;  %6039 = vmatpush1.bf16.msra.mxu1 %v9293_v52  ;;  %v6062_v48 = vpack.c.bf16 %v3698_v6, %v3696_v4  ;;  %v3872_v52 = vld [vmem:[#allocation8 + $0xa8] sm:$0xff]  ;;  %v6154_v4 = vpack.c.bf16 %v3889_v5, %v3887_v30  ;;  %v3909_v5 = vld [vmem:[#allocation8 + $0x1d0] sm:$0xff] }
 0x974   :  { %5977 = vmatprep.subr.bf16.mxu0 %v9294_v15  ;;  %6041 = vmatprep.subr.bf16.mxu1 %v9295_v44  ;;  %v3874_v15 = vld [vmem:[#allocation8 + $0xb8] sm:$0xff]  ;;  %v6134_v44 = vpack.c.bf16 %v3869_v55, %v3867_v38  ;;  %v3717_v55 = vld [vmem:[#allocation7 + $0xe8] sm:$0xff] }
 0x977   :  { %5979 = vmatpush1.bf16.msra.mxu0 %v9296_v20  ;;  %6043 = vmatpush1.bf16.msra.mxu1 %v9297_v29  ;;  %v6136_v20 = vpack.c.bf16 %v3874_v15, %v3872_v52  ;;  %v3871_v29 = vld [vmem:[#allocation8 + $0xa0] sm:$0xff] }
 0x978   :  { %5981 = vmatprep.subr.bf16.mxu0 %v9298_v7  ;;  %6045 = vmatprep.subr.bf16.mxu1 %v9299_v11  ;;  %v3873_v7 = vld [vmem:[#allocation8 + $0xb0] sm:$0xff]  ;;  %v3876_v11 = vld [vmem:[#allocation8 + $0xc8] sm:$0xff]  ;;  %v3891_v52 = vld [vmem:[#allocation8 + $0x140] sm:$0xff] }
 0x97b   :  { %5983 = vmatpush1.bf16.msra.mxu0 %v9300_v35  ;;  %6047 = vmatpush1.bf16.msra.mxu1 %v9301_v8  ;;  %v3878_v35 = vld [vmem:[#allocation8 + $0xd8] sm:$0xff]  ;;  %v6138_v8 = vpack.c.bf16 %v3873_v7, %v3871_v29  ;;  %v3718_v29 = vld [vmem:[#allocation7 + $0xf0] sm:$0xff] }
 0x97c   :  { %5985 = vmatprep.subr.bf16.mxu0 %v9302_v57  ;;  %6049 = vmatprep.subr.bf16.mxu1 %v9303_v42  ;;  %v6140_v57 = vpack.c.bf16 %v3878_v35, %v3876_v11  ;;  %v3701_v42 = vld [vmem:[#allocation7 + $0x68] sm:$0xff] }
 0x97d   :  { %v3896_v35 = vld [vmem:[#allocation8 + $0x168] sm:$0xff] }
 0x97f   :  { %5987 = vmatpush1.bf16.msra.mxu0 %v9304_v21  ;;  %6051 = vmatpush1.bf16.msra.mxu1 %v9305_v47  ;;  %v3703_v21 = vld [vmem:[#allocation7 + $0x78] sm:$0xff]  ;;  %v3875_v47 = vld [vmem:[#allocation8 + $0xc0] sm:$0xff] }
 0x980   :  { %6117 = vmatprep.subr.bf16.mxu1 %v6116_v40  ;;  %6053 = vmatprep.subr.bf16.mxu0 %v6052_v16  ;;  %v6064_v10 = vpack.c.bf16 %v3703_v21, %v3701_v42  ;;  %v6142_v3 = vpack.c.bf16 %v3877_v61, %v3875_v47  ;;  %v3700_v40 = vld [vmem:[#allocation7 + $0x60] sm:$0xff]  ;;  %v3709_v16 = vld [vmem:[#allocation7 + $0xa8] sm:$0xff]  ;;  %v3723_v21 = vld [vmem:[#allocation7 + $0x118] sm:$0xff] }
 0x981   :  { %v6066_v0 = vpack.c.bf16 %v3702_v17, %v3700_v40  ;;  %v3721_v42 = vld [vmem:[#allocation7 + $0x108] sm:$0xff]  ;;  %v3895_v47 = vld [vmem:[#allocation8 + $0x160] sm:$0xff]  ;;  %v3897_v61 = vld [vmem:[#allocation8 + $0x170] sm:$0xff] }
 0x982   :  { %3501 = vmatmul.mubr.f32.vlgmr.msra.gmra.mrb[34].mxu0 %v8132_v13  ;;  %3572 = vmatmul.mubr.f32.vlgmr.msra.gmra.mrb[34].mxu1 %v8132_v13  ;;  %v6058_v13 = vpack.c.bf16 %v3694_v36, %v3692_v31  ;;  %v3888_v31 = vld [vmem:[#allocation8 + $0x128] sm:$0xff]  ;;  %v3715_v36 = vld [vmem:[#allocation7 + $0xd8] sm:$0xff]  ;;  %v3722_v40 = vld [vmem:[#allocation7 + $0x110] sm:$0xff]  ;;  %v6162_v17 = vpack.c.bf16 %v3897_v61, %v3895_v47 }
 0x983   :  { %6119 = vmatpush1.bf16.msra.mxu1 %v6118_v1  ;;  %6055 = vmatpush1.bf16.msra.mxu0 %v6054_v45  ;;  %v3882_v1 = vld [vmem:[#allocation8 + $0xf8] sm:$0xff]  ;;  %v6072_v45 = vpack.c.bf16 %v3711_v49, %v3709_v16  ;;  %v6168_v16 = vpack.c.bf16 %v3906_v50, %v3904_v51  ;;  %v3745_v47 = vld [vmem:[#allocation7 + $0x1c8] sm:$0xff]  ;;  %v9306_v51 = vld [vmem:[#allocation90_spill] sm:$0xff] }
 0x984   :  { %6121 = vmatprep.subr.bf16.mxu1 %v6120_v43  ;;  %6057 = vmatprep.subr.bf16.mxu0 %v6056_v25  ;;  %v6144_v43 = vpack.c.bf16 %v3882_v1, %v3880_v59  ;;  %v3900_v59 = vld [vmem:[#allocation8 + $0x188] sm:$0xff]  ;;  %v3902_v1 = vld [vmem:[#allocation8 + $0x198] sm:$0xff] }
 0x985   :  { %v3731_v49 = vld [vmem:[#allocation7 + $0x158] sm:$0xff] }
 0x986   :  { %v3747_v61 = vld [vmem:[#allocation7 + $0x1d8] sm:$0xff] }
 0x987   :  { %6123 = vmatpush1.bf16.msra.mxu1 %v6122_v14  ;;  %6059 = vmatpush1.bf16.msra.mxu0 %v6058_v13  ;;  %v3881_v14 = vld [vmem:[#allocation8 + $0xf0] sm:$0xff]  ;;  %v6076_v13 = vpack.c.bf16 %v3715_v36, %v3713_v22  ;;  %v3735_v22 = vld [vmem:[#allocation7 + $0x178] sm:$0xff] }
 0x988   :  { %6125 = vmatprep.subr.bf16.mxu1 %v6124_v23  ;;  %6061 = vmatprep.subr.bf16.mxu0 %v6060_v60  ;;  %v6146_v23 = vpack.c.bf16 %v3881_v14, %v3879_v32  ;;  %v3714_v60 = vld [vmem:[#allocation7 + $0xd0] sm:$0xff]  ;;  %v3899_v32 = vld [vmem:[#allocation8 + $0x180] sm:$0xff] }
 0x989   :  { %v6078_v6 = vpack.c.bf16 %v3714_v60, %v3712_v46  ;;  %v3901_v14 = vld [vmem:[#allocation8 + $0x190] sm:$0xff]  ;;  %v3732_v46 = vld [vmem:[#allocation7 + $0x160] sm:$0xff] }
 0x98a   :  { %v3734_v60 = vld [vmem:[#allocation7 + $0x170] sm:$0xff] }
 0x98b   :  { %6127 = vmatpush1.bf16.msra.mxu1 %v6126_v19  ;;  %6063 = vmatpush1.bf16.msra.mxu0 %v6062_v48  ;;  %v3710_v19 = vld [vmem:[#allocation7 + $0xb0] sm:$0xff]  ;;  %v3719_v48 = vld [vmem:[#allocation7 + $0xf8] sm:$0xff] }
 0x98c   :  { %6129 = vmatprep.subr.bf16.mxu1 %v6128_v34  ;;  %6065 = vmatprep.subr.bf16.mxu0 %v6064_v10  ;;  %v6074_v25 = vpack.c.bf16 %v3710_v19, %v3708_v18  ;;  %v3890_v34 = vld [vmem:[#allocation8 + $0x138] sm:$0xff]  ;;  %v6080_v15 = vpack.c.bf16 %v3719_v48, %v3717_v55  ;;  %v6084_v10 = vpack.c.bf16 %v3723_v21, %v3721_v42  ;;  %v3728_v19 = vld [vmem:[#allocation7 + $0x140] sm:$0xff]  ;;  %v3742_v21 = vld [vmem:[#allocation7 + $0x1b0] sm:$0xff] }
 0x98d   :  { %v6152_v26 = vpack.c.bf16 %v3890_v34, %v3888_v31  ;;  %v3910_v34 = vld [vmem:[#allocation8 + $0x1d8] sm:$0xff]  ;;  %v3911_v48 = vld [vmem:[#allocation8 + $0x1e0] sm:$0xff] }
 0x98e   :  { %v3739_v55 = vld [vmem:[#allocation7 + $0x198] sm:$0xff]  ;;  %v3740_v42 = vld [vmem:[#allocation7 + $0x1a0] sm:$0xff] }
 0x98f   :  { %6131 = vmatpush1.bf16.msra.mxu1 %v6130_v63  ;;  %6067 = vmatpush1.bf16.msra.mxu0 %v6066_v0  ;;  %v3892_v63 = vld [vmem:[#allocation8 + $0x148] sm:$0xff] }
 0x990   :  { %6133 = vmatprep.subr.bf16.mxu1 %v6132_v54  ;;  %6069 = vmatprep.subr.bf16.mxu0 %v6068_v37  ;;  %v3894_v54 = vld [vmem:[#allocation8 + $0x158] sm:$0xff]  ;;  %v6088_v37 = vpack.c.bf16 %v3727_v24, %v3725_v58  ;;  %v3748_v58 = vld [vmem:[#allocation7 + $0x1e0] sm:$0xff]  ;;  %v3750_v24 = vld [vmem:[#allocation7 + $0x1f0] sm:$0xff] }
 0x991   :  { %v6156_v38 = vpack.c.bf16 %v3894_v54, %v3892_v63  ;;  %v6098_v54 = vpack.c.bf16 %v3734_v60, %v3732_v46  ;;  %v9310_v46 = vld [vmem:[#allocation108_spill] sm:$0xff] }
 0x992   :  { %v3630_v60 = vrot.slane %v9310_v46, 6 }
 0x993   :  { %6135 = vmatpush1.bf16.msra.mxu1 %v6134_v44  ;;  %6071 = vmatpush1.bf16.msra.mxu0 %v6070_v2  ;;  %v3893_v44 = vld [vmem:[#allocation8 + $0x150] sm:$0xff]  ;;  %v6090_v2 = vpack.c.bf16 %v3726_v41, %v3724_v28 }
 0x994   :  { %6137 = vmatprep.subr.bf16.mxu1 %v6136_v20  ;;  %6073 = vmatprep.subr.bf16.mxu0 %v6072_v45  ;;  %v3716_v20 = vld [vmem:[#allocation7 + $0xe0] sm:$0xff]  ;;  %v6158_v7 = vpack.c.bf16 %v3893_v44, %v3891_v52  ;;  %v3905_v45 = vld [vmem:[#allocation8 + $0x1b0] sm:$0xff] }
 0x995   :  { %v6082_v11 = vpack.c.bf16 %v3718_v29, %v3716_v20  ;;  %v6170_v18 = vpack.c.bf16 %v3905_v45, %v3903_v62  ;;  %v3913_v44 = vld [vmem:[#allocation8 + $0x1f0] sm:$0xff]  ;;  %v3736_v20 = vld [vmem:[#allocation7 + $0x180] sm:$0xff] }
 0x996   :  { %v3738_v29 = vld [vmem:[#allocation7 + $0x190] sm:$0xff] }
 0x997   :  { %6139 = vmatpush1.bf16.msra.mxu1 %v6138_v8  ;;  %6075 = vmatpush1.bf16.msra.mxu0 %v6074_v25  ;;  %v3898_v8 = vld [vmem:[#allocation8 + $0x178] sm:$0xff]  ;;  %v3908_v25 = vld [vmem:[#allocation8 + $0x1c8] sm:$0xff] }
 0x998   :  { %6141 = vmatprep.subr.bf16.mxu1 %v6140_v57  ;;  %6077 = vmatprep.subr.bf16.mxu0 %v6076_v13  ;;  %v6160_v57 = vpack.c.bf16 %v3898_v8, %v3896_v35  ;;  %v6172_v36 = vpack.c.bf16 %v3910_v34, %v3908_v25  ;;  %v3907_v13 = vld [vmem:[#allocation8 + $0x1c0] sm:$0xff]  ;;  %v3741_v35 = vld [vmem:[#allocation7 + $0x1a8] sm:$0xff]  ;;  %v3743_v8 = vld [vmem:[#allocation7 + $0x1b8] sm:$0xff] }
 0x999   :  { %v6174_v63 = vpack.c.bf16 %v3909_v5, %v3907_v13  ;;  %v9309_v25 = vld [vmem:[#allocation94_spill] sm:$0xff] }
 0x99b   :  { %6143 = vmatpush1.bf16.msra.mxu1 %v6142_v3  ;;  %6079 = vmatpush1.bf16.msra.mxu0 %v6078_v6  ;;  %v3720_v3 = vld [vmem:[#allocation7 + $0x100] sm:$0xff]  ;;  %v3914_v6 = vld [vmem:[#allocation8 + $0x1f8] sm:$0xff] }
 0x99c   :  { %6145 = vmatprep.subr.bf16.mxu1 %v6144_v43  ;;  %6081 = vmatprep.subr.bf16.mxu0 %v6080_v15  ;;  %v6086_v0 = vpack.c.bf16 %v3722_v40, %v3720_v3  ;;  %v6164_v43 = vpack.c.bf16 %v3902_v1, %v3900_v59  ;;  %v3744_v3 = vld [vmem:[#allocation7 + $0x1c0] sm:$0xff]  ;;  %v3746_v40 = vld [vmem:[#allocation7 + $0x1d0] sm:$0xff]  ;;  %v3751_v59 = vld [vmem:[#allocation7 + $0x1f8] sm:$0xff] }
 0x99d   :  { %v6110_v1 = vpack.c.bf16 %v3746_v40, %v3744_v3 }
 0x99f   :  { %6147 = vmatpush1.bf16.msra.mxu1 %v6146_v23  ;;  %6083 = vmatpush1.bf16.msra.mxu0 %v6082_v11  ;;  %v6166_v23 = vpack.c.bf16 %v3901_v14, %v3899_v32  ;;  %v6102_v11 = vpack.c.bf16 %v3738_v29, %v3736_v20  ;;  %v6114_v32 = vpack.c.bf16 %v3750_v24, %v3748_v58  ;;  %v9316_v24 = vrot.slane %v9090_v9, 2 }
 0x9a0   :  { %6149 = vmatprep.subr.bf16.mxu1 %v6148_v53  ;;  %6085 = vmatprep.subr.bf16.mxu0 %v6084_v10  ;;  %v3729_v53 = vld [vmem:[#allocation7 + $0x148] sm:$0xff]  ;;  %v6106_v10 = vpack.c.bf16 %v3742_v21, %v3740_v42  ;;  %v9312_v21 = vld [vmem:[#allocation97_spill] sm:$0xff] }
 0x9a1   :  { %v6092_v33 = vpack.c.bf16 %v3731_v49, %v3729_v53  ;;  %v9307_v53 = vld [vmem:[#allocation91_spill] sm:$0xff] }
 0x9a3   :  { %6151 = vmatpush1.bf16.msra.mxu1 %v6150_v12  ;;  %6087 = vmatpush1.bf16.msra.mxu0 %v6086_v0  ;;  %v3730_v12 = vld [vmem:[#allocation7 + $0x150] sm:$0xff]  ;;  %v3749_v0 = vld [vmem:[#allocation7 + $0x1e8] sm:$0xff] }
 0x9a4   :  { %6153 = vmatprep.subr.bf16.mxu1 %v6152_v26  ;;  %6089 = vmatprep.subr.bf16.mxu0 %v6088_v37  ;;  %v6094_v31 = vpack.c.bf16 %v3730_v12, %v3728_v19  ;;  %v3733_v26 = vld [vmem:[#allocation7 + $0x168] sm:$0xff] }
 0x9a5   :  { %v6096_v30 = vpack.c.bf16 %v3735_v22, %v3733_v26 }
 0x9a7   :  { %6155 = vmatpush1.bf16.msra.mxu1 %v6154_v4  ;;  %6091 = vmatpush1.bf16.msra.mxu0 %v6090_v2  ;;  %v3912_v4 = vld [vmem:[#allocation8 + $0x1e8] sm:$0xff] }
 0x9a8   :  { %6157 = vmatprep.subr.bf16.mxu1 %v6156_v38  ;;  %6093 = vmatprep.subr.bf16.mxu0 %v6092_v33  ;;  %v3737_v38 = vld [vmem:[#allocation7 + $0x188] sm:$0xff]  ;;  %v6176_v52 = vpack.c.bf16 %v3914_v6, %v3912_v4 }
 0x9a9   :  { %v6100_v15 = vpack.c.bf16 %v3739_v55, %v3737_v38  ;;  %v9308_v33 = vld [vmem:[#allocation95_spill] sm:$0xff] }
 0x9ab   :  { %6159 = vmatpush1.bf16.msra.mxu1 %v6158_v7  ;;  %6095 = vmatpush1.bf16.msra.mxu0 %v6094_v31  ;;  %v6178_v7 = vpack.c.bf16 %v3913_v44, %v3911_v48  ;;  %v9311_v44 = vld [vmem:[#allocation85_spill] sm:$0xff] }
 0x9ac   :  { %6161 = vmatprep.subr.bf16.mxu1 %v6160_v57  ;;  %6097 = vmatprep.subr.bf16.mxu0 %v6096_v30  ;;  %v6104_v57 = vpack.c.bf16 %v3743_v8, %v3741_v35 }
 0x9af   :  { %6163 = vmatpush1.bf16.msra.mxu1 %v6162_v17  ;;  %6099 = vmatpush1.bf16.msra.mxu0 %v6098_v54  ;;  %v6108_v17 = vpack.c.bf16 %v3747_v61, %v3745_v47  ;;  %v9313_v47 = vrot.slane %v9312_v21, 2  ;;  %v9314_v61 = vrot.slane %v9279_v27, 2 }
 0x9b0   :  { %6165 = vmatprep.subr.bf16.mxu1 %v6164_v43  ;;  %6101 = vmatprep.subr.bf16.mxu0 %v6100_v15  ;;  %v6112_v43 = vpack.c.bf16 %v3751_v59, %v3749_v0  ;;  %v9315_v59 = vrot.slane %v9184_v39, 2 }
 0x9b3   :  { %6167 = vmatpush1.bf16.msra.mxu1 %v6166_v23  ;;  %6103 = vmatpush1.bf16.msra.mxu0 %v6102_v11 }
 0x9b4   :  { %6169 = vmatprep.subr.bf16.mxu1 %v6168_v16  ;;  %6105 = vmatprep.subr.bf16.mxu0 %v6104_v57 }
 0x9b7   :  { %6171 = vmatpush1.bf16.msra.mxu1 %v6170_v18  ;;  %6107 = vmatpush1.bf16.msra.mxu0 %v6106_v10 }
 0x9b8   :  { %6173 = vmatprep.subr.bf16.mxu1 %v6172_v36  ;;  %6109 = vmatprep.subr.bf16.mxu0 %v6108_v17 }
 0x9bb   :  { %6175 = vmatpush1.bf16.msra.mxu1 %v6174_v63  ;;  %6111 = vmatpush1.bf16.msra.mxu0 %v6110_v1 }
 0x9bc   :  { %6177 = vmatprep.subr.bf16.mxu1 %v6176_v52  ;;  %6113 = vmatprep.subr.bf16.mxu0 %v6112_v43 }
 0x9bf   :  { %6179 = vmatpush1.bf16.msra.mxu1 %v6178_v7  ;;  %6115 = vmatpush1.bf16.msra.mxu0 %v6114_v32 }
 0xa15   :  { %v3360_v37 = vpop.f32.mrb[32].mxu0  ;;  %v3431_v14 = vpop.f32.mrb[32].mxu1 }
 0xa16   :  { %v3586_v28 = vrot.slane %v3360_v37, 2  ;;  %v3362_v41 = vpop.f32.mrb[33].mxu0  ;;  %v3433_v23 = vpop.f32.mrb[33].mxu1  ;;  %v3588_v19 = vrot.slane %v3431_v14, 2 }
 0xa17   :  { %v3587_v2 = vrot.slane %v3362_v41, 2  ;;  %v3589_v45 = vrot.slane %v3433_v23, 2 }
 0xa18   :  { %v3602_v50 = vadd.f32 %v3586_v28, %v9306_v51  ;;  %v3604_v31 = vadd.f32 %v3588_v19, %v9309_v25  ;;  %v3657_v51 = vrot.slane %v8129_v56, 6 }
 0xa19   :  { %v3603_v16 = vadd.f32 %v3587_v2, %v9307_v53  ;;  %v3605_v18 = vadd.f32 %v3589_v45, %v9308_v33 }
 0xa1a   :  { %v4124_v49 = vmul.f32 -1.442695, %v3602_v50 }
 0xa1b   :  { %v4125_v62 = vmul.f32 -1.442695, %v3603_v16  ;;  %v4126_v12 = vmul.f32 -1.442695, %v3605_v18 }
 0xa1c   :  { %6417 = vpow2.f32 %v4124_v49 }
 0xa1d   :  { %6419 = vpow2.f32 %v4125_v62 }
 0xa1e   :  { %6421 = vpow2.f32 %v4126_v12 }
 0xa1f   :  { %6423 = vtanh.f32 %v3604_v31 }
 0xa26   :  { %v6418_v34 = vpop.eup %6417 }
 0xa27   :  { %v6420_v26 = vpop.eup %6419  ;;  %v3613_v22 = vadd.f32 1.0, %v6418_v34 }
 0xa28   :  { %v3619_v36 = vadd.f32 1.0, %v6420_v26  ;;  %v6422_v30 = vpop.eup %6421 }
 0xa29   :  { %6425 = vrcp.f32 %v3613_v22  ;;  %v6424_v13 = vpop.eup %6423  ;;  %v3626_v6 = vadd.f32 1.0, %v6422_v30 }
 0xa2a   :  { %6427 = vrcp.f32 %v3619_v36 }
 0xa2b   :  { %6429 = vrcp.f32 %v3626_v6 }
 0xa33   :  { %v6426_v5 = vpop.eup %6425 }
 0xa34   :  { %v6428_v4 = vpop.eup %6427  ;;  %v3633_v63 = vmul.f32 %v6426_v5, %v6424_v13 }
 0xa35   :  { %v3632_v54 = vmul.f32 %v6428_v4, %v3630_v60  ;;  %v6430_v55 = vpop.eup %6429 }
 0xa37   :  { %v3634_v38 = vadd.f32 %v3633_v63, %v3632_v54 }
 0xa39   :  { %6431 = vtanh.f32 %v3634_v38  ;;  %v3929_v62 = vrot.slane %v3634_v38, 6 }
 0xa43   :  { %v6432_v48 = vpop.eup %6431 }
 0xa44   :  { %v3636_v52 = vmul.f32 %v6432_v48, %v6430_v55 }
 0xa46   :  { %v3665_v15 = vcombine.high %v3636_v52, %v3636_v52  ;;  %v3764_v25 = vrot.slane %v3636_v52, 6 }
 0xa48   :  { %v3672_v20 = vrot.slane %v3665_v15, %v9311_v44 }
 0xa4a   :  { %v3673_v29 = vcombine.high %v3672_v20, %v3672_v20 }
 0xa4c   :  { %3675 = vst [vmem:[#allocation10 + $0x1c] sm:$0x3] %v3673_v29 }
 0xa55   :  { %v3502_v7 = vpop.f32.mrb[34].mxu0  ;;  %v3573_v11 = vpop.f32.mrb[34].mxu1 }
 0xa56   :  { %v3590_v35 = vrot.slane %v3502_v7, 2  ;;  %v3504_v8 = vpop.f32.mrb[35].mxu0  ;;  %v3575_v57 = vpop.f32.mrb[35].mxu1  ;;  %v3592_v43 = vrot.slane %v3573_v11, 2 }
 0xa57   :  { %v3591_v42 = vrot.slane %v3504_v8, 2  ;;  %v3593_v0 = vrot.slane %v3575_v57, 2 }
 0xa58   :  { %v3606_v10 = vadd.f32 %v3590_v35, %v9313_v47  ;;  %v3608_v32 = vadd.f32 %v3592_v43, %v9316_v24 }
 0xa59   :  { %v3607_v3 = vadd.f32 %v3591_v42, %v9314_v61  ;;  %v3609_v1 = vadd.f32 %v3593_v0, %v9315_v59 }
 0xa5a   :  { %v4127_v40 = vmul.f32 -1.442695, %v3606_v10 }
 0xa5b   :  { %v4128_v17 = vmul.f32 -1.442695, %v3607_v3  ;;  %v4129_v58 = vmul.f32 -1.442695, %v3609_v1 }
 0xa5c   :  { %6433 = vpow2.f32 %v4127_v40 }
 0xa5d   :  { %6435 = vpow2.f32 %v4128_v17 }
 0xa5e   :  { %6437 = vpow2.f32 %v4129_v58 }
 0xa5f   :  { %6439 = vtanh.f32 %v3608_v32 }
 0xa66   :  { %v6434_v37 = vpop.eup %6433 }
 0xa67   :  { %v6436_v14 = vpop.eup %6435  ;;  %v3640_v28 = vadd.f32 1.0, %v6434_v37 }
 0xa68   :  { %v3646_v27 = vadd.f32 1.0, %v6436_v14  ;;  %v6438_v41 = vpop.eup %6437 }
 0xa69   :  { %6441 = vrcp.f32 %v3640_v28  ;;  %v6440_v23 = vpop.eup %6439  ;;  %v3653_v50 = vadd.f32 1.0, %v6438_v41 }
 0xa6a   :  { %6443 = vrcp.f32 %v3646_v27 }
 0xa6b   :  { %6445 = vrcp.f32 %v3653_v50 }
 0xa73   :  { %v6442_v2 = vpop.eup %6441 }
 0xa74   :  { %v6444_v39 = vpop.eup %6443  ;;  %v3660_v53 = vmul.f32 %v6442_v2, %v6440_v23 }
 0xa75   :  { %v3659_v16 = vmul.f32 %v6444_v39, %v3657_v51  ;;  %v6446_v45 = vpop.eup %6445 }
 0xa77   :  { %v3661_v49 = vadd.f32 %v3660_v53, %v3659_v16 }
 0xa79   :  { %6447 = vtanh.f32 %v3661_v49  ;;  %v3930_v9 = vrot.slane %v3661_v49, 6 }
 0xa7b   :  { %3997 = vmatprep.mubr.f32.mxu1 %v3930_v9 }
 0xa7c   :  { %3998 = vmatmul.mubr.f32.vlgmr.msra.gmra.mrb[36].mxu1 %v3929_v62 }
 0xa83   :  { %v6448_v33 = vpop.eup %6447 }
 0xa84   :  { %v3663_v18 = vmul.f32 %v6448_v33, %v6446_v45 }
 0xa86   :  { %v3677_v19 = vcombine.high %v3663_v18, %v3663_v18  ;;  %v3765_v12 = vrot.slane %v3663_v18, 6 }
 0xa88   :  { %v3684_v31 = vrot.slane %v3677_v19, %v9311_v44  ;;  %3832 = vmatprep.mubr.f32.mxu0 %v3765_v12 }
 0xa89   :  { %3833 = vmatmul.mubr.f32.vlgmr.msra.gmra.mrb[36].mxu0 %v3764_v25 }
 0xa8a   :  { %v3685_v56 = vcombine.high %v3684_v31, %v3684_v31 }
 0xa8c   :  { %3687 = vst [vmem:[#allocation10 + $0x2] sm:$0x3] %v3685_v56 }
 0xa8d   :  { %6548 = shalt.err (!%p6545_p8)
}
 0xa8e   :  { %s6549_s15 = scalar_lea.hbm %s8272_s8, 512 }
 0xa8f   :  { %p6550_p9 = scmp.ne.s32.totalorder %s8272_s8, %s6549_s15  ;;  %p6553_p10 = scmp.lt.u32.totalorder %s6549_s15, %s8272_s8 }
 0xa91   :  { %p6555_p11 = pnand %p6553_p10, %p6550_p9 }
 0xa93   :  { %6558 = shalt.err (!%p6555_p11)
}
 0xa94   :  { %s6623_s19 = smov 4   ;;  %v3915_v34 = vld [vmem:[%s8271_s7] sm:$0x3]  ;;  %v9318_v36 = vld [vmem:[#allocation87_spill] sm:$0xff]  ;;  %s6624_s7 = smov [#allocation11]  }
 0xa95   :  { %4027 = dma.vmem_to_hbm [thread:$0]  %s4022_s25, 512, %s8272_s8, [#allocation4], %s6616_s26, %s6616_s26, %s6623_s19   ;;  %v9317_v26 = vld [vmem:[#allocation86_spill] sm:$0xff]  ;;  %v3924_v30 = vrot.slane %v3915_v34, %v9318_v36 }
 0xa96   :  { %v3920_v22 = vrot.slane %v3915_v34, %v9317_v26  ;;  %v3752_v6 = vld [vmem:[%s8269_s5] sm:$0x3]  ;;  %s4034_s8 = sshll.u32 %s6624_s7, 4  ;;  %s6625_s26 = smov [#allocation13]   ;;  %s4035_s8 = int_to_ptr.vmem [resolvable:$true] %s4034_s8 }
 0xa97   :  { %v3757_v63 = vrot.slane %v3752_v6, %v9317_v26  ;;  %v3761_v54 = vrot.slane %v3752_v6, %v9318_v36  ;;  %s4044_s24 = sshll.u32 %s6625_s26, 4  ;;  %s6559_s27 = scalar_lea.vmem %s4035_s8, 64  ;;  %s4045_s24 = int_to_ptr.vmem [resolvable:$true] %s4044_s24 }
 0xa98   :  { %p6560_p12 = scmp.ne.s32.totalorder %s4035_s8, %s6559_s27  ;;  %p6564_p13 = scmp.lt.s32.totalorder %s4035_s8, %s4035_s8 }
 0xa99   :  { %p6565_p0 = scmp.lt.s32.totalorder %s6559_s27, %s6559_s27 }
 0xa9b   :  { %p6566_p1 = por %p6565_p0, %p6564_p13 }
 0xa9d   :  { %p6567_p2 = pnand %p6566_p1, %p6560_p12 }
 0xb4f   :  { %v3999_v13 = vpop.f32.mrb[36].mxu1 }
 0xb50   :  { %v4000_v5 = vadd.f32 %v3999_v13, %v3920_v22  ;;  %v4001_v46 = vpop.f32.mrb[37].mxu1 }
 0xb51   :  { %v4002_v60 = vadd.f32 %v4001_v46, %v3924_v30 }
 0xb53   :  { %v4006_v4 = vcombine.low %v4000_v5, %v4002_v60 }
 0xb55   :  { %4131 = vst.sshfl [vmem:[#allocation13] sm:$0x33 pattern:$0x76325410] %v4006_v4 }
 0xb5c   :  { %v3834_v38 = vpop.f32.mrb[36].mxu0 }
 0xb5d   :  { %v3835_v55 = vadd.f32 %v3834_v38, %v3757_v63  ;;  %v3836_v48 = vpop.f32.mrb[37].mxu0 }
 0xb5e   :  { %v3837_v52 = vadd.f32 %v3836_v48, %v3761_v54 }
 0xb60   :  { %v3841_v15 = vcombine.low %v3835_v55, %v3837_v52 }
 0xb62   :  { %4130 = vst.sshfl [vmem:[#allocation11] sm:$0x33 pattern:$0x76325410] %v3841_v15 }
 0xb63   :  { %6570 = shalt.err (!%p6567_p2)
}
 0xb64   :  { %s6571_s29 = scalar_lea.hbm %s8273_s9, 64 }
 0xb65   :  { %p6572_p3 = scmp.ne.s32.totalorder %s8273_s9, %s6571_s29  ;;  %p6575_p4 = scmp.lt.u32.totalorder %s6571_s29, %s8273_s9 }
 0xb67   :  { %p6577_p5 = pnand %p6575_p4, %p6572_p3 }
 0xb69   :  { %6580 = shalt.err (!%p6577_p5)
}
 0xb6a   :  { %4037 = dma.vmem_to_hbm [thread:$0]  %s4035_s8, 64, %s8273_s9, [#allocation12]  }
 0xb6b   :  { %s6581_s11 = scalar_lea.vmem %s4045_s24, 64  ;;  %p6586_p7 = scmp.lt.s32.totalorder %s4045_s24, %s4045_s24 }
 0xb6c   :  { %p6582_p6 = scmp.ne.s32.totalorder %s4045_s24, %s6581_s11  ;;  %p6587_p8 = scmp.lt.s32.totalorder %s6581_s11, %s6581_s11 }
 0xb6e   :  { %p6588_p9 = por %p6587_p8, %p6586_p7 }
 0xb70   :  { %p6589_p10 = pnand %p6588_p9, %p6582_p6 }
 0xb72   :  { %6592 = shalt.err (!%p6589_p10)
}
 0xb73   :  { %s6593_s15 = scalar_lea.hbm %s8274_s10, 64 }
 0xb74   :  { %p6594_p11 = scmp.ne.s32.totalorder %s8274_s10, %s6593_s15  ;;  %p6597_p12 = scmp.lt.u32.totalorder %s6593_s15, %s8274_s10 }
 0xb76   :  { %p6599_p13 = pnand %p6597_p12, %p6594_p11 }
 0xb78   :  { %6602 = shalt.err (!%p6599_p13)
}
 0xb79   :  { %4047 = dma.vmem_to_hbm [thread:$0]  %s4045_s24, 64, %s8274_s10, [#allocation12]  }
 0xb7a   :  { %6609 = dma.done.wait [#allocation4], 512  }
 0xb7b   :  { %6610 = vsyncadd [#allocation4], 4294966784 }
 0xb7c   :  { %6611 = dma.done.wait [#allocation12], 128  }
 0xb7d   :  { %6612 = vsyncadd [#allocation12], 4294967168 }
 0xb7e   :  { %4057 = vsyncpa [#allocation3], 1 }
 0xb7f   :  { %4058 = vsyncpa [#allocation6], 1 }
 0xb80   :  { %4059 = vsyncpa [#allocation9], 1 }
 0xb81   :  { %4060 = vsyncpa [#allocation4], 1 }
 0xb82   :  { %4061 = vsyncpa [#allocation12], 1 }

</bundles_post_ra>
